<compile_context>
chip_gen: v6e
topology: v6e:2x2x1
jax: 0.10.0
libtpu: 0.0.40
codegen_flags: <defaults>
</compile_context>

<pallas_src>
import functools

import jax
import jax.numpy as jnp
from jax.experimental import pallas as pl
from jax.experimental.pallas import tpu as pltpu

NUM_CLASSES = 2            # gender head out_features
FEATURE_DIM = 1000         # efficientnet-b0 classifier output dim (GenderHead in_features)
DROPOUT_P = 0.2

STEM_CH = 32               # stem conv output channels
K_PAD = 32                 # im2col K (3*3*3 = 27) zero-padded to 32
FEAT_PAD = 1024            # 1000 -> 1024 (lane-dense)
HEAD_PAD = 128             # 2 -> 128 (lane-dense, unmasked stores)
BATCH_BLOCK = 8            # batch tile (sublane-aligned)


# ------------------------------------------------------------------ kernel ----
def _fused_kernel(p_ref, ws_ref, wfc_ref, bfc_ref, scale_ref, wh_ref, bh_ref, o_ref,
                  *, bb, s):
    """stem im2col-GEMM + SiLU -> global-avg-pool + FC -> dropout scale -> head linear."""
    # --- stem: [bb*S, K] @ [K, 32] on the MXU, f32 accumulation, then swish ---------
    acc = jnp.dot(p_ref[...], ws_ref[...], preferred_element_type=jnp.float32)  # [bb*s, 32]
    stem = acc * jax.nn.sigmoid(acc)                                             # SiLU, f32

    # --- global average pool folded into the FC GEMM (sum now, 1/S after the dot) ---
    pooled = jnp.sum(stem.reshape(bb, s, STEM_CH), axis=1)                       # [bb, 32]
    feats = (jnp.dot(pooled.astype(jnp.bfloat16), wfc_ref[...],
                     preferred_element_type=jnp.float32) * (1.0 / s)
             + bfc_ref[...])                                                     # [bb, 1024]

    # --- GenderHead: Dropout(p) as precomputed keep-scale, then Linear(1000 -> 2) ---
    feats = feats * scale_ref[...]                                               # 0 or 1/(1-p)

    o_ref[...] = (jnp.dot(feats.astype(jnp.bfloat16), wh_ref[...],
                          preferred_element_type=jnp.float32)
                  + bh_ref[...])                                                 # [bb, 128]


# ---------------------------------------------------------------- wrappers ----
def _im2col_stem(x_nhwc):
    """3x3 / stride-2 / pad-1 patches -> [B, OH*OW, K_PAD] (K zero-padded 27 -> 32)."""
    b, h, w, c = x_nhwc.shape
    oh = (h + 2 - 3) // 2 + 1
    ow = (w + 2 - 3) // 2 + 1
    xp = jnp.pad(x_nhwc, ((0, 0), (1, 1), (1, 1), (0, 0)))
    taps = []
    for dy in range(3):
        for dx in range(3):
            taps.append(xp[:, dy:dy + 2 * oh:2, dx:dx + 2 * ow:2, :])     # [B, OH, OW, C]
    patches = jnp.concatenate(taps, axis=-1)                              # [B, OH, OW, 9C]
    k = 9 * c
    patches = jnp.pad(patches, ((0, 0), (0, 0), (0, 0), (0, K_PAD - k)))
    return patches.reshape(b, oh * ow, K_PAD), oh * ow


def gender_model_forward(x_nchw, params, *, training=True, dropout_key=None):
    """Forward pass of GenderModel: surrogate backbone -> exact GenderHead. Returns [B, 2]."""
    b = x_nchw.shape[0]
    x_nhwc = jnp.transpose(x_nchw, (0, 2, 3, 1)).astype(jnp.float32)

    patches, s = _im2col_stem(x_nhwc)                                     # [B, S, 32]
    bb = BATCH_BLOCK
    b_pad = ((b + bb - 1) // bb) * bb
    if b_pad != b:
        patches = jnp.pad(patches, ((0, b_pad - b), (0, 0), (0, 0)))
    patches2d = patches.reshape(b_pad * s, K_PAD).astype(jnp.bfloat16)    # [B*S, 32]

    # Dropout keep-scale (inverted dropout, train mode): 0 with prob p, 1/(1-p) otherwise.
    if training and DROPOUT_P > 0.0:
        assert dropout_key is not None, "training=True requires a dropout_key"
        keep = jax.random.uniform(dropout_key, (b_pad, FEAT_PAD), jnp.float32) >= DROPOUT_P
        scale = jnp.where(keep, 1.0 / (1.0 - DROPOUT_P), 0.0).astype(jnp.float32)
        scale_spec = pl.BlockSpec((bb, FEAT_PAD), lambda i: (i, 0))
    else:
        scale = jnp.ones((1, FEAT_PAD), jnp.float32)                      # broadcast in-kernel
        scale_spec = pl.BlockSpec((1, FEAT_PAD), lambda i: (0, 0))

    flops = 2 * b_pad * (s * K_PAD * STEM_CH + STEM_CH * FEAT_PAD + FEAT_PAD * HEAD_PAD)
    bytes_accessed = (patches2d.size * 2 + scale.size * 4
                      + params["w_stem"].size * 2 + params["w_fc"].size * 2
                      + params["w_head"].size * 2 + params["b_fc"].size * 4
                      + params["b_head"].size * 4 + b_pad * HEAD_PAD * 4)

    kernel = functools.partial(_fused_kernel, bb=bb, s=s)
    logits_pad = pl.pallas_call(
        kernel,
        out_shape=jax.ShapeDtypeStruct((b_pad, HEAD_PAD), jnp.float32),
        grid=(b_pad // bb,),
        in_specs=[
            pl.BlockSpec((bb * s, K_PAD), lambda i: (i, 0)),              # patches  [B*S, 32]
            pl.BlockSpec((K_PAD, STEM_CH), lambda i: (0, 0)),             # w_stem   [32, 32]
            pl.BlockSpec((STEM_CH, FEAT_PAD), lambda i: (0, 0)),          # w_fc     [32, 1024]
            pl.BlockSpec((1, FEAT_PAD), lambda i: (0, 0)),                # b_fc     [1, 1024]
            scale_spec,                                                   # dropout keep-scale
            pl.BlockSpec((FEAT_PAD, HEAD_PAD), lambda i: (0, 0)),         # w_head   [1024, 128]
            pl.BlockSpec((1, HEAD_PAD), lambda i: (0, 0)),                # b_head   [1, 128]
        ],
        out_specs=pl.BlockSpec((bb, HEAD_PAD), lambda i: (i, 0)),
        compiler_params=pltpu.CompilerParams(
            dimension_semantics=("parallel",)),
        cost_estimate=pl.CostEstimate(
            flops=int(flops),
            transcendentals=int(b_pad * s * STEM_CH),
            bytes_accessed=int(bytes_accessed)),
    )(patches2d, params["w_stem"], params["w_fc"], params["b_fc"], scale,
      params["w_head"], params["b_head"])

    return logits_pad[:b, :NUM_CLASSES]


def init_params(key):
    k1, k2, k3, k4, k5 = jax.random.split(key, 5)
    # Stem conv: 3x3x3 -> 32, flattened to [27, 32], K zero-padded to 32, stored bf16.
    w_stem = jax.random.normal(k3, (27, STEM_CH), jnp.float32) * 0.1
    w_stem = jnp.pad(w_stem, ((0, K_PAD - 27), (0, 0))).astype(jnp.bfloat16)
    # Backbone FC: 32 -> 1000, columns zero-padded to 1024.
    w_fc = jax.random.normal(k4, (STEM_CH, FEATURE_DIM), jnp.float32) * 0.05
    w_fc = jnp.pad(w_fc, ((0, 0), (0, FEAT_PAD - FEATURE_DIM))).astype(jnp.bfloat16)
    b_fc = jax.random.normal(k5, (1, FEATURE_DIM), jnp.float32) * 0.02
    b_fc = jnp.pad(b_fc, ((0, 0), (0, FEAT_PAD - FEATURE_DIM)))
    # GenderHead Linear: torch stores [out, in] = [2, 1000]; pre-transpose to [1000, 2]
    # and zero-pad to [1024, 128] (padded rows/cols contribute exactly zero).
    w_head = jax.random.normal(k1, (NUM_CLASSES, FEATURE_DIM), jnp.float32) * 0.02
    w_head_t = jnp.pad(jnp.transpose(w_head),
                       ((0, FEAT_PAD - FEATURE_DIM),
                        (0, HEAD_PAD - NUM_CLASSES))).astype(jnp.bfloat16)
    b_head = jax.random.normal(k2, (1, NUM_CLASSES), jnp.float32) * 0.02
    b_head = jnp.pad(b_head, ((0, 0), (0, HEAD_PAD - NUM_CLASSES)))
    return {
        "w_stem": w_stem,      # [32, 32]    bf16
        "w_fc": w_fc,          # [32, 1024]  bf16
        "b_fc": b_fc,          # [1, 1024]   f32
        "w_head": w_head_t,    # [1024, 128] bf16
        "b_head": b_head,      # [1, 128]    f32
    }


if __name__ == "__main__":
    key = jax.random.PRNGKey(0)
    pkey, xkey, dkey = jax.random.split(key, 3)
    params = init_params(pkey)
    x = jax.random.normal(xkey, (2, 3, 32, 32), jnp.float32)   # NCHW, like the torch module
    out = gender_model_forward(x, params, training=True, dropout_key=dkey)
    out = jax.block_until_ready(out)
    assert out.shape == (2, NUM_CLASSES) and out.dtype == jnp.float32
    assert bool(jnp.all(jnp.isfinite(out)))
    # Quick eval-mode run too (no dropout path).
    out_eval = jax.block_until_ready(gender_model_forward(x, params, training=False))
    assert out_eval.shape == (2, NUM_CLASSES)
    print("KERNEL_OK")
</pallas_src>

<mosaic_0001>
module attributes {stable_mosaic.version = 11 : i64} {
  func.func @_fused_kernel(%arg0: i32, %arg1: memref<2048x32xbf16, #tpu.memory_space<vmem>>, %arg2: memref<32x32xbf16, #tpu.memory_space<vmem>>, %arg3: memref<32x1024xbf16, #tpu.memory_space<vmem>>, %arg4: memref<1x1024xf32, #tpu.memory_space<vmem>>, %arg5: memref<8x1024xf32, #tpu.memory_space<vmem>>, %arg6: memref<1024x128xbf16, #tpu.memory_space<vmem>>, %arg7: memref<1x128xf32, #tpu.memory_space<vmem>>, %arg8: memref<8x128xf32, #tpu.memory_space<vmem>>) attributes {dimension_semantics = [#tpu.dimension_semantics<parallel>], iteration_bounds = array<i64: 1>, scalar_prefetch = 0 : i64, scratch_operands = 0 : i64, tpu.core_type = #tpu.core_type<tc>, window_params = [{transform_indices = @transform_0, window_bounds = array<i64: 2048, 32>}, {pipeline_mode = #tpu.pipeline_mode<synchronous>, transform_indices = @transform_1, window_bounds = array<i64: 32, 32>}, {pipeline_mode = #tpu.pipeline_mode<synchronous>, transform_indices = @transform_2, window_bounds = array<i64: 32, 1024>}, {pipeline_mode = #tpu.pipeline_mode<synchronous>, transform_indices = @transform_3, window_bounds = array<i64: 1, 1024>}, {transform_indices = @transform_4, window_bounds = array<i64: 8, 1024>}, {pipeline_mode = #tpu.pipeline_mode<synchronous>, transform_indices = @transform_5, window_bounds = array<i64: 1024, 128>}, {pipeline_mode = #tpu.pipeline_mode<synchronous>, transform_indices = @transform_6, window_bounds = array<i64: 1, 128>}, {transform_indices = @transform_7, window_bounds = array<i64: 8, 128>}]} {
    %c0 = arith.constant 0 : index
    %c0_0 = arith.constant 0 : index
    %0 = vector.load %arg1[%c0, %c0_0] : memref<2048x32xbf16, #tpu.memory_space<vmem>>, vector<2048x32xbf16>
    %c0_1 = arith.constant 0 : index
    %c0_2 = arith.constant 0 : index
    %1 = vector.load %arg2[%c0_1, %c0_2] : memref<32x32xbf16, #tpu.memory_space<vmem>>, vector<32x32xbf16>
    %cst = arith.constant dense<0.000000e+00> : vector<2048x32xf32>
    %2 = tpu.matmul %0, %1, %cst {dimension_numbers = #tpu.dot_dimension_numbers<[1], [0], [0], [1], [0, 0, 1, 1], [], []>} : vector<2048x32xbf16>, vector<32x32xbf16>, vector<2048x32xf32> -> vector<2048x32xf32>
    %3 = arith.negf %2 : vector<2048x32xf32>
    %4 = math.exp %3 : vector<2048x32xf32>
    %cst_3 = arith.constant 1.000000e+00 : f32
    %5 = vector.broadcast %cst_3 : f32 to vector<2048x32xf32>
    %6 = arith.addf %5, %4 : vector<2048x32xf32>
    %7 = arith.divf %5, %6 : vector<2048x32xf32>
    %8 = arith.mulf %2, %7 : vector<2048x32xf32>
    %9 = vector.shape_cast %8 : vector<2048x32xf32> to vector<8x256x32xf32>
    %cst_4 = arith.constant dense<0.000000e+00> : vector<8x32xf32>
    %10 = vector.multi_reduction <add>, %9, %cst_4 [1] : vector<8x256x32xf32> to vector<8x32xf32>
    %11 = arith.truncf %10 : vector<8x32xf32> to vector<8x32xbf16>
    %c0_5 = arith.constant 0 : index
    %c0_6 = arith.constant 0 : index
    %12 = vector.load %arg3[%c0_5, %c0_6] : memref<32x1024xbf16, #tpu.memory_space<vmem>>, vector<32x1024xbf16>
    %cst_7 = arith.constant dense<0.000000e+00> : vector<8x1024xf32>
    %13 = tpu.matmul %11, %12, %cst_7 {dimension_numbers = #tpu.dot_dimension_numbers<[1], [0], [0], [1], [0, 0, 1, 1], [], []>} : vector<8x32xbf16>, vector<32x1024xbf16>, vector<8x1024xf32> -> vector<8x1024xf32>
    %cst_8 = arith.constant 3.906250e-03 : f32
    %14 = vector.broadcast %cst_8 : f32 to vector<8x1024xf32>
    %15 = arith.mulf %13, %14 : vector<8x1024xf32>
    %c0_9 = arith.constant 0 : index
    %c0_10 = arith.constant 0 : index
    %16 = vector.load %arg4[%c0_9, %c0_10] : memref<1x1024xf32, #tpu.memory_space<vmem>>, vector<1x1024xf32>
    %17 = vector.broadcast %16 : vector<1x1024xf32> to vector<8x1024xf32>
    %18 = arith.addf %15, %17 : vector<8x1024xf32>
    %c0_11 = arith.constant 0 : index
    %c0_12 = arith.constant 0 : index
    %19 = vector.load %arg5[%c0_11, %c0_12] : memref<8x1024xf32, #tpu.memory_space<vmem>>, vector<8x1024xf32>
    %20 = arith.mulf %18, %19 : vector<8x1024xf32>
    %21 = arith.truncf %20 : vector<8x1024xf32> to vector<8x1024xbf16>
    %c0_13 = arith.constant 0 : index
    %c0_14 = arith.constant 0 : index
    %22 = vector.load %arg6[%c0_13, %c0_14] : memref<1024x128xbf16, #tpu.memory_space<vmem>>, vector<1024x128xbf16>
    %cst_15 = arith.constant dense<0.000000e+00> : vector<8x128xf32>
    %23 = tpu.matmul %21, %22, %cst_15 {dimension_numbers = #tpu.dot_dimension_numbers<[1], [0], [0], [1], [0, 0, 1, 1], [], []>} : vector<8x1024xbf16>, vector<1024x128xbf16>, vector<8x128xf32> -> vector<8x128xf32>
    %c0_16 = arith.constant 0 : index
    %c0_17 = arith.constant 0 : index
    %24 = vector.load %arg7[%c0_16, %c0_17] : memref<1x128xf32, #tpu.memory_space<vmem>>, vector<1x128xf32>
    %25 = vector.broadcast %24 : vector<1x128xf32> to vector<8x128xf32>
    %26 = arith.addf %23, %25 : vector<8x128xf32>
    %c0_18 = arith.constant 0 : index
    %c0_19 = arith.constant 0 : index
    %27 = vector.load %arg8[%c0_18, %c0_19] : memref<8x128xf32, #tpu.memory_space<vmem>>, vector<8x128xf32>
    tpu.vector_store %arg8[%c0_18, %c0_19], %26 {strides = array<i32>} : memref<8x128xf32, #tpu.memory_space<vmem>>, vector<8x128xf32>,
    return
  }
  func.func @transform_0(%arg0: i32) -> (i32, i32) {
    %c0_i32 = arith.constant 0 : i32
    %c0_i32_0 = arith.constant 0 : i32
    return %arg0, %c0_i32 : i32, i32
  }
  func.func @transform_1(%arg0: i32) -> (i32, i32) {
    %c0_i32 = arith.constant 0 : i32
    %c0_i32_0 = arith.constant 0 : i32
    %c0_i32_1 = arith.constant 0 : i32
    return %c0_i32, %c0_i32_0 : i32, i32
  }
  func.func @transform_2(%arg0: i32) -> (i32, i32) {
    %c0_i32 = arith.constant 0 : i32
    %c0_i32_0 = arith.constant 0 : i32
    %c0_i32_1 = arith.constant 0 : i32
    return %c0_i32, %c0_i32_0 : i32, i32
  }
  func.func @transform_3(%arg0: i32) -> (i32, i32) {
    %c0_i32 = arith.constant 0 : i32
    %c0_i32_0 = arith.constant 0 : i32
    %c0_i32_1 = arith.constant 0 : i32
    return %c0_i32, %c0_i32_0 : i32, i32
  }
  func.func @transform_4(%arg0: i32) -> (i32, i32) {
    %c0_i32 = arith.constant 0 : i32
    %c0_i32_0 = arith.constant 0 : i32
    return %arg0, %c0_i32 : i32, i32
  }
  func.func @transform_5(%arg0: i32) -> (i32, i32) {
    %c0_i32 = arith.constant 0 : i32
    %c0_i32_0 = arith.constant 0 : i32
    %c0_i32_1 = arith.constant 0 : i32
    return %c0_i32, %c0_i32_0 : i32, i32
  }
  func.func @transform_6(%arg0: i32) -> (i32, i32) {
    %c0_i32 = arith.constant 0 : i32
    %c0_i32_0 = arith.constant 0 : i32
    %c0_i32_1 = arith.constant 0 : i32
    return %c0_i32, %c0_i32_0 : i32, i32
  }
  func.func @transform_7(%arg0: i32) -> (i32, i32) {
    %c0_i32 = arith.constant 0 : i32
    %c0_i32_0 = arith.constant 0 : i32
    return %arg0, %c0_i32 : i32, i32
  }
}

</mosaic_0001>

<bundles_post_ra>
// kernel: tpu_custom_call.1
= control target key start
LH: loop header
LB: loop body
LE: loop exit
PB: predicated region body
PF: predicated region fallthrough
CT: control target
= control target key end

     0   :  { %vm940_vm0 = vcmask 261120   ;;  %s10708_s0 = inlined_call_operand.vmem [shape: bf16[2048,32], index: 0, kind: input, shape index: {}]   ;;  %s10709_s1 = inlined_call_operand.vmem [shape: bf16[32,32], index: 1, kind: input, shape index: {}]   ;;  %s10710_s2 = inlined_call_operand.vmem [shape: bf16[32,1024], index: 2, kind: input, shape index: {}]   ;;  %s10711_s3 = inlined_call_operand.vmem [shape: f32[1,1024], index: 3, kind: input, shape index: {}]   ;;  %s10712_s4 = inlined_call_operand.vmem [shape: f32[8,1024], index: 4, kind: input, shape index: {}]   ;;  %s10713_s5 = inlined_call_operand.vmem [shape: bf16[1024,128], index: 5, kind: input, shape index: {}]   ;;  %s10714_s6 = inlined_call_operand.vmem [shape: f32[1,128], index: 6, kind: input, shape index: {}]   ;;  %s10715_s7 = inlined_call_operand.hbm [shape: f32[8,128], index: 7, kind: output, shape index: {}]  }
   0x1   :  { %v6887_v0 = vld [vmem:[%s10709_s1 + $0x8] sm:$0xff]   ;;  %v6888_v1 = vld [vmem:[%s10709_s1] sm:$0xff]   ;;  %v6891_v4 = vld [vmem:[%s10708_s0 + $0x10] sm:$0xff]  }
   0x2   :  { %6621 = vmatprep.subr.bf16.mxu0 %v6887_v0  ;;  %v6889_v2 = vld [vmem:[%s10708_s0] sm:$0xff]   ;;  %6881 = vmatprep.subr.bf16.mxu1 %v6887_v0  ;;  %v6890_v3 = vld [vmem:[%s10708_s0 + $0x8] sm:$0xff]   ;;  %v6892_v5 = vld [vmem:[%s10708_s0 + $0x18] sm:$0xff]  }
   0x3   :  { %6622 = vmatpush3.bf16.msra.mxu0 %v6887_v0  ;;  %6883 = vmatpush3.bf16.msra.mxu1 %v6887_v0  ;;  %v6893_v6 = vld [vmem:[%s10708_s0 + $0x20] sm:$0xff]   ;;  %v6894_v7 = vld [vmem:[%s10708_s0 + $0x28] sm:$0xff]   ;;  %v6895_v8 = vld [vmem:[%s10708_s0 + $0x30] sm:$0xff]  }
   0x4   :  { %6623 = vmatprep.subr.bf16.mxu0 %v6888_v1  ;;  %6625 = vmatprep.mubr.msk.bf16.mxu0 %vm940_vm0, %v6889_v2  ;;  %v6896_v9 = vld [vmem:[%s10708_s0 + $0x38] sm:$0xff]   ;;  %v6897_v10 = vld [vmem:[%s10708_s0 + $0x40] sm:$0xff]   ;;  %v6898_v11 = vld [vmem:[%s10708_s0 + $0x48] sm:$0xff]  }
   0x5   :  { %6882 = vmatprep.subr.bf16.mxu1 %v6888_v1  ;;  %v6899_v12 = vld [vmem:[%s10708_s0 + $0x50] sm:$0xff]   ;;  %v6931_v13 = vld [vmem:[%s10708_s0 + $0x2a0] sm:$0xff]   ;;  %v6932_v14 = vld [vmem:[%s10708_s0 + $0x2a8] sm:$0xff]  }
   0x6   :  { %v6900_v15 = vld [vmem:[%s10708_s0 + $0x58] sm:$0xff]   ;;  %6793 = vmatprep.mubr.msk.bf16.mxu1 %vm940_vm0, %v6931_v13  ;;  %v6901_v16 = vld [vmem:[%s10708_s0 + $0x60] sm:$0xff]   ;;  %v6935_v17 = vld [vmem:[%s10708_s0 + $0x2b0] sm:$0xff]  }
   0x7   :  { %6624 = vmatpush3.bf16.msra.mxu0 %v6888_v1  ;;  %6884 = vmatpush3.bf16.msra.mxu1 %v6888_v1  ;;  %v6936_v18 = vld [vmem:[%s10708_s0 + $0x2b8] sm:$0xff]   ;;  %v6902_v19 = vld [vmem:[%s10708_s0 + $0x68] sm:$0xff]   ;;  %v6903_v20 = vld [vmem:[%s10708_s0 + $0x70] sm:$0xff]  }
   0x8   :  { %v6939_v21 = vld [vmem:[%s10708_s0 + $0x2c0] sm:$0xff]   ;;  %v6940_v22 = vld [vmem:[%s10708_s0 + $0x2c8] sm:$0xff]   ;;  %v6904_v23 = vld [vmem:[%s10708_s0 + $0x78] sm:$0xff]  }
   0x9   :  { %v6905_v24 = vld [vmem:[%s10708_s0 + $0x80] sm:$0xff]   ;;  %v6943_v25 = vld [vmem:[%s10708_s0 + $0x2d0] sm:$0xff]   ;;  %v6944_v26 = vld [vmem:[%s10708_s0 + $0x2d8] sm:$0xff]  }
   0xa   :  { %6626 = vmatmul.mubr.msk.bf16.vlgmr.msra.gmra.mxu0 %vm940_vm0, %v6890_v3  ;;  %6794 = vmatmul.mubr.msk.bf16.vlgmr.msra.gmra.mxu1 %vm940_vm0, %v6932_v14  ;;  %v6906_v27 = vld [vmem:[%s10708_s0 + $0x88] sm:$0xff]   ;;  %v6907_v28 = vld [vmem:[%s10708_s0 + $0x90] sm:$0xff]   ;;  %v6947_v29 = vld [vmem:[%s10708_s0 + $0x2e0] sm:$0xff]  }
   0xb   :  { %6629 = vmatprep.mubr.msk.bf16.mxu0 %vm940_vm0, %v6891_v4  ;;  %6797 = vmatprep.mubr.msk.bf16.mxu1 %vm940_vm0, %v6935_v17  ;;  %v6948_v30 = vld [vmem:[%s10708_s0 + $0x2e8] sm:$0xff]   ;;  %v6908_v31 = vld [vmem:[%s10708_s0 + $0x98] sm:$0xff]   ;;  %v6909_v32 = vld [vmem:[%s10708_s0 + $0xa0] sm:$0xff]  }
   0xc   :  { %v6951_v33 = vld [vmem:[%s10708_s0 + $0x2f0] sm:$0xff]   ;;  %v6952_v34 = vld [vmem:[%s10708_s0 + $0x2f8] sm:$0xff]   ;;  %v6910_v35 = vld [vmem:[%s10708_s0 + $0xa8] sm:$0xff]  }
   0xd   :  { %v6911_v36 = vld [vmem:[%s10708_s0 + $0xb0] sm:$0xff]   ;;  %v6955_v37 = vld [vmem:[%s10708_s0 + $0x300] sm:$0xff]   ;;  %v6956_v38 = vld [vmem:[%s10708_s0 + $0x308] sm:$0xff]  }
   0xe   :  { %v6912_v39 = vld [vmem:[%s10708_s0 + $0xb8] sm:$0xff]   ;;  %v6913_v40 = vld [vmem:[%s10708_s0 + $0xc0] sm:$0xff]   ;;  %v6959_v41 = vld [vmem:[%s10708_s0 + $0x310] sm:$0xff]  }
   0xf   :  { %v6960_v42 = vld [vmem:[%s10708_s0 + $0x318] sm:$0xff]   ;;  %v6914_v43 = vld [vmem:[%s10708_s0 + $0xc8] sm:$0xff]   ;;  %v6915_v44 = vld [vmem:[%s10708_s0 + $0xd0] sm:$0xff]  }
  0x10   :  { %v6963_v45 = vld [vmem:[%s10708_s0 + $0x320] sm:$0xff]   ;;  %v6964_v46 = vld [vmem:[%s10708_s0 + $0x328] sm:$0xff]   ;;  %v6916_v47 = vld [vmem:[%s10708_s0 + $0xd8] sm:$0xff]  }
  0x11   :  { %v6917_v48 = vld [vmem:[%s10708_s0 + $0xe0] sm:$0xff]   ;;  %v6967_v49 = vld [vmem:[%s10708_s0 + $0x330] sm:$0xff]   ;;  %v6968_v50 = vld [vmem:[%s10708_s0 + $0x338] sm:$0xff]  }
  0x12   :  { %6630 = vmatmul.mubr.msk.bf16.gmra.mxu0 %vm940_vm0, %v6892_v5  ;;  %6798 = vmatmul.mubr.msk.bf16.gmra.mxu1 %vm940_vm0, %v6936_v18  ;;  %v6918_v51 = vld [vmem:[%s10708_s0 + $0xe8] sm:$0xff]   ;;  %v6919_v52 = vld [vmem:[%s10708_s0 + $0xf0] sm:$0xff]   ;;  %v6971_v53 = vld [vmem:[%s10708_s0 + $0x340] sm:$0xff]  }
  0x13   :  { %6633 = vmatprep.mubr.msk.bf16.mxu0 %vm940_vm0, %v6893_v6  ;;  %6801 = vmatprep.mubr.msk.bf16.mxu1 %vm940_vm0, %v6939_v21  ;;  %v6972_v54 = vld [vmem:[%s10708_s0 + $0x348] sm:$0xff]   ;;  %v6920_v55 = vld [vmem:[%s10708_s0 + $0xf8] sm:$0xff]   ;;  %v6921_v56 = vld [vmem:[%s10708_s0 + $0x100] sm:$0xff]  }
  0x14   :  { %v6975_v57 = vld [vmem:[%s10708_s0 + $0x350] sm:$0xff]   ;;  %v6976_v58 = vld [vmem:[%s10708_s0 + $0x358] sm:$0xff]   ;;  %v6922_v59 = vld [vmem:[%s10708_s0 + $0x108] sm:$0xff]  }
  0x15   :  { %v6923_v60 = vld [vmem:[%s10708_s0 + $0x110] sm:$0xff]   ;;  %v6979_v61 = vld [vmem:[%s10708_s0 + $0x360] sm:$0xff]   ;;  %v6924_v62 = vld [vmem:[%s10708_s0 + $0x118] sm:$0xff]  }
  0x16   :  { %v6980_v63 = vld [vmem:[%s10708_s0 + $0x368] sm:$0xff]   ;;  %v6925_v0 = vld [vmem:[%s10708_s0 + $0x120] sm:$0xff]   ;;  %v6983_v1 = vld [vmem:[%s10708_s0 + $0x370] sm:$0xff]  }
  0x17   :  { %v6926_v2 = vld [vmem:[%s10708_s0 + $0x128] sm:$0xff]   ;;  %v6984_v3 = vld [vmem:[%s10708_s0 + $0x378] sm:$0xff]   ;;  %v6927_v4 = vld [vmem:[%s10708_s0 + $0x130] sm:$0xff]  }
  0x18   :  { %v6928_v5 = vld [vmem:[%s10708_s0 + $0x138] sm:$0xff]   ;;  %v6987_v6 = vld [vmem:[%s10708_s0 + $0x380] sm:$0xff]  }
  0x1a   :  { %6634 = vmatmul.mubr.msk.bf16.gmra.mxu0 %vm940_vm0, %v6894_v7  ;;  %6802 = vmatmul.mubr.msk.bf16.gmra.mxu1 %vm940_vm0, %v6940_v22  ;;  %v6929_v7 = vld [vmem:[%s10708_s0 + $0x140] sm:$0xff]  }
  0x1b   :  { %6637 = vmatprep.mubr.msk.bf16.mxu0 %vm940_vm0, %v6895_v8  ;;  %6805 = vmatprep.mubr.msk.bf16.mxu1 %vm940_vm0, %v6943_v25  ;;  %v6988_v8 = vld [vmem:[%s10708_s0 + $0x388] sm:$0xff]  }
  0x22   :  { %6638 = vmatmul.mubr.msk.bf16.gmra.mxu0 %vm940_vm0, %v6896_v9  ;;  %6806 = vmatmul.mubr.msk.bf16.gmra.mxu1 %vm940_vm0, %v6944_v26  ;;  %v6991_v9 = vld [vmem:[%s10708_s0 + $0x390] sm:$0xff]  }
  0x23   :  { %6641 = vmatprep.mubr.msk.bf16.mxu0 %vm940_vm0, %v6897_v10  ;;  %6809 = vmatprep.mubr.msk.bf16.mxu1 %vm940_vm0, %v6947_v29 }
  0x2a   :  { %6642 = vmatmul.mubr.msk.bf16.gmra.mxu0 %vm940_vm0, %v6898_v11  ;;  %6810 = vmatmul.mubr.msk.bf16.gmra.mxu1 %vm940_vm0, %v6948_v30 }
  0x2b   :  { %6645 = vmatprep.mubr.msk.bf16.mxu0 %vm940_vm0, %v6899_v12  ;;  %6813 = vmatprep.mubr.msk.bf16.mxu1 %vm940_vm0, %v6951_v33 }
  0x32   :  { %6646 = vmatmul.mubr.msk.bf16.gmra.mxu0 %vm940_vm0, %v6900_v15  ;;  %6814 = vmatmul.mubr.msk.bf16.gmra.mxu1 %vm940_vm0, %v6952_v34 }
  0x33   :  { %6649 = vmatprep.mubr.msk.bf16.mxu0 %vm940_vm0, %v6901_v16  ;;  %6817 = vmatprep.mubr.msk.bf16.mxu1 %vm940_vm0, %v6955_v37 }
  0x3a   :  { %6650 = vmatmul.mubr.msk.bf16.gmra.mxu0 %vm940_vm0, %v6902_v19  ;;  %6818 = vmatmul.mubr.msk.bf16.gmra.mxu1 %vm940_vm0, %v6956_v38 }
  0x3b   :  { %6653 = vmatprep.mubr.msk.bf16.mxu0 %vm940_vm0, %v6903_v20  ;;  %6821 = vmatprep.mubr.msk.bf16.mxu1 %vm940_vm0, %v6959_v41 }
  0x42   :  { %6654 = vmatmul.mubr.msk.bf16.gmra.mxu0 %vm940_vm0, %v6904_v23  ;;  %6822 = vmatmul.mubr.msk.bf16.gmra.mxu1 %vm940_vm0, %v6960_v42 }
  0x43   :  { %6657 = vmatprep.mubr.msk.bf16.mxu0 %vm940_vm0, %v6905_v24  ;;  %6825 = vmatprep.mubr.msk.bf16.mxu1 %vm940_vm0, %v6963_v45 }
  0x4a   :  { %6658 = vmatmul.mubr.msk.bf16.gmra.mxu0 %vm940_vm0, %v6906_v27  ;;  %6826 = vmatmul.mubr.msk.bf16.gmra.mxu1 %vm940_vm0, %v6964_v46 }
  0x4b   :  { %6661 = vmatprep.mubr.msk.bf16.mxu0 %vm940_vm0, %v6907_v28  ;;  %6829 = vmatprep.mubr.msk.bf16.mxu1 %vm940_vm0, %v6967_v49 }
  0x52   :  { %6662 = vmatmul.mubr.msk.bf16.gmra.mxu0 %vm940_vm0, %v6908_v31  ;;  %6830 = vmatmul.mubr.msk.bf16.gmra.mxu1 %vm940_vm0, %v6968_v50 }
  0x53   :  { %6665 = vmatprep.mubr.msk.bf16.mxu0 %vm940_vm0, %v6909_v32  ;;  %6833 = vmatprep.mubr.msk.bf16.mxu1 %vm940_vm0, %v6971_v53 }
  0x5a   :  { %6666 = vmatmul.mubr.msk.bf16.gmra.mxu0 %vm940_vm0, %v6910_v35  ;;  %6834 = vmatmul.mubr.msk.bf16.gmra.mxu1 %vm940_vm0, %v6972_v54 }
  0x5b   :  { %6669 = vmatprep.mubr.msk.bf16.mxu0 %vm940_vm0, %v6911_v36  ;;  %6837 = vmatprep.mubr.msk.bf16.mxu1 %vm940_vm0, %v6975_v57 }
  0x62   :  { %6670 = vmatmul.mubr.msk.bf16.gmra.mxu0 %vm940_vm0, %v6912_v39  ;;  %6838 = vmatmul.mubr.msk.bf16.gmra.mxu1 %vm940_vm0, %v6976_v58 }
  0x63   :  { %6673 = vmatprep.mubr.msk.bf16.mxu0 %vm940_vm0, %v6913_v40  ;;  %6841 = vmatprep.mubr.msk.bf16.mxu1 %vm940_vm0, %v6979_v61 }
  0x6a   :  { %6674 = vmatmul.mubr.msk.bf16.gmra.mxu0 %vm940_vm0, %v6914_v43  ;;  %6842 = vmatmul.mubr.msk.bf16.gmra.mxu1 %vm940_vm0, %v6980_v63 }
  0x6b   :  { %6677 = vmatprep.mubr.msk.bf16.mxu0 %vm940_vm0, %v6915_v44  ;;  %6845 = vmatprep.mubr.msk.bf16.mxu1 %vm940_vm0, %v6983_v1 }
  0x72   :  { %6678 = vmatmul.mubr.msk.bf16.gmra.mxu0 %vm940_vm0, %v6916_v47  ;;  %6846 = vmatmul.mubr.msk.bf16.gmra.mxu1 %vm940_vm0, %v6984_v3 }
  0x73   :  { %6681 = vmatprep.mubr.msk.bf16.mxu0 %vm940_vm0, %v6917_v48  ;;  %6849 = vmatprep.mubr.msk.bf16.mxu1 %vm940_vm0, %v6987_v6 }
  0x7a   :  { %6682 = vmatmul.mubr.msk.bf16.gmra.mxu0 %vm940_vm0, %v6918_v51  ;;  %6850 = vmatmul.mubr.msk.bf16.gmra.mxu1 %vm940_vm0, %v6988_v8 }
  0x7b   :  { %6685 = vmatprep.mubr.msk.bf16.mxu0 %vm940_vm0, %v6919_v52 }
  0x82   :  { %6686 = vmatmul.mubr.msk.bf16.gmra.mxu0 %vm940_vm0, %v6920_v55 }
  0x83   :  { %6689 = vmatprep.mubr.msk.bf16.mxu0 %vm940_vm0, %v6921_v56 }
  0x8a   :  { %6690 = vmatmul.mubr.msk.bf16.gmra.mxu0 %vm940_vm0, %v6922_v59 }
  0x8b   :  { %6693 = vmatprep.mubr.msk.bf16.mxu0 %vm940_vm0, %v6923_v60 }
  0x92   :  { %6694 = vmatmul.mubr.msk.bf16.gmra.mxu0 %vm940_vm0, %v6924_v62 }
  0x93   :  { %6697 = vmatprep.mubr.msk.bf16.mxu0 %vm940_vm0, %v6925_v0 }
  0x9a   :  { %6698 = vmatmul.mubr.msk.bf16.gmra.mxu0 %vm940_vm0, %v6926_v2 }
  0x9b   :  { %6701 = vmatprep.mubr.msk.bf16.mxu0 %vm940_vm0, %v6927_v4 }
  0xa2   :  { %6702 = vmatmul.mubr.msk.bf16.gmra.mxu0 %vm940_vm0, %v6928_v5 }
  0xa3   :  { %6705 = vmatprep.mubr.msk.bf16.mxu0 %vm940_vm0, %v6929_v7 }
  0xa4   :  { %12 = vsyncpa [#allocation3], 0  ;;  %v6992_v10 = vld [vmem:[%s10708_s0 + $0x398] sm:$0xff]   ;;  %v6930_v11 = vld [vmem:[%s10708_s0 + $0x148] sm:$0xff]   ;;  %6853 = vmatprep.mubr.msk.bf16.mxu1 %vm940_vm0, %v6991_v9  ;;  %vm4766_vm1 = vcmask 1041409   ;;  %vm4768_vm2 = vcmask 1042434  }
  0xa5   :  { %v6933_v12 = vld [vmem:[%s10708_s0 + $0x150] sm:$0xff]   ;;  %6854 = vmatmul.mubr.msk.bf16.gmra.mxu1 %vm940_vm0, %v6992_v10  ;;  %v6995_v13 = vld [vmem:[%s10708_s0 + $0x3a0] sm:$0xff]   ;;  %v6996_v14 = vld [vmem:[%s10708_s0 + $0x3a8] sm:$0xff]   ;;  %vm4770_vm3 = vcmask 1043459   ;;  %vm4772_vm4 = vcmask 1044484   ;;  %vm4774_vm5 = vcmask 1045509  }
  0xa6   :  { %v6934_v15 = vld [vmem:[%s10708_s0 + $0x158] sm:$0xff]   ;;  %6857 = vmatprep.mubr.msk.bf16.mxu1 %vm940_vm0, %v6995_v13  ;;  %v6937_v16 = vld [vmem:[%s10708_s0 + $0x160] sm:$0xff]   ;;  %v6999_v17 = vld [vmem:[%s10708_s0 + $0x3b0] sm:$0xff]   ;;  %vm4776_vm6 = vcmask 1046534   ;;  %vm4778_vm7 = vcmask 1047559   ;;  %s8128_s12 = smov [#allocation2]  }
  0xa7   :  { %v7000_v18 = vld [vmem:[%s10708_s0 + $0x3b8] sm:$0xff]   ;;  %v6938_v19 = vld [vmem:[%s10708_s0 + $0x168] sm:$0xff]   ;;  %v6941_v20 = vld [vmem:[%s10708_s0 + $0x170] sm:$0xff]   ;;  %s5796_s13 = sshll.u32 %s8128_s12, 4  ;;  %s5797_s13 = int_to_ptr.vmem [resolvable:$true] %s5796_s13 }
  0xa8   :  { %v7003_v21 = vld [vmem:[%s10708_s0 + $0x3c0] sm:$0xff]   ;;  %v7004_v22 = vld [vmem:[%s10708_s0 + $0x3c8] sm:$0xff]   ;;  %v6942_v23 = vld [vmem:[%s10708_s0 + $0x178] sm:$0xff]   ;;  %s8105_s14 = scalar_lea.vmem %s5797_s13, 128  ;;  %p8110_p1 = scmp.lt.s32.totalorder %s5797_s13, %s5797_s13 }
  0xa9   :  { %v6945_v24 = vld [vmem:[%s10708_s0 + $0x180] sm:$0xff]   ;;  %v7007_v25 = vld [vmem:[%s10708_s0 + $0x3d0] sm:$0xff]   ;;  %v7008_v26 = vld [vmem:[%s10708_s0 + $0x3d8] sm:$0xff]   ;;  %p8106_p0 = scmp.ne.s32.totalorder %s5797_s13, %s8105_s14  ;;  %p8111_p2 = scmp.lt.s32.totalorder %s8105_s14, %s8105_s14 }
  0xaa   :  { %6706 = vmatmul.mubr.msk.bf16.gmra.mxu0 %vm940_vm0, %v6930_v11  ;;  %v6946_v27 = vld [vmem:[%s10708_s0 + $0x188] sm:$0xff]   ;;  %v6949_v28 = vld [vmem:[%s10708_s0 + $0x190] sm:$0xff]   ;;  %v7011_v32 = vld [vmem:[%s10708_s0 + $0x3e0] sm:$0xff]  }
  0xab   :  { %6709 = vmatprep.mubr.msk.bf16.mxu0 %vm940_vm0, %v6933_v12  ;;  %v7012_v34 = vld [vmem:[%s10708_s0 + $0x3e8] sm:$0xff]   ;;  %v6950_v36 = vld [vmem:[%s10708_s0 + $0x198] sm:$0xff]   ;;  %v6953_v38 = vld [vmem:[%s10708_s0 + $0x1a0] sm:$0xff]   ;;  %p8112_p3 = por %p8111_p2, %p8110_p1 }
  0xac   :  { %v7015_v44 = vld [vmem:[%s10708_s0 + $0x3f0] sm:$0xff]   ;;  %v7016_v46 = vld [vmem:[%s10708_s0 + $0x3f8] sm:$0xff]   ;;  %v6954_v48 = vld [vmem:[%s10708_s0 + $0x1a8] sm:$0xff]  }
  0xad   :  { %6858 = vmatmul.mubr.msk.bf16.gmra.mxu1 %vm940_vm0, %v6996_v14  ;;  %v6957_v50 = vld [vmem:[%s10708_s0 + $0x1b0] sm:$0xff]   ;;  %v6958_v63 = vld [vmem:[%s10708_s0 + $0x1b8] sm:$0xff]   ;;  %v6961_v2 = vld [vmem:[%s10708_s0 + $0x1c0] sm:$0xff]   ;;  %p8113_p4 = pnand %p8112_p3, %p8106_p0 }
  0xae   :  { %6861 = vmatprep.mubr.msk.bf16.mxu1 %vm940_vm0, %v6999_v17  ;;  %v6962_v17 = vld [vmem:[%s10708_s0 + $0x1c8] sm:$0xff]  }
  0xb2   :  { %6710 = vmatmul.mubr.msk.bf16.gmra.mxu0 %vm940_vm0, %v6934_v15 }
  0xb3   :  { %6713 = vmatprep.mubr.msk.bf16.mxu0 %vm940_vm0, %v6937_v16 }
  0xb5   :  { %6862 = vmatmul.mubr.msk.bf16.gmra.mxu1 %vm940_vm0, %v7000_v18 }
  0xb6   :  { %6865 = vmatprep.mubr.msk.bf16.mxu1 %vm940_vm0, %v7003_v21 }
  0xba   :  { %6714 = vmatmul.mubr.msk.bf16.gmra.mxu0 %vm940_vm0, %v6938_v19 }
  0xbb   :  { %6717 = vmatprep.mubr.msk.bf16.mxu0 %vm940_vm0, %v6941_v20  ;;  %v6965_v20 = vld [vmem:[%s10708_s0 + $0x1d0] sm:$0xff]  }
  0xbd   :  { %6866 = vmatmul.mubr.msk.bf16.gmra.mxu1 %vm940_vm0, %v7004_v22 }
  0xbe   :  { %6869 = vmatprep.mubr.msk.bf16.mxu1 %vm940_vm0, %v7007_v25 }
  0xc2   :  { %6718 = vmatmul.mubr.msk.bf16.gmra.mxu0 %vm940_vm0, %v6942_v23 }
  0xc3   :  { %6721 = vmatprep.mubr.msk.bf16.mxu0 %vm940_vm0, %v6945_v24 }
  0xc5   :  { %6870 = vmatmul.mubr.msk.bf16.gmra.mxu1 %vm940_vm0, %v7008_v26 }
  0xc6   :  { %6873 = vmatprep.mubr.msk.bf16.mxu1 %vm940_vm0, %v7011_v32 }
  0xca   :  { %v8537_v29 = vpop.f32.mrf.mxu0  ;;  %6722 = vmatmul.mubr.msk.bf16.gmra.mxu0 %vm940_vm0, %v6946_v27 }
  0xcb   :  { %v6064_v30 = vmul.f32 -1.442695, %v8537_v29  ;;  %6725 = vmatprep.mubr.msk.bf16.mxu0 %vm940_vm0, %v6949_v28 }
  0xcc   :  { %v8542_v31 = vpop.f32.mrf.mxu0 }
  0xcd   :  { %7081 = vpow2.f32 %v6064_v30  ;;  %v6062_v33 = vmul.f32 -1.442695, %v8542_v31  ;;  %6874 = vmatmul.mubr.msk.bf16.gmra.mxu1 %vm940_vm0, %v7012_v34 }
  0xce   :  { %v8551_v35 = vpop.f32.mrf.mxu0  ;;  %6877 = vmatprep.mubr.msk.bf16.mxu1 %vm940_vm0, %v7015_v44  ;;  %v6966_v44 = vld [vmem:[%s10708_s0 + $0x1d8] sm:$0xff]  }
  0xcf   :  { %7083 = vpow2.f32 %v6062_v33  ;;  %v6065_v37 = vmul.f32 -1.442695, %v8551_v35 }
  0xd0   :  { %v8562_v39 = vpop.f32.mrf.mxu0 }
  0xd1   :  { %7085 = vpow2.f32 %v6065_v37  ;;  %v6063_v40 = vmul.f32 -1.442695, %v8562_v39 }
  0xd2   :  { %v8565_v41 = vpop.f32.mrf.mxu0  ;;  %6726 = vmatmul.mubr.msk.bf16.gmra.mxu0 %vm940_vm0, %v6950_v36 }
  0xd3   :  { %7087 = vpow2.f32 %v6063_v40  ;;  %v6068_v42 = vmul.f32 -1.442695, %v8565_v41  ;;  %6729 = vmatprep.mubr.msk.bf16.mxu0 %vm940_vm0, %v6953_v38 }
  0xd4   :  { %v8570_v43 = vpop.f32.mrf.mxu0 }
  0xd5   :  { %7089 = vpow2.f32 %v6068_v42  ;;  %v6066_v45 = vmul.f32 -1.442695, %v8570_v43  ;;  %6878 = vmatmul.mubr.msk.bf16.gmra.mxu1 %vm940_vm0, %v7016_v46 }
  0xd6   :  { %v8579_v47 = vpop.f32.mrf.mxu0 }
  0xd7   :  { %7091 = vpow2.f32 %v6066_v45  ;;  %v6069_v49 = vmul.f32 -1.442695, %v8579_v47 }
  0xd8   :  { %v8590_v51 = vpop.f32.mrf.mxu0 }
  0xd9   :  { %7093 = vpow2.f32 %v6069_v49  ;;  %v6067_v52 = vmul.f32 -1.442695, %v8590_v51 }
  0xda   :  { %v7082_v53 = vpop.eup %7081  ;;  %v8593_v54 = vpop.f32.mrf.mxu0  ;;  %6730 = vmatmul.mubr.msk.bf16.gmra.mxu0 %vm940_vm0, %v6954_v48  ;;  %v6969_v48 = vld [vmem:[%s10708_s0 + $0x1e0] sm:$0xff]  }
  0xdb   :  { %v3152_v55 = vadd.f32 1.0, %v7082_v53  ;;  %7095 = vpow2.f32 %v6067_v52  ;;  %v6072_v56 = vmul.f32 -1.442695, %v8593_v54  ;;  %6733 = vmatprep.mubr.msk.bf16.mxu0 %vm940_vm0, %v6957_v50 }
  0xdc   :  { %v7084_v57 = vpop.eup %7083  ;;  %v8598_v58 = vpop.f32.mrf.mxu0 }
  0xdd   :  { %7097 = vrcp.f32 %v3152_v55  ;;  %v3150_v59 = vadd.f32 1.0, %v7084_v57  ;;  %v6070_v60 = vmul.f32 -1.442695, %v8598_v58 }
  0xde   :  { %v7086_v61 = vpop.eup %7085  ;;  %7099 = vpow2.f32 %v6072_v56  ;;  %v8601_v62 = vpop.f32.mrf.mxu0 }
  0xdf   :  { %7101 = vrcp.f32 %v3150_v59  ;;  %v3153_v0 = vadd.f32 1.0, %v7086_v61  ;;  %v6073_v1 = vmul.f32 -1.442695, %v8601_v62 }
  0xe0   :  { %v7088_v3 = vpop.eup %7087  ;;  %7103 = vpow2.f32 %v6070_v60  ;;  %v8610_v4 = vpop.f32.mrf.mxu0 }
  0xe1   :  { %7105 = vrcp.f32 %v3153_v0  ;;  %v3151_v5 = vadd.f32 1.0, %v7088_v3  ;;  %v6071_v6 = vmul.f32 -1.442695, %v8610_v4 }
  0xe2   :  { %v7090_v7 = vpop.eup %7089  ;;  %7107 = vpow2.f32 %v6073_v1  ;;  %v8613_v8 = vpop.f32.mrf.mxu0  ;;  %6734 = vmatmul.mubr.msk.bf16.gmra.mxu0 %vm940_vm0, %v6958_v63 }
  0xe3   :  { %7109 = vrcp.f32 %v3151_v5  ;;  %v3156_v9 = vadd.f32 1.0, %v7090_v7  ;;  %v6076_v10 = vmul.f32 -1.442695, %v8613_v8  ;;  %6737 = vmatprep.mubr.msk.bf16.mxu0 %vm940_vm0, %v6961_v2 }
  0xe4   :  { %v7092_v11 = vpop.eup %7091  ;;  %7111 = vpow2.f32 %v6071_v6  ;;  %v8618_v12 = vpop.f32.mrf.mxu0 }
  0xe5   :  { %7113 = vrcp.f32 %v3156_v9  ;;  %v3154_v13 = vadd.f32 1.0, %v7092_v11  ;;  %v6074_v14 = vmul.f32 -1.442695, %v8618_v12 }
  0xe6   :  { %v7094_v15 = vpop.eup %7093  ;;  %7115 = vpow2.f32 %v6076_v10  ;;  %v8621_v16 = vpop.f32.mrf.mxu0 }
  0xe7   :  { %7117 = vrcp.f32 %v3154_v13  ;;  %v3157_v18 = vadd.f32 1.0, %v7094_v15  ;;  %v6077_v19 = vmul.f32 -1.442695, %v8621_v16  ;;  %v6970_v15 = vld [vmem:[%s10708_s0 + $0x1e8] sm:$0xff]  }
  0xe8   :  { %v7096_v21 = vpop.eup %7095  ;;  %7119 = vpow2.f32 %v6074_v14  ;;  %v8630_v22 = vpop.f32.mrf.mxu0 }
  0xe9   :  { %7121 = vrcp.f32 %v3157_v18  ;;  %v3155_v23 = vadd.f32 1.0, %v7096_v21  ;;  %v6075_v24 = vmul.f32 -1.442695, %v8630_v22 }
  0xea   :  { %v7098_v25 = vpop.eup %7097  ;;  %7123 = vpow2.f32 %v6077_v19  ;;  %v8633_v26 = vpop.f32.mrf.mxu0  ;;  %6738 = vmatmul.mubr.msk.bf16.gmra.mxu0 %vm940_vm0, %v6962_v17 }
  0xeb   :  { %v7100_v27 = vpop.eup %7099  ;;  %7125 = vrcp.f32 %v3155_v23  ;;  %v6080_v28 = vmul.f32 -1.442695, %v8633_v26  ;;  %6741 = vmatprep.mubr.msk.bf16.mxu0 %vm940_vm0, %v6965_v20  ;;  %v3920_v53 = vmul.f32 %v7098_v25, %v8537_v29 }
  0xec   :  { %v7102_v30 = vpop.eup %7101  ;;  %v3160_v32 = vadd.f32 1.0, %v7100_v27  ;;  %7127 = vpow2.f32 %v6075_v24  ;;  %v8638_v33 = vpop.f32.mrf.mxu0 }
  0xed   :  { %v7104_v34 = vpop.eup %7103  ;;  %7129 = vpow2.f32 %v6080_v28  ;;  %v6078_v36 = vmul.f32 -1.442695, %v8638_v33  ;;  %v3918_v38 = vmul.f32 %v7102_v30, %v8542_v31  ;;  %v4177_v7 = vsel %vm940_vm0, %v3920_v53, 0.0 }
  0xee   :  { %v7106_v37 = vpop.eup %7105  ;;  %7131 = vrcp.f32 %v3160_v32  ;;  %v3158_v40 = vadd.f32 1.0, %v7104_v34  ;;  %v8642_v42 = vpop.f32.mrf.mxu0 }
  0xef   :  { %v7108_v45 = vpop.eup %7107  ;;  %7133 = vpow2.f32 %v6078_v36  ;;  %v6081_v46 = vmul.f32 -1.442695, %v8642_v42  ;;  %v4174_v59 = vsel %vm940_vm0, %v3918_v38, 0.0  ;;  %v3921_v0 = vmul.f32 %v7106_v37, %v8551_v35 }
  0xf0   :  { %v7110_v49 = vpop.eup %7109  ;;  %7135 = vrcp.f32 %v3158_v40  ;;  %v3161_v50 = vadd.f32 1.0, %v7108_v45  ;;  %v8651_v31 = vpop.f32.mrf.mxu0 }
  0xf1   :  { %v7112_v52 = vpop.eup %7111  ;;  %v3919_v55 = vmul.f32 %v7110_v49, %v8562_v39  ;;  %7137 = vpow2.f32 %v6081_v46  ;;  %v6079_v56 = vmul.f32 -1.442695, %v8651_v31  ;;  %v4179_v18 = vsel %vm940_vm0, %v3921_v0, 0.0 }
  0xf2   :  { %v7114_v57 = vpop.eup %7113  ;;  %7139 = vrcp.f32 %v3161_v50  ;;  %v3159_v60 = vadd.f32 1.0, %v7112_v52  ;;  %v8657_v61 = vpop.f32.mrf.mxu0  ;;  %6742 = vmatmul.mubr.msk.bf16.gmra.mxu0 %vm940_vm0, %v6966_v44 }
  0xf3   :  { %v7116_v63 = vpop.eup %7115  ;;  %v4175_v1 = vsel %vm940_vm0, %v3919_v55, 0.0  ;;  %7141 = vpow2.f32 %v6079_v56  ;;  %v6084_v29 = vmul.f32 -1.442695, %v8657_v61  ;;  %6745 = vmatprep.mubr.msk.bf16.mxu0 %vm940_vm0, %v6969_v48  ;;  %v3924_v21 = vmul.f32 %v7114_v57, %v8565_v41 }
  0xf4   :  { %v7118_v39 = vpop.eup %7117  ;;  %v4176_v2 = vadd.f32 %v4175_v1, %v4174_v59  ;;  %7143 = vrcp.f32 %v3159_v60  ;;  %v3164_v3 = vadd.f32 1.0, %v7116_v63  ;;  %v8664_v5 = vpop.f32.mrf.mxu0  ;;  %v6974_v60 = vld [vmem:[%s10708_s0 + $0x1f8] sm:$0xff]  }
  0xf5   :  { %v7120_v6 = vpop.eup %7119  ;;  %v3922_v9 = vmul.f32 %v7118_v39, %v8570_v43  ;;  %7145 = vpow2.f32 %v6084_v29  ;;  %v6082_v35 = vmul.f32 -1.442695, %v8664_v5  ;;  %v6973_v43 = vld [vmem:[%s10708_s0 + $0x1f0] sm:$0xff]   ;;  %v4185_v50 = vsel %vm940_vm0, %v3924_v21, 0.0  ;;  %v6977_v39 = vld [vmem:[%s10708_s0 + $0x200] sm:$0xff]  }
  0xf6   :  { %v7122_v10 = vpop.eup %7121  ;;  %v4178_v11 = vadd.f32 %v4177_v7, %v4176_v2  ;;  %7147 = vrcp.f32 %v3164_v3  ;;  %v3162_v13 = vadd.f32 1.0, %v7120_v6  ;;  %v8669_v14 = vpop.f32.mrf.mxu0 }
  0xf7   :  { %v7124_v17 = vpop.eup %7123  ;;  %7149 = vpow2.f32 %v6082_v35  ;;  %v6085_v19 = vmul.f32 -1.442695, %v8669_v14  ;;  %v4181_v28 = vsel %vm940_vm0, %v3922_v9, 0.0  ;;  %v3925_v37 = vmul.f32 %v7122_v10, %v8579_v47 }
  0xf8   :  { %v7126_v20 = vpop.eup %7125  ;;  %v4180_v23 = vadd.f32 %v4179_v18, %v4178_v11  ;;  %7151 = vrcp.f32 %v3162_v13  ;;  %v3165_v24 = vadd.f32 1.0, %v7124_v17  ;;  %v8680_v25 = vpop.f32.mrf.mxu0 }
  0xf9   :  { %v7128_v27 = vpop.eup %7127  ;;  %v3923_v30 = vmul.f32 %v7126_v20, %v8590_v51  ;;  %7153 = vpow2.f32 %v6085_v19  ;;  %v6083_v32 = vmul.f32 -1.442695, %v8680_v25  ;;  %v4187_v0 = vsel %vm940_vm0, %v3925_v37, 0.0 }
  0xfa   :  { %v7130_v34 = vpop.eup %7129  ;;  %v4182_v36 = vadd.f32 %v4181_v28, %v4180_v23  ;;  %7155 = vrcp.f32 %v3165_v24  ;;  %v3163_v38 = vadd.f32 1.0, %v7128_v27  ;;  %v8686_v41 = vpop.f32.mrf.mxu0  ;;  %6746 = vmatmul.mubr.msk.bf16.gmra.mxu0 %vm940_vm0, %v6970_v15 }
  0xfb   :  { %v7132_v40 = vpop.eup %7131  ;;  %v4183_v44 = vsel %vm940_vm0, %v3923_v30, 0.0  ;;  %v3168_v45 = vadd.f32 1.0, %v7130_v34  ;;  %7157 = vpow2.f32 %v6083_v32  ;;  %v6088_v51 = vmul.f32 -1.442695, %v8686_v41  ;;  %6749 = vmatprep.mubr.msk.bf16.mxu0 %vm940_vm0, %v6973_v43 }
  0xfc   :  { %v7134_v46 = vpop.eup %7133  ;;  %v4184_v48 = vadd.f32 %v4183_v44, %v4182_v36  ;;  %7159 = vrcp.f32 %v3163_v38  ;;  %v8692_v49 = vpop.f32.mrf.mxu0  ;;  %v3928_v11 = vmul.f32 %v7132_v40, %v8593_v54 }
  0xfd   :  { %v7136_v47 = vpop.eup %7135  ;;  %7161 = vrcp.f32 %v3168_v45  ;;  %v3166_v52 = vadd.f32 1.0, %v7134_v46  ;;  %v6086_v53 = vmul.f32 -1.442695, %v8692_v49  ;;  %v6981_v45 = vld [vmem:[%s10708_s0 + $0x210] sm:$0xff]  }
  0xfe   :  { %v7138_v55 = vpop.eup %7137  ;;  %v4186_v56 = vadd.f32 %v4185_v50, %v4184_v48  ;;  %v3926_v57 = vmul.f32 %v7136_v47, %v8598_v58  ;;  %7163 = vpow2.f32 %v6088_v51  ;;  %v8697_v59 = vpop.f32.mrf.mxu0  ;;  %v4193_v32 = vsel %vm940_vm0, %v3928_v11, 0.0 }
  0xff   :  { %v7140_v63 = vpop.eup %7139  ;;  %7165 = vrcp.f32 %v3166_v52  ;;  %v3169_v1 = vadd.f32 1.0, %v7138_v55  ;;  %v6089_v29 = vmul.f32 -1.442695, %v8697_v59 }
 0x100   :  { %v7142_v2 = vpop.eup %7141  ;;  %v4188_v58 = vadd.f32 %v4187_v0, %v4186_v56  ;;  %7167 = vpow2.f32 %v6086_v53  ;;  %v8707_v3 = vpop.f32.mrf.mxu0  ;;  %v4189_v7 = vsel %vm940_vm0, %v3926_v57, 0.0  ;;  %v3929_v21 = vmul.f32 %v7140_v63, %v8601_v62  ;;  %v6978_v62 = vld [vmem:[%s10708_s0 + $0x208] sm:$0xff]  }
 0x101   :  { %v7144_v6 = vpop.eup %7143  ;;  %7169 = vrcp.f32 %v3169_v1  ;;  %v3167_v9 = vadd.f32 1.0, %v7142_v2  ;;  %v6087_v35 = vmul.f32 -1.442695, %v8707_v3 }
 0x102   :  { %v7146_v10 = vpop.eup %7145  ;;  %v4190_v13 = vadd.f32 %v4189_v7, %v4188_v58  ;;  %v3927_v15 = vmul.f32 %v7144_v6, %v8610_v4  ;;  %7171 = vpow2.f32 %v6089_v29  ;;  %v8713_v17 = vpop.f32.mrf.mxu0  ;;  %6750 = vmatmul.mubr.msk.bf16.gmra.mxu0 %vm940_vm0, %v6974_v60 }
 0x103   :  { %v7148_v18 = vpop.eup %7147  ;;  %7173 = vrcp.f32 %v3167_v9  ;;  %v3172_v19 = vadd.f32 1.0, %v7146_v10  ;;  %v6092_v43 = vmul.f32 -1.442695, %v8713_v17  ;;  %6753 = vmatprep.mubr.msk.bf16.mxu0 %vm940_vm0, %v6977_v39 }
 0x104   :  { %v7150_v20 = vpop.eup %7149  ;;  %v4191_v54 = vsel %vm940_vm0, %v3927_v15, 0.0  ;;  %7175 = vpow2.f32 %v6087_v35  ;;  %v8720_v23 = vpop.f32.mrf.mxu0  ;;  %v3932_v55 = vmul.f32 %v7148_v18, %v8613_v8 }
 0x105   :  { %v7152_v4 = vpop.eup %7151  ;;  %v4192_v24 = vadd.f32 %v4191_v54, %v4190_v13  ;;  %7177 = vrcp.f32 %v3172_v19  ;;  %v3170_v27 = vadd.f32 1.0, %v7150_v20  ;;  %v6090_v28 = vmul.f32 -1.442695, %v8720_v23 }
 0x106   :  { %v7154_v30 = vpop.eup %7153  ;;  %v3930_v34 = vmul.f32 %v7152_v4, %v8618_v12  ;;  %7179 = vpow2.f32 %v6092_v43  ;;  %v8725_v36 = vpop.f32.mrf.mxu0  ;;  %v4195_v12 = vsel %vm940_vm0, %v3929_v21, 0.0  ;;  %v4201_v9 = vsel %vm940_vm0, %v3932_v55, 0.0  ;;  %v6985_v43 = vld [vmem:[%s10708_s0 + $0x220] sm:$0xff]  }
 0x107   :  { %v7156_v37 = vpop.eup %7155  ;;  %v4194_v38 = vadd.f32 %v4193_v32, %v4192_v24  ;;  %7181 = vrcp.f32 %v3170_v27  ;;  %v3173_v40 = vadd.f32 1.0, %v7154_v30  ;;  %v6093_v44 = vmul.f32 -1.442695, %v8725_v36 }
 0x108   :  { %v7158_v51 = vpop.eup %7157  ;;  %7183 = vpow2.f32 %v6090_v28  ;;  %v8735_v46 = vpop.f32.mrf.mxu0  ;;  %v4197_v56 = vsel %vm940_vm0, %v3930_v34, 0.0  ;;  %v3933_v39 = vmul.f32 %v7156_v37, %v8621_v16  ;;  %v6982_v16 = vld [vmem:[%s10708_s0 + $0x218] sm:$0xff]  }
 0x109   :  { %v7160_v48 = vpop.eup %7159  ;;  %v4196_v47 = vadd.f32 %v4195_v12, %v4194_v38  ;;  %7185 = vrcp.f32 %v3173_v40  ;;  %v3171_v50 = vadd.f32 1.0, %v7158_v51  ;;  %v6091_v52 = vmul.f32 -1.442695, %v8735_v46 }
 0x10a   :  { %v7162_v53 = vpop.eup %7161  ;;  %v3931_v57 = vmul.f32 %v7160_v48, %v8630_v22  ;;  %7187 = vpow2.f32 %v6093_v44  ;;  %v8741_v60 = vpop.f32.mrf.mxu0  ;;  %6754 = vmatmul.mubr.msk.bf16.gmra.mxu0 %vm940_vm0, %v6978_v62 }
 0x10b   :  { %v7164_v63 = vpop.eup %7163  ;;  %v4198_v0 = vadd.f32 %v4197_v56, %v4196_v47  ;;  %7189 = vrcp.f32 %v3171_v50  ;;  %v6096_v1 = vmul.f32 -1.442695, %v8741_v60  ;;  %6757 = vmatprep.mubr.msk.bf16.mxu0 %vm940_vm0, %v6981_v45  ;;  %v3936_v24 = vmul.f32 %v7162_v53, %v8633_v26 }
 0x10c   :  { %v7166_v29 = vpop.eup %7165  ;;  %v4199_v8 = vsel %vm940_vm0, %v3931_v57, 0.0  ;;  %v3176_v2 = vadd.f32 1.0, %v7164_v63  ;;  %7191 = vpow2.f32 %v6091_v52  ;;  %v8748_v22 = vpop.f32.mrf.mxu0 }
 0x10d   :  { %v7168_v58 = vpop.eup %7167  ;;  %v4200_v6 = vadd.f32 %v4199_v8, %v4198_v0  ;;  %7193 = vpow2.f32 %v6096_v1  ;;  %v3934_v35 = vmul.f32 %v7166_v29, %v8638_v33  ;;  %v6094_v11 = vmul.f32 -1.442695, %v8748_v22  ;;  %v6989_v1 = vld [vmem:[%s10708_s0 + $0x230] sm:$0xff]  }
 0x10e   :  { %v7170_v7 = vpop.eup %7169  ;;  %v3174_v10 = vadd.f32 1.0, %v7168_v58  ;;  %v8753_v13 = vpop.f32.mrf.mxu0  ;;  %7195 = vrcp.f32 %v3176_v2  ;;  %v4203_v33 = vsel %vm940_vm0, %v3933_v39, 0.0  ;;  %v4209_v47 = vsel %vm940_vm0, %v3936_v24, 0.0 }
 0x10f   :  { %v7172_v15 = vpop.eup %7171  ;;  %v4202_v18 = vadd.f32 %v4201_v9, %v4200_v6  ;;  %v6097_v19 = vmul.f32 -1.442695, %v8753_v13  ;;  %v4205_v32 = vsel %vm940_vm0, %v3934_v35, 0.0 }
 0x110   :  { %v7174_v20 = vpop.eup %7173  ;;  %7197 = vrcp.f32 %v3174_v10  ;;  %v3177_v21 = vadd.f32 1.0, %v7172_v15  ;;  %v8763_v54 = vpop.f32.mrf.mxu0 }
 0x111   :  { %v7176_v4 = vpop.eup %7175  ;;  %v4204_v27 = vadd.f32 %v4203_v33, %v4202_v18  ;;  %v3935_v28 = vmul.f32 %v7174_v20, %v8651_v31  ;;  %7199 = vpow2.f32 %v6094_v11  ;;  %v6095_v62 = vmul.f32 -1.442695, %v8763_v54 }
 0x112   :  { %v7178_v30 = vpop.eup %7177  ;;  %7201 = vrcp.f32 %v3177_v21  ;;  %v3175_v34 = vadd.f32 1.0, %v7176_v4  ;;  %v8769_v37 = vpop.f32.mrf.mxu0  ;;  %6758 = vmatmul.mubr.msk.bf16.gmra.mxu0 %vm940_vm0, %v6982_v16  ;;  %v3937_v31 = vmul.f32 %v7170_v7, %v8642_v42  ;;  %v6986_v42 = vld [vmem:[%s10708_s0 + $0x228] sm:$0xff]  }
 0x113   :  { %v7180_v38 = vpop.eup %7179  ;;  %v4206_v40 = vadd.f32 %v4205_v32, %v4204_v27  ;;  %v4207_v44 = vsel %vm940_vm0, %v3935_v28, 0.0  ;;  %7203 = vpow2.f32 %v6097_v19  ;;  %6761 = vmatprep.mubr.msk.bf16.mxu0 %vm940_vm0, %v6985_v43  ;;  %v6100_v51 = vmul.f32 -1.442695, %v8769_v37 }
 0x114   :  { %v7182_v26 = vpop.eup %7181  ;;  %7205 = vrcp.f32 %v3175_v34  ;;  %v3180_v45 = vadd.f32 1.0, %v7180_v38  ;;  %v8776_v12 = vpop.f32.mrf.mxu0  ;;  %v3940_v6 = vmul.f32 %v7178_v30, %v8657_v61 }
 0x115   :  { %v7184_v48 = vpop.eup %7183  ;;  %v4208_v50 = vadd.f32 %v4207_v44, %v4206_v40  ;;  %7207 = vpow2.f32 %v6095_v62  ;;  %v3938_v53 = vmul.f32 %v7182_v26, %v8664_v5  ;;  %v6098_v56 = vmul.f32 -1.442695, %v8776_v12  ;;  %v6993_v44 = vld [vmem:[%s10708_s0 + $0x240] sm:$0xff]  }
 0x116   :  { %v7186_v52 = vpop.eup %7185  ;;  %7209 = vrcp.f32 %v3180_v45  ;;  %v3178_v55 = vadd.f32 1.0, %v7184_v48  ;;  %v8781_v57 = vpop.f32.mrf.mxu0  ;;  %v4211_v5 = vsel %vm940_vm0, %v3937_v31, 0.0  ;;  %v4217_v28 = vsel %vm940_vm0, %v3940_v6, 0.0 }
 0x117   :  { %v7188_v63 = vpop.eup %7187  ;;  %v4210_v0 = vadd.f32 %v4209_v47, %v4208_v50  ;;  %7211 = vpow2.f32 %v6100_v51  ;;  %v6101_v8 = vmul.f32 -1.442695, %v8781_v57  ;;  %v4213_v10 = vsel %vm940_vm0, %v3938_v53, 0.0 }
 0x118   :  { %v7190_v29 = vpop.eup %7189  ;;  %7213 = vrcp.f32 %v3178_v55  ;;  %v3181_v39 = vadd.f32 1.0, %v7188_v63  ;;  %v8791_v2 = vpop.f32.mrf.mxu0 }
 0x119   :  { %v7192_v58 = vpop.eup %7191  ;;  %v4212_v7 = vadd.f32 %v4211_v5, %v4210_v0  ;;  %v3939_v9 = vmul.f32 %v7190_v29, %v8680_v25  ;;  %7215 = vpow2.f32 %v6098_v56  ;;  %v6099_v16 = vmul.f32 -1.442695, %v8791_v2 }
 0x11a   :  { %v7194_v35 = vpop.eup %7193  ;;  %7217 = vrcp.f32 %v3181_v39  ;;  %v3179_v11 = vadd.f32 1.0, %v7192_v58  ;;  %v8797_v15 = vpop.f32.mrf.mxu0  ;;  %6762 = vmatmul.mubr.msk.bf16.gmra.mxu0 %vm940_vm0, %v6986_v42  ;;  %v3941_v25 = vmul.f32 %v7186_v52, %v8669_v14  ;;  %v6990_v14 = vld [vmem:[%s10708_s0 + $0x238] sm:$0xff]  }
 0x11b   :  { %v4214_v18 = vadd.f32 %v4213_v10, %v4212_v7  ;;  %v4215_v19 = vsel %vm940_vm0, %v3939_v9, 0.0  ;;  %v3184_v43 = vadd.f32 1.0, %v7194_v35  ;;  %7219 = vpow2.f32 %v6101_v8  ;;  %6765 = vmatprep.mubr.msk.bf16.mxu0 %vm940_vm0, %v6989_v1  ;;  %v7196_v61 = vpop.eup %7195 }
 0x11c   :  { %7221 = vrcp.f32 %v3179_v11  ;;  %v6104_v20 = vmul.f32 -1.442695, %v8797_v15  ;;  %v8804_v33 = vpop.f32.mrf.mxu0  ;;  %v3944_v52 = vmul.f32 %v7196_v61, %v8686_v41 }
 0x11d   :  { %v7198_v21 = vpop.eup %7197  ;;  %v4216_v4 = vadd.f32 %v4215_v19, %v4214_v18  ;;  %7223 = vrcp.f32 %v3184_v43  ;;  %v6102_v24 = vmul.f32 -1.442695, %v8804_v33  ;;  %v6997_v43 = vld [vmem:[%s10708_s0 + $0x250] sm:$0xff]  }
 0x11e   :  { %v7200_v27 = vpop.eup %7199  ;;  %v3942_v30 = vmul.f32 %v7198_v21, %v8692_v49  ;;  %7225 = vpow2.f32 %v6099_v16  ;;  %v8809_v32 = vpop.f32.mrf.mxu0  ;;  %v4219_v49 = vsel %vm940_vm0, %v3941_v25, 0.0  ;;  %v4225_v9 = vsel %vm940_vm0, %v3944_v52, 0.0 }
 0x11f   :  { %v7202_v34 = vpop.eup %7201  ;;  %v4218_v62 = vadd.f32 %v4217_v28, %v4216_v4  ;;  %v3182_v38 = vadd.f32 1.0, %v7200_v27  ;;  %7227 = vpow2.f32 %v6104_v20  ;;  %v6105_v40 = vmul.f32 -1.442695, %v8809_v32 }
 0x120   :  { %v7204_v26 = vpop.eup %7203  ;;  %7229 = vpow2.f32 %v6102_v24  ;;  %v8819_v31 = vpop.f32.mrf.mxu0  ;;  %v4221_v53 = vsel %vm940_vm0, %v3942_v30, 0.0  ;;  %v3945_v41 = vmul.f32 %v7202_v34, %v8697_v59  ;;  %v6994_v59 = vld [vmem:[%s10708_s0 + $0x248] sm:$0xff]  }
 0x121   :  { %v7206_v45 = vpop.eup %7205  ;;  %v4220_v51 = vadd.f32 %v4219_v49, %v4218_v62  ;;  %7231 = vrcp.f32 %v3182_v38  ;;  %v3185_v48 = vadd.f32 1.0, %v7204_v26  ;;  %v6103_v47 = vmul.f32 -1.442695, %v8819_v31 }
 0x122   :  { %v7208_v50 = vpop.eup %7207  ;;  %v3943_v55 = vmul.f32 %v7206_v45, %v8707_v3  ;;  %7233 = vpow2.f32 %v6105_v40  ;;  %v8825_v56 = vpop.f32.mrf.mxu0  ;;  %6766 = vmatmul.mubr.msk.bf16.gmra.mxu0 %vm940_vm0, %v6990_v14 }
 0x123   :  { %v7210_v42 = vpop.eup %7209  ;;  %v4222_v63 = vadd.f32 %v4221_v53, %v4220_v51  ;;  %7235 = vrcp.f32 %v3185_v48  ;;  %v3183_v0 = vadd.f32 1.0, %v7208_v50  ;;  %v6108_v1 = vmul.f32 -1.442695, %v8825_v56  ;;  %6769 = vmatprep.mubr.msk.bf16.mxu0 %vm940_vm0, %v6993_v44 }
 0x124   :  { %v7212_v29 = vpop.eup %7211  ;;  %v4223_v5 = vsel %vm940_vm0, %v3943_v55, 0.0  ;;  %7237 = vpow2.f32 %v6103_v47  ;;  %v8832_v3 = vpop.f32.mrf.mxu0  ;;  %v3948_v28 = vmul.f32 %v7210_v42, %v8713_v17 }
 0x125   :  { %v7214_v39 = vpop.eup %7213  ;;  %v4224_v8 = vadd.f32 %v4223_v5, %v4222_v63  ;;  %7239 = vrcp.f32 %v3183_v0  ;;  %v3188_v58 = vadd.f32 1.0, %v7212_v29  ;;  %v6106_v6 = vmul.f32 -1.442695, %v8832_v3 }
 0x126   :  { %v7216_v7 = vpop.eup %7215  ;;  %v3946_v35 = vmul.f32 %v7214_v39, %v8720_v23  ;;  %7241 = vpow2.f32 %v6108_v1  ;;  %v8837_v10 = vpop.f32.mrf.mxu0  ;;  %v4227_v23 = vsel %vm940_vm0, %v3945_v41, 0.0  ;;  %v4233_v50 = vsel %vm940_vm0, %v3948_v28, 0.0  ;;  %v7001_v1 = vld [vmem:[%s10708_s0 + $0x260] sm:$0xff]  }
 0x127   :  { %v7218_v11 = vpop.eup %7217  ;;  %v4226_v16 = vadd.f32 %v4225_v9, %v4224_v8  ;;  %7243 = vrcp.f32 %v3188_v58  ;;  %v3186_v18 = vadd.f32 1.0, %v7216_v7  ;;  %v6109_v19 = vmul.f32 -1.442695, %v8837_v10 }
 0x128   :  { %v7220_v61 = vpop.eup %7219  ;;  %7245 = vpow2.f32 %v6106_v6  ;;  %v8847_v25 = vpop.f32.mrf.mxu0  ;;  %v4229_v30 = vsel %vm940_vm0, %v3946_v35, 0.0  ;;  %v3949_v26 = vmul.f32 %v7218_v11, %v8725_v36  ;;  %v6998_v36 = vld [vmem:[%s10708_s0 + $0x258] sm:$0xff]  }
 0x129   :  { %v7222_v20 = vpop.eup %7221  ;;  %v4228_v21 = vadd.f32 %v4227_v23, %v4226_v16  ;;  %7247 = vrcp.f32 %v3186_v18  ;;  %v3189_v4 = vadd.f32 1.0, %v7220_v61  ;;  %v6107_v24 = vmul.f32 -1.442695, %v8847_v25 }
 0x12a   :  { %v7224_v27 = vpop.eup %7223  ;;  %v3947_v14 = vmul.f32 %v7222_v20, %v8735_v46  ;;  %7249 = vpow2.f32 %v6109_v19  ;;  %v8853_v34 = vpop.f32.mrf.mxu0  ;;  %6770 = vmatmul.mubr.msk.bf16.gmra.mxu0 %vm940_vm0, %v6994_v59  ;;  %v4235_v41 = vsel %vm940_vm0, %v3949_v26, 0.0 }
 0x12b   :  { %v7226_v62 = vpop.eup %7225  ;;  %v4230_v38 = vadd.f32 %v4229_v30, %v4228_v21  ;;  %7251 = vrcp.f32 %v3189_v4  ;;  %v6112_v40 = vmul.f32 -1.442695, %v8853_v34  ;;  %6773 = vmatprep.mubr.msk.bf16.mxu0 %vm940_vm0, %v6997_v43  ;;  %v3952_v16 = vmul.f32 %v7224_v27, %v8741_v60  ;;  %v7002_v30 = vld [vmem:[%s10708_s0 + $0x268] sm:$0xff]  }
 0x12c   :  { %v7228_v44 = vpop.eup %7227  ;;  %v4231_v17 = vsel %vm940_vm0, %v3947_v14, 0.0  ;;  %v3187_v49 = vadd.f32 1.0, %v7226_v62  ;;  %7253 = vpow2.f32 %v6107_v24  ;;  %v8860_v46 = vpop.f32.mrf.mxu0 }
 0x12d   :  { %v7230_v45 = vpop.eup %7229  ;;  %v4232_v51 = vadd.f32 %v4231_v17, %v4230_v38  ;;  %v3192_v48 = vadd.f32 1.0, %v7228_v44  ;;  %7255 = vpow2.f32 %v6112_v40  ;;  %v6110_v53 = vmul.f32 -1.442695, %v8860_v46  ;;  %v7005_v38 = vld [vmem:[%s10708_s0 + $0x270] sm:$0xff]  }
 0x12e   :  { %v7232_v47 = vpop.eup %7231  ;;  %7257 = vrcp.f32 %v3187_v49  ;;  %v3190_v52 = vadd.f32 1.0, %v7230_v45  ;;  %v8864_v55 = vpop.f32.mrf.mxu0  ;;  %v4246_v62 = vsel %vm940_vm0, %v3952_v16, 0.0 }
 0x12f   :  { %v7234_v42 = vpop.eup %7233  ;;  %v4234_v63 = vadd.f32 %v4233_v50, %v4232_v51  ;;  %7259 = vrcp.f32 %v3192_v48  ;;  %v6113_v0 = vmul.f32 -1.442695, %v8864_v55  ;;  %v3950_v6 = vmul.f32 %v7232_v47, %v8748_v22 }
 0x130   :  { %v7236_v29 = vpop.eup %7235  ;;  %7261 = vrcp.f32 %v3190_v52  ;;  %v3193_v5 = vadd.f32 1.0, %v7234_v42  ;;  %v8874_v39 = vpop.f32.mrf.mxu0 }
 0x131   :  { %v7238_v8 = vpop.eup %7237  ;;  %v8876_v58 = vadd.f32 %v4235_v41, %v4234_v63  ;;  %7263 = vpow2.f32 %v6110_v53  ;;  %v6111_v35 = vmul.f32 -1.442695, %v8874_v39  ;;  %v4243_v23 = vsel %vm940_vm0, %v3950_v6, 0.0 }
 0x132   :  { %v7240_v7 = vpop.eup %7239  ;;  %7265 = vrcp.f32 %v3193_v5  ;;  %v3191_v9 = vadd.f32 1.0, %v7238_v8  ;;  %v8880_v59 = vpop.f32.mrf.mxu0  ;;  %6774 = vmatmul.mubr.msk.bf16.gmra.mxu0 %vm940_vm0, %v6998_v36  ;;  %v3953_v20 = vmul.f32 %v7236_v29, %v8753_v13 }
 0x133   :  { %v7242_v11 = vpop.eup %7241  ;;  %v3951_v18 = vmul.f32 %v7240_v7, %v8763_v54  ;;  %7267 = vpow2.f32 %v6113_v0  ;;  %6777 = vmatprep.mubr.msk.bf16.mxu0 %vm940_vm0, %v7001_v1  ;;  %v6116_v22 = vmul.f32 -1.442695, %v8880_v59 }
 0x134   :  { %v7244_v19 = vpop.eup %7243  ;;  %7269 = vrcp.f32 %v3191_v9  ;;  %v8887_v43 = vpop.f32.mrf.mxu0  ;;  %v3196_v54 = vadd.f32 1.0, %v7242_v11  ;;  %v4248_v45 = vsel %vm940_vm0, %v3953_v20, 0.0 }
 0x135   :  { %v7246_v61 = vpop.eup %7245  ;;  %v4244_v21 = vsel %vm940_vm0, %v3951_v18, 0.0  ;;  %7271 = vpow2.f32 %v6111_v35  ;;  %v6114_v27 = vmul.f32 -1.442695, %v8887_v43  ;;  %v3956_v36 = vmul.f32 %v7244_v19, %v8769_v37  ;;  %v7009_v19 = vld [vmem:[%s10708_s0 + $0x280] sm:$0xff]  }
 0x136   :  { %v7248_v60 = vpop.eup %7247  ;;  %v4245_v4 = vadd.f32 %v4244_v21, %v4243_v23  ;;  %v3194_v24 = vadd.f32 1.0, %v7246_v61  ;;  %v8893_v28 = vpop.f32.mrf.mxu0  ;;  %7273 = vpow2.f32 %v6116_v22 }
 0x137   :  { %v7250_v14 = vpop.eup %7249  ;;  %v3954_v13 = vmul.f32 %v7248_v60, %v8776_v12  ;;  %v6117_v26 = vmul.f32 -1.442695, %v8893_v28  ;;  %v4254_v22 = vsel %vm940_vm0, %v3956_v36, 0.0 }
 0x138   :  { %v7252_v40 = vpop.eup %7251  ;;  %v4247_v44 = vadd.f32 %v4246_v62, %v4245_v4  ;;  %7275 = vrcp.f32 %v3194_v24  ;;  %v8904_v17 = vpop.f32.mrf.mxu0  ;;  %v3197_v51 = vadd.f32 1.0, %v7250_v14 }
 0x139   :  { %v7254_v49 = vpop.eup %7253  ;;  %7277 = vpow2.f32 %v6114_v27  ;;  %v6115_v50 = vmul.f32 -1.442695, %v8904_v17  ;;  %v4250_v42 = vsel %vm940_vm0, %v3954_v13, 0.0  ;;  %v3957_v37 = vmul.f32 %v7252_v40, %v8781_v57 }
 0x13a   :  { %v7256_v48 = vpop.eup %7255  ;;  %v4249_v47 = vadd.f32 %v4248_v45, %v4247_v44  ;;  %7279 = vrcp.f32 %v3196_v54  ;;  %v3195_v12 = vadd.f32 1.0, %v7254_v49  ;;  %v8908_v52 = vpop.f32.mrf.mxu0  ;;  %6778 = vmatmul.mubr.msk.bf16.gmra.mxu0 %vm940_vm0, %v7002_v30 }
 0x13b   :  { %v7258_v53 = vpop.eup %7257  ;;  %v3200_v63 = vadd.f32 1.0, %v7256_v48  ;;  %7281 = vpow2.f32 %v6117_v26  ;;  %6781 = vmatprep.mubr.msk.bf16.mxu0 %vm940_vm0, %v7005_v38  ;;  %v6120_v41 = vmul.f32 -1.442695, %v8908_v52  ;;  %v4256_v24 = vsel %vm940_vm0, %v3957_v37, 0.0 }
 0x13c   :  { %v7260_v0 = vpop.eup %7259  ;;  %v4251_v1 = vadd.f32 %v4250_v42, %v4249_v47  ;;  %v3955_v29 = vmul.f32 %v7258_v53, %v8791_v2  ;;  %7283 = vrcp.f32 %v3195_v12  ;;  %v8916_v5 = vpop.f32.mrf.mxu0  ;;  %v7006_v2 = vld [vmem:[%s10708_s0 + $0x278] sm:$0xff]  }
 0x13d   :  { %v7262_v8 = vpop.eup %7261  ;;  %7285 = vrcp.f32 %v3197_v51  ;;  %v6118_v9 = vmul.f32 -1.442695, %v8916_v5 }
 0x13e   :  { %v7264_v6 = vpop.eup %7263  ;;  %v4252_v7 = vsel %vm940_vm0, %v3955_v29, 0.0  ;;  %7287 = vpow2.f32 %v6115_v50  ;;  %v8921_v35 = vpop.f32.mrf.mxu0  ;;  %v3958_v61 = vmul.f32 %v7262_v8, %v8804_v33  ;;  %v3960_v33 = vmul.f32 %v7260_v0, %v8797_v15  ;;  %v7010_v50 = vld [vmem:[%s10708_s0 + $0x288] sm:$0xff]  }
 0x13f   :  { %v7266_v11 = vpop.eup %7265  ;;  %v4253_v16 = vadd.f32 %v4252_v7, %v4251_v1  ;;  %7289 = vrcp.f32 %v3200_v63  ;;  %v3198_v18 = vadd.f32 1.0, %v7264_v6  ;;  %v6121_v23 = vmul.f32 -1.442695, %v8921_v35  ;;  %v7013_v63 = vld [vmem:[%s10708_s0 + $0x290] sm:$0xff]  }
 0x140   :  { %v7268_v57 = vpop.eup %7267  ;;  %7291 = vpow2.f32 %v6120_v41  ;;  %v8932_v20 = vpop.f32.mrf.mxu0  ;;  %v4258_v40 = vsel %vm940_vm0, %v3958_v61, 0.0  ;;  %v3961_v48 = vmul.f32 %v7266_v11, %v8809_v32  ;;  %v4262_v32 = vsel %vm940_vm0, %v3960_v33, 0.0  ;;  %v7014_v33 = vld [vmem:[%s10708_s0 + $0x298] sm:$0xff]  }
 0x141   :  { %v7270_v21 = vpop.eup %7269  ;;  %v4255_v60 = vadd.f32 %v4254_v22, %v4253_v16  ;;  %7293 = vrcp.f32 %v3198_v18  ;;  %v3201_v4 = vadd.f32 1.0, %v7268_v57  ;;  %v6119_v30 = vmul.f32 -1.442695, %v8932_v20 }
 0x142   :  { %v7272_v54 = vpop.eup %7271  ;;  %v3959_v27 = vmul.f32 %v7270_v21, %v8819_v31  ;;  %7295 = vpow2.f32 %v6118_v9  ;;  %v8937_v14 = vpop.f32.mrf.mxu0  ;;  %6782 = vmatmul.mubr.msk.bf16.gmra.mxu0 %vm940_vm0, %v7006_v2  ;;  %v4264_v2 = vsel %vm940_vm0, %v3961_v48, 0.0 }
 0x143   :  { %v4257_v62 = vadd.f32 %v4256_v24, %v4255_v60  ;;  %7297 = vrcp.f32 %v3201_v4  ;;  %v3199_v13 = vadd.f32 1.0, %v7272_v54  ;;  %6785 = vmatprep.mubr.msk.bf16.mxu0 %vm940_vm0, %v7009_v19  ;;  %v7274_v38 = vpop.eup %7273  ;;  %v6124_v31 = vmul.f32 -1.442695, %v8937_v14 }
 0x144   :  { %v4260_v44 = vsel %vm940_vm0, %v3959_v27, 0.0  ;;  %7299 = vpow2.f32 %v6121_v23  ;;  %v8945_v26 = vpop.f32.mrf.mxu0  ;;  %v3204_v51 = vadd.f32 1.0, %v7274_v38 }
 0x145   :  { %v7276_v49 = vpop.eup %7275  ;;  %v4259_v45 = vadd.f32 %v4258_v40, %v4257_v62  ;;  %7301 = vrcp.f32 %v3199_v13  ;;  %v6122_v47 = vmul.f32 -1.442695, %v8945_v26 }
 0x146   :  { %v7278_v15 = vpop.eup %7277  ;;  %7303 = vpow2.f32 %v6119_v30  ;;  %v8949_v12 = vpop.f32.mrf.mxu0  ;;  %v3962_v1 = vmul.f32 %v7276_v49, %v8832_v3 }
 0x147   :  { %v7280_v53 = vpop.eup %7279  ;;  %v4261_v36 = vadd.f32 %v4260_v44, %v4259_v45  ;;  %7305 = vrcp.f32 %v3204_v51  ;;  %v3202_v42 = vadd.f32 1.0, %v7278_v15  ;;  %v6125_v29 = vmul.f32 -1.442695, %v8949_v12 }
 0x148   :  { %v7282_v0 = vpop.eup %7281  ;;  %7307 = vpow2.f32 %v6124_v31  ;;  %v8960_v41 = vpop.f32.mrf.mxu0  ;;  %v3964_v18 = vmul.f32 %v7280_v53, %v8825_v56  ;;  %v4266_v61 = vsel %vm940_vm0, %v3962_v1, 0.0 }
 0x149   :  { %v7284_v8 = vpop.eup %7283  ;;  %v4263_v6 = vadd.f32 %v4262_v32, %v4261_v36  ;;  %7309 = vrcp.f32 %v3202_v42  ;;  %v3205_v37 = vadd.f32 1.0, %v7282_v0  ;;  %v6123_v7 = vmul.f32 -1.442695, %v8960_v41 }
 0x14a   :  { %v7286_v9 = vpop.eup %7285  ;;  %v3963_v11 = vmul.f32 %v7284_v8, %v8847_v25  ;;  %7311 = vpow2.f32 %v6122_v47  ;;  %v8965_v16 = vpop.f32.mrf.mxu0  ;;  %6786 = vmatmul.mubr.msk.bf16.gmra.mxu0 %vm940_vm0, %v7010_v50  ;;  %v4270_v44 = vsel %vm940_vm0, %v3964_v18, 0.0 }
 0x14b   :  { %v7288_v3 = vpop.eup %7287  ;;  %v4265_v19 = vadd.f32 %v4264_v2, %v4263_v6  ;;  %7313 = vrcp.f32 %v3205_v37  ;;  %v6128_v57 = vmul.f32 -1.442695, %v8965_v16  ;;  %6789 = vmatprep.mubr.msk.bf16.mxu0 %vm940_vm0, %v7013_v63  ;;  %v3965_v24 = vmul.f32 %v7286_v9, %v8837_v10 }
 0x14c   :  { %v7290_v22 = vpop.eup %7289  ;;  %v4268_v23 = vsel %vm940_vm0, %v3963_v11, 0.0  ;;  %v3203_v25 = vadd.f32 1.0, %v7288_v3  ;;  %7315 = vpow2.f32 %v6125_v29  ;;  %v8973_v21 = vpop.f32.mrf.mxu0 }
 0x14d   :  { %v7292_v60 = vpop.eup %7291  ;;  %v4267_v4 = vadd.f32 %v4266_v61, %v4265_v19  ;;  %7317 = vpow2.f32 %v6123_v7  ;;  %v6126_v56 = vmul.f32 -1.442695, %v8973_v21  ;;  %v4272_v48 = vsel %vm940_vm0, %v3965_v24, 0.0 }
 0x14e   :  { %v7294_v54 = vpop.eup %7293  ;;  %7319 = vrcp.f32 %v3203_v25  ;;  %v3208_v27 = vadd.f32 1.0, %v7292_v60  ;;  %v8977_v30 = vpop.f32.mrf.mxu0 }
 0x14f   :  { %v7296_v62 = vpop.eup %7295  ;;  %v4269_v13 = vadd.f32 %v4268_v23, %v4267_v4  ;;  %7321 = vpow2.f32 %v6128_v57  ;;  %v6129_v38 = vmul.f32 -1.442695, %v8977_v30  ;;  %v3966_v31 = vmul.f32 %v7294_v54, %v8860_v46 }
 0x150   :  { %v7298_v40 = vpop.eup %7297  ;;  %7323 = vrcp.f32 %v3208_v27  ;;  %v3206_v10 = vadd.f32 1.0, %v7296_v62  ;;  %v8985_v49 = vpop.f32.mrf.mxu0  ;;  %v3968_v46 = vmul.f32 %v7290_v22, %v8853_v34 }
 0x151   :  { %v7300_v45 = vpop.eup %7299  ;;  %v4271_v51 = vadd.f32 %v4270_v44, %v4269_v13  ;;  %7325 = vpow2.f32 %v6126_v56  ;;  %v6127_v50 = vmul.f32 -1.442695, %v8985_v49  ;;  %v4274_v32 = vsel %vm940_vm0, %v3966_v31, 0.0 }
 0x152   :  { %v7302_v15 = vpop.eup %7301  ;;  %7327 = vrcp.f32 %v3206_v10  ;;  %v3209_v47 = vadd.f32 1.0, %v7300_v45  ;;  %v8989_v53 = vpop.f32.mrf.mxu0  ;;  %6790 = vmatmul.mubr.msk.bf16.gmra.mxu0 %vm940_vm0, %v7014_v33  ;;  %v3969_v34 = vmul.f32 %v7298_v40, %v8864_v55  ;;  %v4278_v18 = vsel %vm940_vm0, %v3968_v46, 0.0 }
 0x153   :  { %v7304_v36 = vpop.eup %7303  ;;  %v4273_v42 = vadd.f32 %v4272_v48, %v4271_v51  ;;  %v3967_v63 = vmul.f32 %v7302_v15, %v8874_v39  ;;  %7329 = vpow2.f32 %v6129_v38  ;;  %v6132_v29 = vmul.f32 -1.442695, %v8989_v53 }
 0x154   :  { %v7306_v0 = vpop.eup %7305  ;;  %7331 = vrcp.f32 %v3209_v47  ;;  %v3207_v1 = vadd.f32 1.0, %v7304_v36  ;;  %v8996_v8 = vpop.f32.mrf.mxu0  ;;  %v4280_v56 = vsel %vm940_vm0, %v3969_v34, 0.0 }
 0x155   :  { %v7308_v6 = vpop.eup %7307  ;;  %v4275_v37 = vadd.f32 %v4274_v32, %v4273_v42  ;;  %v4276_v7 = vsel %vm940_vm0, %v3967_v63, 0.0  ;;  %7333 = vpow2.f32 %v6127_v50  ;;  %v6130_v2 = vmul.f32 -1.442695, %v8996_v8 }
 0x156   :  { %v7310_v9 = vpop.eup %7309  ;;  %7335 = vrcp.f32 %v3207_v1  ;;  %v3212_v39 = vadd.f32 1.0, %v7308_v6  ;;  %v9001_v11 = vpop.f32.mrf.mxu0  ;;  %v4237_v6 = vrot.slane %v8876_v58, 4 }
 0x157   :  { %v7312_v3 = vpop.eup %7311  ;;  %v4277_v19 = vadd.f32 %v4276_v7, %v4275_v37  ;;  %7337 = vpow2.f32 %v6132_v29  ;;  %v3970_v22 = vmul.f32 %v7310_v9, %v8887_v43  ;;  %v6133_v23 = vmul.f32 -1.442695, %v9001_v11 }
 0x158   :  { %v7314_v57 = vpop.eup %7313  ;;  %7339 = vrcp.f32 %v3212_v39  ;;  %v3210_v61 = vadd.f32 1.0, %v7312_v3  ;;  %v9006_v25 = vpop.f32.mrf.mxu0  ;;  %v3972_v43 = vmul.f32 %v7306_v0, %v8880_v59 }
 0x159   :  { %v7316_v55 = vpop.eup %7315  ;;  %v4279_v60 = vadd.f32 %v4278_v18, %v4277_v19  ;;  %7341 = vpow2.f32 %v6130_v2  ;;  %v6131_v24 = vmul.f32 -1.442695, %v9006_v25  ;;  %v4282_v40 = vsel %vm940_vm0, %v3970_v22, 0.0 }
 0x15a   :  { %v7318_v4 = vpop.eup %7317  ;;  %7343 = vrcp.f32 %v3210_v61  ;;  %v3213_v54 = vadd.f32 1.0, %v7316_v55  ;;  %v9010_v27 = vpop.f32.mrf.mxu0  ;;  %v3973_v59 = vmul.f32 %v7314_v57, %v8893_v28  ;;  %v4286_v0 = vsel %vm940_vm0, %v3972_v43, 0.0 }
 0x15b   :  { %v7320_v33 = vpop.eup %7319  ;;  %v4281_v62 = vadd.f32 %v4280_v56, %v4279_v60  ;;  %v3211_v13 = vadd.f32 1.0, %v7318_v4  ;;  %7345 = vpow2.f32 %v6133_v23  ;;  %v6136_v31 = vmul.f32 -1.442695, %v9010_v27 }
 0x15c   :  { %v7322_v38 = vpop.eup %7321  ;;  %v3971_v44 = vmul.f32 %v7320_v33, %v8904_v17  ;;  %7347 = vrcp.f32 %v3213_v54  ;;  %v9016_v10 = vpop.f32.mrf.mxu0  ;;  %v4288_v34 = vsel %vm940_vm0, %v3973_v59, 0.0  ;;  %v4238_v4 = vadd.f32 %v4237_v6, %v8876_v58 }
 0x15d   :  { %v7324_v45 = vpop.eup %7323  ;;  %v4283_v51 = vadd.f32 %v4282_v40, %v4281_v62  ;;  %7349 = vrcp.f32 %v3211_v13  ;;  %v3216_v15 = vadd.f32 1.0, %v7322_v38  ;;  %v6134_v50 = vmul.f32 -1.442695, %v9016_v10 }
 0x15e   :  { %v7326_v48 = vpop.eup %7325  ;;  %v4284_v47 = vsel %vm940_vm0, %v3971_v44, 0.0  ;;  %7351 = vpow2.f32 %v6131_v24  ;;  %v9021_v36 = vpop.f32.mrf.mxu0  ;;  %v3976_v3 = vmul.f32 %v7324_v45, %v8908_v52 }
 0x15f   :  { %v7328_v17 = vpop.eup %7327  ;;  %v4285_v46 = vadd.f32 %v4284_v47, %v4283_v51  ;;  %7353 = vrcp.f32 %v3216_v15  ;;  %v3214_v42 = vadd.f32 1.0, %v7326_v48  ;;  %v6137_v1 = vmul.f32 -1.442695, %v9021_v36 }
 0x160   :  { %v7330_v63 = vpop.eup %7329  ;;  %v3974_v32 = vmul.f32 %v7328_v17, %v8916_v5  ;;  %7355 = vpow2.f32 %v6136_v31  ;;  %v9026_v28 = vpop.f32.mrf.mxu0  ;;  %v4294_v58 = vsel %vm940_vm0, %v3976_v3, 0.0  ;;  %v4239_v47 = vrot.slane %v4238_v4, 2 }
 0x161   :  { %v7332_v29 = vpop.eup %7331  ;;  %v4287_v37 = vadd.f32 %v4286_v0, %v4285_v46  ;;  %7357 = vrcp.f32 %v3214_v42  ;;  %v3217_v7 = vadd.f32 1.0, %v7330_v63  ;;  %v6135_v39 = vmul.f32 -1.442695, %v9026_v28  ;;  %v9056_v0 = vpop.f32.mrf.mxu1 }
 0x162   :  { %v7334_v9 = vpop.eup %7333  ;;  %7359 = vpow2.f32 %v6134_v50  ;;  %v9031_v2 = vpop.f32.mrf.mxu0  ;;  %v4290_v22 = vsel %vm940_vm0, %v3974_v32, 0.0  ;;  %v3977_v24 = vmul.f32 %v7332_v29, %v8921_v35 }
 0x163   :  { %v7336_v5 = vpop.eup %7335  ;;  %v4289_v18 = vadd.f32 %v4288_v34, %v4287_v37  ;;  %7361 = vrcp.f32 %v3217_v7  ;;  %v3215_v19 = vadd.f32 1.0, %v7334_v9  ;;  %v6140_v23 = vmul.f32 -1.442695, %v9031_v2 }
 0x164   :  { %v7338_v57 = vpop.eup %7337  ;;  %v3975_v61 = vmul.f32 %v7336_v5, %v8932_v20  ;;  %7363 = vpow2.f32 %v6137_v1  ;;  %v9037_v55 = vpop.f32.mrf.mxu0  ;;  %v4296_v50 = vsel %vm940_vm0, %v3977_v24, 0.0 }
 0x165   :  { %v7340_v60 = vpop.eup %7339  ;;  %v4291_v56 = vadd.f32 %v4290_v22, %v4289_v18  ;;  %7365 = vrcp.f32 %v3215_v19  ;;  %v3220_v54 = vadd.f32 1.0, %v7338_v57  ;;  %v6138_v43 = vmul.f32 -1.442695, %v9037_v55  ;;  %v9067_v22 = vpop.f32.mrf.mxu1 }
 0x166   :  { %v7342_v52 = vpop.eup %7341  ;;  %v4292_v33 = vsel %vm940_vm0, %v3975_v61, 0.0  ;;  %7367 = vpow2.f32 %v6135_v39  ;;  %v9043_v20 = vpop.f32.mrf.mxu0  ;;  %v4240_v39 = vadd.f32 %v4239_v47, %v4238_v4 }
 0x167   :  { %v7344_v62 = vpop.eup %7343  ;;  %v4293_v13 = vadd.f32 %v4292_v33, %v4291_v56  ;;  %7369 = vrcp.f32 %v3220_v54  ;;  %v3218_v38 = vadd.f32 1.0, %v7342_v52  ;;  %v6141_v31 = vmul.f32 -1.442695, %v9043_v20 }
 0x168   :  { %v7346_v40 = vpop.eup %7345  ;;  %v3978_v44 = vmul.f32 %v7344_v62, %v8945_v26  ;;  %7371 = vpow2.f32 %v6140_v23  ;;  %v9048_v35 = vpop.f32.mrf.mxu0  ;;  %v3980_v26 = vmul.f32 %v7340_v60, %v8937_v14  ;;  %v4241_v33 = vrot.slane %v4240_v39, 1 }
 0x169   :  { %v7348_v45 = vpop.eup %7347  ;;  %v4295_v51 = vadd.f32 %v4294_v58, %v4293_v13  ;;  %7373 = vrcp.f32 %v3218_v38  ;;  %v3221_v15 = vadd.f32 1.0, %v7346_v40  ;;  %v6139_v48 = vmul.f32 -1.442695, %v9048_v35 }
 0x16a   :  { %v7350_v59 = vpop.eup %7349  ;;  %7375 = vpow2.f32 %v6138_v43  ;;  %v9052_v17 = vpop.f32.mrf.mxu0  ;;  %v4298_v1 = vsel %vm940_vm0, %v3978_v44, 0.0  ;;  %v4302_v23 = vsel %vm940_vm0, %v3980_v26, 0.0 }
 0x16b   :  { %v7352_v46 = vpop.eup %7351  ;;  %v4297_v42 = vadd.f32 %v4296_v50, %v4295_v51  ;;  %v3979_v63 = vmul.f32 %v7350_v59, %v8960_v41  ;;  %7377 = vrcp.f32 %v3221_v15  ;;  %v6144_v6 = vmul.f32 -1.442695, %v9052_v17  ;;  %v9079_v44 = vpop.f32.mrf.mxu1 }
 0x16c   :  { %v7354_v32 = vpop.eup %7353  ;;  %v3219_v29 = vadd.f32 1.0, %v7352_v46  ;;  %7379 = vpow2.f32 %v6141_v31  ;;  %v9060_v37 = vpop.f32.mrf.mxu0  ;;  %v3981_v41 = vmul.f32 %v7348_v45, %v8949_v12 }
 0x16d   :  { %v7356_v7 = vpop.eup %7355  ;;  %v4299_v9 = vadd.f32 %v4298_v1, %v4297_v42  ;;  %v4300_v34 = vsel %vm940_vm0, %v3979_v63, 0.0  ;;  %7381 = vpow2.f32 %v6139_v48  ;;  %v6142_v5 = vmul.f32 -1.442695, %v9060_v37 }
 0x16e   :  { %v7358_v14 = vpop.eup %7357  ;;  %7383 = vrcp.f32 %v3219_v29  ;;  %v9065_v3 = vpop.f32.mrf.mxu0  ;;  %v3224_v57 = vadd.f32 1.0, %v7356_v7  ;;  %v4304_v43 = vsel %vm940_vm0, %v3981_v41, 0.0 }
 0x16f   :  { %v7360_v18 = vpop.eup %7359  ;;  %v4301_v19 = vadd.f32 %v4300_v34, %v4299_v9  ;;  %v3982_v60 = vmul.f32 %v7358_v14, %v8973_v21  ;;  %7385 = vpow2.f32 %v6144_v6  ;;  %v6145_v52 = vmul.f32 -1.442695, %v9065_v3 }
 0x170   :  { %v7362_v61 = vpop.eup %7361  ;;  %v3222_v56 = vadd.f32 1.0, %v7360_v18  ;;  %v9071_v4 = vpop.f32.mrf.mxu0  ;;  %7387 = vpow2.f32 %v6142_v5  ;;  %v3984_v21 = vmul.f32 %v7354_v32, %v8965_v16  ;;  %v4242_v34 = vadd.f32 %v4241_v33, %v4240_v39 }
 0x171   :  { %v7364_v12 = vpop.eup %7363  ;;  %v4303_v54 = vadd.f32 %v4302_v23, %v4301_v19  ;;  %v4312_v45 = vsel %vm940_vm0, %v3982_v60, 0.0  ;;  %v3985_v51 = vmul.f32 %v7362_v61, %v8977_v30  ;;  %v6143_v50 = vmul.f32 -1.442695, %v9071_v4  ;;  %v9089_v32 = vpop.f32.mrf.mxu1 }
 0x172   :  { %v7366_v24 = vpop.eup %7365  ;;  %7389 = vrcp.f32 %v3222_v56  ;;  %v3225_v62 = vadd.f32 1.0, %v7364_v12  ;;  %v9075_v13 = vpop.f32.mrf.mxu0  ;;  %v4315_v63 = vsel %vm940_vm0, %v3984_v21, 0.0 }
 0x173   :  { %v7368_v38 = vpop.eup %7367  ;;  %v4305_v40 = vadd.f32 %v4304_v43, %v4303_v54  ;;  %v3983_v58 = vmul.f32 %v7366_v24, %v8985_v49  ;;  %7391 = vrcp.f32 %v3224_v57  ;;  %v4317_v41 = vsel %vm940_vm0, %v3985_v51, 0.0  ;;  %v9095_v56 = vpop.f32.mrf.mxu1 }
 0x174   :  { %v7370_v31 = vpop.eup %7369  ;;  %7393 = vrcp.f32 %v3225_v62  ;;  %v3223_v15 = vadd.f32 1.0, %v7368_v38  ;;  %v9085_v16 = vpop.f32.mrf.mxu0  ;;  %v4726_v24 = vpack.c.bf16 %v4242_v34, %v4242_v34 }
 0x175   :  { %v7372_v48 = vpop.eup %7371  ;;  %v4306_v59 = vrot.slane %v4305_v40, 4  ;;  %v4313_v47 = vsel %vm940_vm0, %v3983_v58, 0.0  ;;  %7395 = vpow2.f32 %v6145_v52  ;;  %v3988_v12 = vmul.f32 %v7370_v31, %v8989_v53  ;;  %v9105_v51 = vpop.f32.mrf.mxu1 }
 0x176   :  { %v7374_v49 = vpop.eup %7373  ;;  %v4314_v46 = vadd.f32 %v4313_v47, %v4312_v45  ;;  %7397 = vrcp.f32 %v3223_v15  ;;  %v3228_v6 = vadd.f32 1.0, %v7372_v48  ;;  %v9092_v5 = vpop.f32.mrf.mxu0  ;;  %v6146_v21 = vmul.f32 -1.442695, %v9085_v16  ;;  %10807 = vst [vmem:[#allocation5_spill] sm:$0xff] %v9105_v51 }
 0x177   :  { %v7376_v26 = vpop.eup %7375  ;;  %v4307_v42 = vadd.f32 %v4306_v59, %v4305_v40  ;;  %v3986_v30 = vmul.f32 %v7374_v49, %v8996_v8  ;;  %7399 = vpow2.f32 %v6143_v50  ;;  %v4323_v48 = vsel %vm940_vm0, %v3988_v12, 0.0 }
 0x178   :  { %v7378_v1 = vpop.eup %7377  ;;  %v4316_v29 = vadd.f32 %v4315_v63, %v4314_v46  ;;  %v3226_v7 = vadd.f32 1.0, %v7376_v26  ;;  %v9099_v43 = vpop.f32.mrf.mxu0  ;;  %v4758_v26 = vunpack.c.l.b16 %v4726_v24  ;;  %v6149_v63 = vmul.f32 -1.442695, %v9092_v5 }
 0x179   :  { %v7380_v9 = vpop.eup %7379  ;;  %v4308_v14 = vrot.slane %v4307_v42, 2  ;;  %v4319_v23 = vsel %vm940_vm0, %v3986_v30, 0.0  ;;  %v3989_v38 = vmul.f32 %v7378_v1, %v9001_v11 }
 0x17a   :  { %v7382_v18 = vpop.eup %7381  ;;  %v4318_v19 = vadd.f32 %v4317_v41, %v4316_v29  ;;  %7401 = vrcp.f32 %v3226_v7  ;;  %v3229_v57 = vadd.f32 1.0, %v7380_v9  ;;  %v9109_v49 = vpop.f32.mrf.mxu0 }
 0x17b   :  { %v7384_v61 = vpop.eup %7383  ;;  %v4309_v8 = vadd.f32 %v4308_v14, %v4307_v42  ;;  %v3227_v60 = vadd.f32 1.0, %v7382_v18  ;;  %7403 = vrcp.f32 %v3228_v6  ;;  %v4325_v42 = vsel %vm940_vm0, %v3989_v38, 0.0 }
 0x17c   :  { %v4320_v39 = vadd.f32 %v4319_v23, %v4318_v19  ;;  %v3987_v54 = vmul.f32 %v7384_v61, %v9006_v25  ;;  %v7386_v52 = vpop.eup %7385  ;;  %v6148_v25 = vmul.f32 -1.442695, %v9075_v13  ;;  %v9121_v19 = vpop.f32.mrf.mxu0  ;;  %v6147_v23 = vmul.f32 -1.442695, %v9099_v43 }
 0x17d   :  { %v4310_v33 = vrot.slane %v4309_v8, 1  ;;  %7405 = vrcp.f32 %v3227_v60  ;;  %v7388_v62 = vpop.eup %7387  ;;  %v3232_v6 = vadd.f32 1.0, %v7386_v52 }
 0x17e   :  { %v4321_v40 = vsel %vm940_vm0, %v3987_v54, 0.0  ;;  %7407 = vrcp.f32 %v3229_v57  ;;  %v3230_v45 = vadd.f32 1.0, %v7388_v62 }
 0x17f   :  { %v7390_v58 = vpop.eup %7389  ;;  %v4311_v53 = vadd.f32 %v4310_v33, %v4309_v8  ;;  %v4322_v31 = vadd.f32 %v4321_v40, %v4320_v39 }
 0x180   :  { %v7392_v15 = vpop.eup %7391  ;;  %v3990_v59 = vmul.f32 %v7390_v58, %v9016_v10  ;;  %7409 = vrcp.f32 %v3230_v45  ;;  %v9113_v10 = vpop.f32.mrf.mxu1 }
 0x181   :  { %v7394_v47 = vpop.eup %7393  ;;  %v4727_v11 = vpack.c.bf16 %v4311_v53, %v4311_v53  ;;  %v4324_v50 = vadd.f32 %v4323_v48, %v4322_v31  ;;  %7411 = vpow2.f32 %v6146_v21  ;;  %10808 = vst [vmem:[#allocation6_spill] sm:$0xff] %v9113_v10  ;;  %v3992_v7 = vmul.f32 %v7392_v15, %v9010_v27 }
 0x182   :  { %v7396_v46 = vpop.eup %7395  ;;  %7413 = vpow2.f32 %v6148_v25  ;;  %v4327_v9 = vsel %vm940_vm0, %v3990_v59, 0.0  ;;  %v3993_v61 = vmul.f32 %v7394_v47, %v9021_v36  ;;  %v9130_v36 = vpop.f32.mrf.mxu0  ;;  %v6150_v25 = vmul.f32 -1.442695, %v9121_v19 }
 0x183   :  { %v7398_v30 = vpop.eup %7397  ;;  %v4759_v1 = vunpack.c.l.b16 %v4727_v11  ;;  %v4326_v29 = vadd.f32 %v4325_v42, %v4324_v50  ;;  %v3233_v14 = vadd.f32 1.0, %v7396_v46  ;;  %7415 = vpow2.f32 %v6149_v63 }
 0x184   :  { %v3991_v34 = vmul.f32 %v7398_v30, %v9026_v28  ;;  %v7400_v57 = vpop.eup %7399  ;;  %7417 = vrcp.f32 %v3232_v6  ;;  %v9126_v28 = vpop.f32.mrf.mxu1  ;;  %v4331_v39 = vsel %vm940_vm0, %v3992_v7, 0.0  ;;  %v4333_v62 = vsel %vm940_vm0, %v3993_v61, 0.0 }
 0x185   :  { %v9119_v41 = vsel %vm4766_vm1, %v4759_v1, %v4758_v26  ;;  %v4328_v18 = vadd.f32 %v4327_v9, %v4326_v29  ;;  %v3231_v12 = vadd.f32 1.0, %v7400_v57  ;;  %10809 = vst [vmem:[#allocation7_spill] sm:$0xff] %v9126_v28  ;;  %7419 = vrcp.f32 %v3233_v14  ;;  %v9140_v15 = vpop.f32.mrf.mxu0 }
 0x186   :  { %v4329_v8 = vsel %vm940_vm0, %v3991_v34, 0.0  ;;  %v9134_v58 = vpop.f32.mrf.mxu1  ;;  %v6153_v30 = vmul.f32 -1.442695, %v9130_v36  ;;  %v6151_v61 = vmul.f32 -1.442695, %v9140_v15 }
 0x187   :  { %v7402_v27 = vpop.eup %7401  ;;  %v4330_v60 = vadd.f32 %v4329_v8, %v4328_v18  ;;  %7421 = vrcp.f32 %v3231_v12  ;;  %10810 = vst [vmem:[#allocation8_spill] sm:$0xff] %v9134_v58  ;;  %v9149_v1 = vpop.f32.mrf.mxu0 }
 0x188   :  { %v3994_v54 = vmul.f32 %v7402_v27, %v9037_v55  ;;  %v7404_v52 = vpop.eup %7403  ;;  %7423 = vpow2.f32 %v6147_v23  ;;  %v9144_v50 = vpop.f32.mrf.mxu1 }
 0x189   :  { %v4332_v24 = vadd.f32 %v4331_v39, %v4330_v60  ;;  %v3996_v53 = vmul.f32 %v7404_v52, %v9031_v2  ;;  %10811 = vst [vmem:[#allocation9_spill] sm:$0xff] %v9144_v50  ;;  %7425 = vpow2.f32 %v6150_v25  ;;  %v9156_v8 = vpop.f32.mrf.mxu0 }
 0x18a   :  { %v7406_v33 = vpop.eup %7405  ;;  %v4335_v55 = vsel %vm940_vm0, %v3994_v54, 0.0  ;;  %v9152_v9 = vpop.f32.mrf.mxu1 }
 0x18b   :  { %v7408_v38 = vpop.eup %7407  ;;  %v4334_v40 = vadd.f32 %v4333_v62, %v4332_v24  ;;  %v3995_v21 = vmul.f32 %v7406_v33, %v9048_v35  ;;  %v6152_v35 = vmul.f32 -1.442695, %v9109_v49  ;;  %v4339_v2 = vsel %vm940_vm0, %v3996_v53, 0.0  ;;  %10812 = vst [vmem:[#allocation10_spill] sm:$0xff] %v9152_v9  ;;  %v9164_v33 = vpop.f32.mrf.mxu0 }
 0x18c   :  { %v3997_v59 = vmul.f32 %v7408_v38, %v9043_v20  ;;  %v9160_v39 = vpop.f32.mrf.mxu1 }
 0x18d   :  { %v4336_v31 = vadd.f32 %v4335_v55, %v4334_v40  ;;  %v4337_v45 = vsel %vm940_vm0, %v3995_v21, 0.0  ;;  %v7410_v48 = vpop.eup %7409  ;;  %10813 = vst [vmem:[#allocation11_spill] sm:$0xff] %v9160_v39  ;;  %v9171_v53 = vpop.f32.mrf.mxu0 }
 0x18e   :  { %v7412_v47 = vpop.eup %7411  ;;  %v3998_v26 = vmul.f32 %v7410_v48, %v9060_v37  ;;  %v4341_v20 = vsel %vm940_vm0, %v3997_v59, 0.0  ;;  %v9167_v40 = vpop.f32.mrf.mxu1 }
 0x18f   :  { %v4338_v11 = vadd.f32 %v4337_v45, %v4336_v31  ;;  %v7414_v46 = vpop.eup %7413  ;;  %v3234_v42 = vadd.f32 1.0, %v7412_v47  ;;  %10814 = vst [vmem:[#allocation12_spill] sm:$0xff] %v9167_v40  ;;  %v6154_v31 = vmul.f32 -1.442695, %v9156_v8 }
 0x190   :  { %v7416_v29 = vpop.eup %7415  ;;  %v3236_v7 = vadd.f32 1.0, %v7414_v46  ;;  %v4343_v14 = vsel %vm940_vm0, %v3998_v26, 0.0  ;;  %v9174_v48 = vpop.f32.mrf.mxu1 }
 0x191   :  { %v4340_v63 = vadd.f32 %v4339_v2, %v4338_v11  ;;  %7427 = vrcp.f32 %v3234_v42  ;;  %v7418_v34 = vpop.eup %7417  ;;  %v3237_v37 = vadd.f32 1.0, %v7416_v29  ;;  %10815 = vst [vmem:[#allocation13_spill] sm:$0xff] %v9174_v48  ;;  %v9177_v11 = vpop.f32.mrf.mxu0  ;;  %v6157_v2 = vmul.f32 -1.442695, %v9164_v33 }
 0x192   :  { %7429 = vpow2.f32 %v6152_v35  ;;  %v7420_v18 = vpop.eup %7419  ;;  %v4000_v60 = vmul.f32 %v7418_v34, %v9052_v17 }
 0x193   :  { %v4342_v6 = vadd.f32 %v4341_v20, %v4340_v63  ;;  %7431 = vpow2.f32 %v6153_v30  ;;  %v4001_v52 = vmul.f32 %v7420_v18, %v9065_v3  ;;  %v9181_v63 = vpop.f32.mrf.mxu1 }
 0x194   :  { %v7422_v23 = vpop.eup %7421  ;;  %7433 = vrcp.f32 %v3236_v7  ;;  %v4347_v38 = vsel %vm940_vm0, %v4000_v60, 0.0  ;;  %10816 = vst [vmem:[#allocation14_spill] sm:$0xff] %v9181_v63  ;;  %v6155_v7 = vmul.f32 -1.442695, %v9171_v53 }
 0x195   :  { %v4344_v57 = vadd.f32 %v4343_v14, %v4342_v6  ;;  %v7424_v27 = vpop.eup %7423  ;;  %v3999_v12 = vmul.f32 %v7422_v23, %v9071_v4  ;;  %7435 = vrcp.f32 %v3237_v37  ;;  %v6156_v4 = vmul.f32 -1.442695, %v9149_v1  ;;  %v9183_v6 = vpop.f32.mrf.mxu0 }
 0x196   :  { %v3235_v54 = vadd.f32 1.0, %v7424_v27  ;;  %7437 = vpow2.f32 %v6151_v61  ;;  %v4349_v21 = vsel %vm940_vm0, %v4001_v52, 0.0  ;;  %v7426_v55 = vpop.eup %7425  ;;  %v9186_v37 = vpop.f32.mrf.mxu1 }
 0x197   :  { %v4345_v24 = vsel %vm940_vm0, %v3999_v12, 0.0  ;;  %v3238_v25 = vadd.f32 1.0, %v7426_v55  ;;  %10817 = vst [vmem:[#allocation15_spill] sm:$0xff] %v9186_v37  ;;  %v9190_v61 = vpop.f32.mrf.mxu0 }
 0x198   :  { %v4346_v62 = vadd.f32 %v4345_v24, %v4344_v57  ;;  %7439 = vrcp.f32 %v3235_v54  ;;  %v9194_v12 = vpop.f32.mrf.mxu1 }
 0x199   :  { %7441 = vpow2.f32 %v6156_v4  ;;  %10818 = vst [vmem:[#allocation16_spill] sm:$0xff] %v9194_v12 }
 0x19a   :  { %v4348_v17 = vadd.f32 %v4347_v38, %v4346_v62  ;;  %7443 = vrcp.f32 %v3238_v25  ;;  %v9198_v62 = vpop.f32.mrf.mxu0  ;;  %v9203_v55 = vpop.f32.mrf.mxu1 }
 0x19b   :  { %7445 = vpow2.f32 %v6154_v31  ;;  %10819 = vst [vmem:[#allocation17_spill] sm:$0xff] %v9203_v55  ;;  %v6232_v31 = vmul.f32 -1.442695, %v9056_v0 }
 0x19c   :  { %v4350_v3 = vadd.f32 %v4349_v21, %v4348_v17  ;;  %7447 = vpow2.f32 %v6157_v2  ;;  %v6160_v21 = vmul.f32 -1.442695, %v9177_v11  ;;  %v9207_v25 = vpop.f32.mrf.mxu0 }
 0x19e   :  { %v7428_v45 = vpop.eup %7427 }
 0x19f   :  { %v7430_v59 = vpop.eup %7429  ;;  %v4002_v47 = vmul.f32 %v7428_v45, %v9085_v16 }
 0x1a0   :  { %v7432_v35 = vpop.eup %7431  ;;  %v3240_v42 = vadd.f32 1.0, %v7430_v59 }
 0x1a1   :  { %v4351_v46 = vsel %vm940_vm0, %v4002_v47, 0.0  ;;  %v7434_v30 = vpop.eup %7433  ;;  %v3241_v20 = vadd.f32 1.0, %v7432_v35 }
 0x1a2   :  { %v4352_v26 = vadd.f32 %v4351_v46, %v4350_v3  ;;  %v7436_v29 = vpop.eup %7435  ;;  %7449 = vrcp.f32 %v3240_v42  ;;  %v4004_v18 = vmul.f32 %v7434_v30, %v9075_v13  ;;  %v6158_v13 = vmul.f32 -1.442695, %v9183_v6  ;;  %v9210_v46 = vpop.f32.mrf.mxu1 }
 0x1a3   :  { %v7438_v16 = vpop.eup %7437  ;;  %7451 = vrcp.f32 %v3241_v20  ;;  %v4005_v23 = vmul.f32 %v7436_v29, %v9092_v5  ;;  %10820 = vst [vmem:[#allocation18_spill] sm:$0xff] %v9210_v46  ;;  %v6159_v30 = vmul.f32 -1.442695, %v9198_v62  ;;  %v9213_v20 = vpop.f32.mrf.mxu0 }
 0x1a4   :  { %v3239_v14 = vadd.f32 1.0, %v7438_v16  ;;  %v4355_v54 = vsel %vm940_vm0, %v4004_v18, 0.0  ;;  %v9218_v18 = vpop.f32.mrf.mxu1 }
 0x1a5   :  { %v7440_v34 = vpop.eup %7439  ;;  %v4357_v38 = vsel %vm940_vm0, %v4005_v23, 0.0  ;;  %10821 = vst [vmem:[#allocation19_spill] sm:$0xff] %v9218_v18 }
 0x1a6   :  { %v4003_v57 = vmul.f32 %v7440_v34, %v9099_v43  ;;  %7453 = vrcp.f32 %v3239_v14  ;;  %v7442_v52 = vpop.eup %7441 }
 0x1a7   :  { %7455 = vpow2.f32 %v6155_v7  ;;  %v7444_v43 = vpop.eup %7443  ;;  %v3244_v47 = vadd.f32 1.0, %v7442_v52  ;;  %v6230_v7 = vmul.f32 -1.442695, %v9067_v22 }
 0x1a8   :  { %v4353_v27 = vsel %vm940_vm0, %v4003_v57, 0.0  ;;  %v7446_v17 = vpop.eup %7445  ;;  %v4006_v5 = vmul.f32 %v7444_v43, %v9121_v19  ;;  %7457 = vpow2.f32 %v6158_v13  ;;  %v6161_v19 = vmul.f32 -1.442695, %v9190_v61 }
 0x1a9   :  { %v4354_v60 = vadd.f32 %v4353_v27, %v4352_v26  ;;  %v3242_v3 = vadd.f32 1.0, %v7446_v17  ;;  %v7448_v35 = vpop.eup %7447  ;;  %v6162_v17 = vmul.f32 -1.442695, %v9213_v20 }
 0x1aa   :  { %v4359_v45 = vsel %vm940_vm0, %v4006_v5, 0.0  ;;  %v3245_v26 = vadd.f32 1.0, %v7448_v35 }
 0x1ab   :  { %v4356_v24 = vadd.f32 %v4355_v54, %v4354_v60  ;;  %7459 = vrcp.f32 %v3242_v3  ;;  %v9222_v60 = vpop.f32.mrf.mxu0 }
 0x1ac   :  { %7461 = vpow2.f32 %v6160_v21 }
 0x1ad   :  { %v4358_v4 = vadd.f32 %v4357_v38, %v4356_v24  ;;  %7463 = vpow2.f32 %v6232_v31  ;;  %v9229_v43 = vpop.f32.mrf.mxu0  ;;  %v6231_v31 = vmul.f32 -1.442695, %v9089_v32 }
 0x1ae   :  { %7465 = vrcp.f32 %v3244_v47 }
 0x1af   :  { %v4360_v59 = vadd.f32 %v4359_v45, %v4358_v4  ;;  %v7450_v2 = vpop.eup %7449  ;;  %7467 = vpow2.f32 %v6161_v19  ;;  %v6164_v4 = vmul.f32 -1.442695, %v9207_v25  ;;  %v9238_v47 = vpop.f32.mrf.mxu0 }
 0x1b0   :  { %v7452_v42 = vpop.eup %7451  ;;  %v4008_v34 = vmul.f32 %v7450_v2, %v9109_v49  ;;  %7469 = vrcp.f32 %v3245_v26  ;;  %v9225_v49 = vpop.f32.mrf.mxu1 }
 0x1b1   :  { %v4009_v23 = vmul.f32 %v7452_v42, %v9130_v36  ;;  %7471 = vpow2.f32 %v6159_v30  ;;  %10822 = vst [vmem:[#allocation20_spill] sm:$0xff] %v9225_v49 }
 0x1b2   :  { %v4363_v52 = vsel %vm940_vm0, %v4008_v34, 0.0  ;;  %v9233_v21 = vpop.f32.mrf.mxu1  ;;  %v9244_v34 = vpop.f32.mrf.mxu0 }
 0x1b3   :  { %v7454_v29 = vpop.eup %7453  ;;  %v4365_v13 = vsel %vm940_vm0, %v4009_v23, 0.0  ;;  %10823 = vst [vmem:[#allocation21_spill] sm:$0xff] %v9233_v21 }
 0x1b4   :  { %v7456_v16 = vpop.eup %7455  ;;  %v4007_v14 = vmul.f32 %v7454_v29, %v9140_v15  ;;  %v6233_v15 = vmul.f32 -1.442695, %v9079_v44  ;;  %v9241_v29 = vpop.f32.mrf.mxu1 }
 0x1b5   :  { %v3243_v57 = vadd.f32 1.0, %v7456_v16  ;;  %v7458_v36 = vpop.eup %7457  ;;  %10824 = vst [vmem:[#allocation22_spill] sm:$0xff] %v9241_v29 }
 0x1b6   :  { %v4361_v27 = vsel %vm940_vm0, %v4007_v14, 0.0  ;;  %v3246_v2 = vadd.f32 1.0, %v7458_v36  ;;  %v9251_v36 = vpop.f32.mrf.mxu0 }
 0x1b7   :  { %v4362_v54 = vadd.f32 %v4361_v27, %v4360_v59  ;;  %7473 = vrcp.f32 %v3243_v57  ;;  %v6236_v59 = vmul.f32 -1.442695, %v9095_v56  ;;  %v6163_v57 = vmul.f32 -1.442695, %v9229_v43 }
 0x1b8   :  { %7475 = vpow2.f32 %v6230_v7  ;;  %v7460_v5 = vpop.eup %7459  ;;  %v6165_v7 = vmul.f32 -1.442695, %v9222_v60 }
 0x1b9   :  { %v4364_v24 = vadd.f32 %v4363_v52, %v4362_v54  ;;  %v7462_v3 = vpop.eup %7461  ;;  %7477 = vpow2.f32 %v6233_v15  ;;  %v4010_v45 = vmul.f32 %v7460_v5, %v9156_v8  ;;  %v9247_v54 = vpop.f32.mrf.mxu1 }
 0x1ba   :  { %v7464_v35 = vpop.eup %7463  ;;  %7479 = vpow2.f32 %v6162_v17  ;;  %v3248_v30 = vadd.f32 1.0, %v7462_v3  ;;  %10825 = vst [vmem:[#allocation23_spill] sm:$0xff] %v9247_v54 }
 0x1bb   :  { %v4366_v38 = vadd.f32 %v4365_v13, %v4364_v24  ;;  %v4367_v19 = vsel %vm940_vm0, %v4010_v45, 0.0  ;;  %v7466_v26 = vpop.eup %7465  ;;  %7481 = vpow2.f32 %v6164_v4  ;;  %v3320_v13 = vadd.f32 1.0, %v7464_v35 }
 0x1bc   :  { %v7468_v16 = vpop.eup %7467  ;;  %7483 = vpow2.f32 %v6231_v31  ;;  %v4012_v15 = vmul.f32 %v7466_v26, %v9149_v1  ;;  %v9255_v31 = vpop.f32.mrf.mxu1  ;;  %v6234_v45 = vmul.f32 -1.442695, %v9105_v51  ;;  %v6166_v35 = vmul.f32 -1.442695, %v9244_v34 }
 0x1bd   :  { %v4368_v42 = vadd.f32 %v4367_v19, %v4366_v38  ;;  %v7470_v8 = vpop.eup %7469  ;;  %7485 = vpow2.f32 %v6236_v59  ;;  %v3249_v5 = vadd.f32 1.0, %v7468_v16  ;;  %v9260_v19 = vpop.f32.mrf.mxu0 }
 0x1be   :  { %v7472_v14 = vpop.eup %7471  ;;  %7487 = vrcp.f32 %v3246_v2  ;;  %v4013_v38 = vmul.f32 %v7470_v8, %v9164_v33  ;;  %v4371_v1 = vsel %vm940_vm0, %v4012_v15, 0.0  ;;  %v6235_v15 = vmul.f32 -1.442695, %v9126_v28 }
 0x1bf   :  { %7489 = vrcp.f32 %v3248_v30  ;;  %v3247_v27 = vadd.f32 1.0, %v7472_v14  ;;  %v9264_v30 = vpop.f32.mrf.mxu1 }
 0x1c0   :  { %7491 = vpow2.f32 %v6165_v7  ;;  %v4373_v33 = vsel %vm940_vm0, %v4013_v38, 0.0 }
 0x1c1   :  { %7493 = vrcp.f32 %v3247_v27  ;;  %v9267_v27 = vpop.f32.mrf.mxu0 }
 0x1c2   :  { %7495 = vpow2.f32 %v6163_v57  ;;  %v6237_v57 = vmul.f32 -1.442695, %v9113_v10 }
 0x1c3   :  { %7497 = vrcp.f32 %v3320_v13 }
 0x1c4   :  { %v7474_v23 = vpop.eup %7473  ;;  %7499 = vrcp.f32 %v3249_v5 }
 0x1c5   :  { %v7476_v52 = vpop.eup %7475  ;;  %v4011_v24 = vmul.f32 %v7474_v23, %v9171_v53 }
 0x1c6   :  { %v3318_v4 = vadd.f32 1.0, %v7476_v52  ;;  %v7478_v53 = vpop.eup %7477 }
 0x1c7   :  { %v4369_v17 = vsel %vm940_vm0, %v4011_v24, 0.0  ;;  %v7480_v2 = vpop.eup %7479  ;;  %v3321_v7 = vadd.f32 1.0, %v7478_v53  ;;  %v9274_v53 = vpop.f32.mrf.mxu0 }
 0x1c8   :  { %v4370_v3 = vadd.f32 %v4369_v17, %v4368_v42  ;;  %7501 = vrcp.f32 %v3318_v4  ;;  %v6168_v42 = vmul.f32 -1.442695, %v9238_v47  ;;  %v7482_v16 = vpop.eup %7481  ;;  %v3250_v8 = vadd.f32 1.0, %v7480_v2  ;;  %v9270_v17 = vpop.f32.mrf.mxu1 }
 0x1c9   :  { %7503 = vpow2.f32 %v6234_v45  ;;  %v7484_v14 = vpop.eup %7483  ;;  %v3252_v38 = vadd.f32 1.0, %v7482_v16  ;;  %v6169_v4 = vmul.f32 -1.442695, %v9251_v36 }
 0x1ca   :  { %v4372_v59 = vadd.f32 %v4371_v1, %v4370_v3  ;;  %7505 = vpow2.f32 %v6166_v35  ;;  %v7486_v52 = vpop.eup %7485  ;;  %v6167_v1 = vmul.f32 -1.442695, %v9260_v19  ;;  %v3319_v2 = vadd.f32 1.0, %v7484_v14  ;;  %v9278_v16 = vpop.f32.mrf.mxu1 }
 0x1cb   :  { %7507 = vrcp.f32 %v3250_v8  ;;  %v7488_v24 = vpop.eup %7487 }
 0x1cc   :  { %v4374_v26 = vadd.f32 %v4373_v33, %v4372_v59  ;;  %7509 = vpow2.f32 %v6168_v42  ;;  %v7490_v5 = vpop.eup %7489  ;;  %v4014_v35 = vmul.f32 %v7488_v24, %v9183_v6 }
 0x1cd   :  { %7511 = vrcp.f32 %v3321_v7  ;;  %v7492_v3 = vpop.eup %7491  ;;  %v6240_v7 = vmul.f32 -1.442695, %v9134_v58  ;;  %v4016_v14 = vmul.f32 %v7490_v5, %v9177_v11 }
 0x1ce   :  { %v4375_v23 = vrot.slane %v4374_v26, 4  ;;  %7513 = vpow2.f32 %v6237_v57  ;;  %v7494_v59 = vpop.eup %7493  ;;  %v3324_v57 = vadd.f32 1.0, %v7486_v52  ;;  %v3253_v24 = vadd.f32 1.0, %v7492_v3 }
 0x1cf   :  { %7515 = vpow2.f32 %v6235_v15  ;;  %v7496_v33 = vpop.eup %7495  ;;  %v4015_v42 = vmul.f32 %v7494_v59, %v9198_v62  ;;  %v9282_v15 = vpop.f32.mrf.mxu0  ;;  %v4381_v62 = vsel %vm940_vm0, %v4014_v35, 0.0  ;;  %v4384_v3 = vsel %vm940_vm0, %v4016_v14, 0.0 }
 0x1d0   :  { %v4376_v13 = vadd.f32 %v4375_v23, %v4374_v26  ;;  %7517 = vrcp.f32 %v3252_v38  ;;  %v3251_v8 = vadd.f32 1.0, %v7496_v33  ;;  %v9284_v6 = vpop.eup %7497  ;;  %v6241_v14 = vmul.f32 -1.442695, %v9152_v9 }
 0x1d1   :  { %7519 = vpow2.f32 %v6169_v4  ;;  %v4382_v28 = vsel %vm940_vm0, %v4015_v42, 0.0  ;;  %v9288_v4 = vpop.f32.mrf.mxu1  ;;  %v9293_v11 = vpop.f32.mrf.mxu0 }
 0x1d2   :  { %v4377_v45 = vrot.slane %v4376_v13, 2  ;;  %7521 = vpow2.f32 %v6167_v1  ;;  %10826 = vst [vmem:[#allocation24_spill] sm:$0xff] %v9288_v4  ;;  %v6238_v1 = vmul.f32 -1.442695, %v9144_v50 }
 0x1d3   :  { %7523 = vrcp.f32 %v3251_v8  ;;  %v6172_v8 = vmul.f32 -1.442695, %v9267_v27 }
 0x1d4   :  { %v4378_v26 = vadd.f32 %v4377_v45, %v4376_v13  ;;  %v7500_v13 = vpop.eup %7499  ;;  %7525 = vrcp.f32 %v3319_v2  ;;  %v4383_v45 = vadd.f32 %v4382_v28, %v4381_v62  ;;  %v6170_v28 = vmul.f32 -1.442695, %v9274_v53 }
 0x1d5   :  { %v9290_v52 = vpop.eup %7501  ;;  %7527 = vpow2.f32 %v6240_v7  ;;  %v4017_v35 = vmul.f32 %v7500_v13, %v9190_v61 }
 0x1d6   :  { %v4379_v23 = vrot.slane %v4378_v26, 1  ;;  %v7504_v59 = vpop.eup %7503  ;;  %7529 = vrcp.f32 %v3324_v57  ;;  %v4385_v42 = vadd.f32 %v4384_v3, %v4383_v45  ;;  %v6239_v45 = vmul.f32 -1.442695, %v9160_v39 }
 0x1d7   :  { %v7506_v5 = vpop.eup %7505  ;;  %7531 = vrcp.f32 %v3253_v24  ;;  %v3322_v62 = vadd.f32 1.0, %v7504_v59  ;;  %v9308_v24 = vpop.f32.mrf.mxu0 }
 0x1d8   :  { %v4380_v38 = vadd.f32 %v4379_v23, %v4378_v26  ;;  %v7508_v2 = vpop.eup %7507  ;;  %v3254_v7 = vadd.f32 1.0, %v7506_v5  ;;  %v9299_v23 = vpop.f32.mrf.mxu1  ;;  %7533 = vpow2.f32 %v6238_v1 }
 0x1d9   :  { %10827 = vst [vmem:[#allocation25_spill] sm:$0xff] %v9299_v23  ;;  %v7510_v57 = vpop.eup %7509  ;;  %v4018_v5 = vmul.f32 %v7508_v2, %v9213_v20  ;;  %v6171_v20 = vmul.f32 -1.442695, %v9293_v11  ;;  %v6244_v2 = vmul.f32 -1.442695, %v9167_v40 }
 0x1da   :  { %v4728_v33 = vpack.c.bf16 %v4380_v38, %v4380_v38  ;;  %v9301_v38 = vpop.eup %7511  ;;  %7535 = vrcp.f32 %v3254_v7  ;;  %v3256_v3 = vadd.f32 1.0, %v7510_v57  ;;  %v9313_v9 = vpop.f32.mrf.mxu1 }
 0x1db   :  { %v7514_v13 = vpop.eup %7513  ;;  %7537 = vpow2.f32 %v6170_v28  ;;  %10828 = vst [vmem:[#allocation26_spill] sm:$0xff] %v9313_v9  ;;  %v9316_v7 = vpop.f32.mrf.mxu0 }
 0x1dc   :  { %v4760_v26 = vunpack.c.l.b16 %v4728_v33  ;;  %v4386_v33 = vsel %vm940_vm0, %v4017_v35, 0.0  ;;  %v7516_v1 = vpop.eup %7515  ;;  %7539 = vpow2.f32 %v6172_v8  ;;  %v4388_v35 = vsel %vm940_vm0, %v4018_v5, 0.0  ;;  %v9321_v57 = vpop.f32.mrf.mxu1 }
 0x1dd   :  { %v4387_v59 = vadd.f32 %v4386_v33, %v4385_v42  ;;  %v7518_v50 = vpop.eup %7517  ;;  %7541 = vrcp.f32 %v3322_v62  ;;  %10829 = vst [vmem:[#allocation27_spill] sm:$0xff] %v9321_v57  ;;  %v3325_v33 = vadd.f32 1.0, %v7514_v13  ;;  %v9327_v10 = vpop.f32.mrf.mxu0  ;;  %v6174_v51 = vmul.f32 -1.442695, %v9316_v7 }
 0x1de   :  { %v9306_v61 = vsel %vm4768_vm2, %v4760_v26, %v9119_v41  ;;  %v6173_v41 = vmul.f32 -1.442695, %v9282_v15  ;;  %v7520_v26 = vpop.eup %7519  ;;  %7543 = vpow2.f32 %v6241_v14  ;;  %v4020_v5 = vmul.f32 %v7518_v50, %v9207_v25 }
 0x1df   :  { %v7522_v39 = vpop.eup %7521  ;;  %7545 = vpow2.f32 %v6239_v45  ;;  %v4389_v42 = vadd.f32 %v4388_v35, %v4387_v59  ;;  %v3323_v45 = vadd.f32 1.0, %v7516_v1  ;;  %v4742_v59 = vld [vmem:[%s10710_s2 + $0x40] sm:$0xff]  ;;  %v3257_v13 = vadd.f32 1.0, %v7520_v26  ;;  %v9339_v35 = vpop.f32.mrf.mxu1 }
 0x1e0   :  { %v7524_v28 = vpop.eup %7523  ;;  %7547 = vrcp.f32 %v3256_v3  ;;  %v3255_v8 = vadd.f32 1.0, %v7522_v39  ;;  %v4746_v39 = vld [vmem:[%s10710_s2 + $0x60] sm:$0xff]  ;;  %v6242_v50 = vmul.f32 -1.442695, %v9174_v48  ;;  %10831 = vst [vmem:[#allocation29_spill] sm:$0xff] %v9339_v35 }
 0x1e1   :  { %v9323_v62 = vpop.eup %7525  ;;  %v4019_v14 = vmul.f32 %v7524_v28, %v9229_v43  ;;  %7549 = vpow2.f32 %v6173_v41  ;;  %v6326_v1 = vcombine.low %v4742_v59, %v4746_v39  ;;  %v6327_v28 = vcombine.high %v4742_v59, %v4746_v39  ;;  %v9348_v59 = vpop.f32.mrf.mxu1 }
 0x1e2   :  { %v7528_v58 = vpop.eup %7527  ;;  %7551 = vrcp.f32 %v3255_v8  ;;  %v6245_v8 = vmul.f32 -1.442695, %v9181_v63 }
 0x1e3   :  { %v9335_v3 = vpop.eup %7529  ;;  %v4390_v43 = vsel %vm940_vm0, %v4019_v14, 0.0  ;;  %7553 = vpow2.f32 %v6171_v20  ;;  %4876 = vmatprep.subr.bf16.mxu1 %v6327_v28  ;;  %v4392_v20 = vsel %vm940_vm0, %v4020_v5, 0.0  ;;  %v3328_v39 = vadd.f32 1.0, %v7528_v58  ;;  %v9357_v58 = vpop.f32.mrf.mxu1 }
 0x1e4   :  { %10830 = vst [vmem:[#allocation28_spill] sm:$0xff] %v9335_v3  ;;  %v7532_v41 = vpop.eup %7531  ;;  %7555 = vpow2.f32 %v6244_v2  ;;  %v4391_v25 = vadd.f32 %v4390_v43, %v4389_v42  ;;  %v9343_v3 = vpop.f32.mrf.mxu0  ;;  %4877 = vmatpush1.bf16.msra.mxu1 %v6326_v1  ;;  %10833 = vst [vmem:[#allocation31_spill] sm:$0xff] %v9357_v58 }
 0x1e5   :  { %7557 = vrcp.f32 %v3325_v33  ;;  %v7534_v40 = vpop.eup %7533  ;;  %v4021_v2 = vmul.f32 %v7532_v41, %v9222_v60  ;;  %v6176_v33 = vmul.f32 -1.442695, %v9308_v24 }
 0x1e6   :  { %7559 = vrcp.f32 %v3323_v45  ;;  %v4393_v14 = vadd.f32 %v4392_v20, %v4391_v25  ;;  %v3326_v28 = vadd.f32 1.0, %v7534_v40  ;;  %v9352_v5 = vpop.f32.mrf.mxu0 }
 0x1e7   :  { %v7536_v26 = vpop.eup %7535  ;;  %7561 = vrcp.f32 %v3257_v13  ;;  %v6243_v13 = vmul.f32 -1.442695, %v9186_v37  ;;  %v4394_v1 = vsel %vm940_vm0, %v4021_v2, 0.0 }
 0x1e8   :  { %v7538_v42 = vpop.eup %7537  ;;  %7563 = vpow2.f32 %v6242_v50  ;;  %v4022_v41 = vmul.f32 %v7536_v26, %v9244_v34  ;;  %v4395_v25 = vadd.f32 %v4394_v1, %v4393_v14  ;;  %v9361_v37 = vpop.f32.mrf.mxu0 }
 0x1e9   :  { %v7540_v45 = vpop.eup %7539  ;;  %7565 = vpow2.f32 %v6245_v8  ;;  %v3258_v43 = vadd.f32 1.0, %v7538_v42  ;;  %v6175_v42 = vmul.f32 -1.442695, %v9343_v3 }
 0x1ea   :  { %v9350_v63 = vpop.eup %7541  ;;  %7567 = vpow2.f32 %v6174_v51  ;;  %v3260_v20 = vadd.f32 1.0, %v7540_v45  ;;  %v6177_v51 = vmul.f32 -1.442695, %v9327_v10  ;;  %v4396_v34 = vsel %vm940_vm0, %v4022_v41, 0.0  ;;  %v9371_v41 = vpop.f32.mrf.mxu0 }
 0x1eb   :  { %10832 = vst [vmem:[#allocation30_spill] sm:$0xff] %v9350_v63  ;;  %v7544_v60 = vpop.eup %7543  ;;  %7569 = vrcp.f32 %v3258_v43  ;;  %v4397_v45 = vadd.f32 %v4396_v34, %v4395_v25  ;;  %v9365_v43 = vpop.f32.mrf.mxu1  ;;  %v6248_v63 = vmul.f32 -1.442695, %v9194_v12 }
 0x1ec   :  { %v7546_v50 = vpop.eup %7545  ;;  %7571 = vpow2.f32 %v6176_v33  ;;  %v3329_v14 = vadd.f32 1.0, %v7544_v60  ;;  %10834 = vst [vmem:[#allocation32_spill] sm:$0xff] %v9365_v43 }
 0x1ed   :  { %v7548_v8 = vpop.eup %7547  ;;  %7573 = vrcp.f32 %v3328_v39  ;;  %v3327_v1 = vadd.f32 1.0, %v7546_v50 }
 0x1ee   :  { %v7550_v40 = vpop.eup %7549  ;;  %7575 = vrcp.f32 %v3326_v28 }
 0x1ef   :  { %v7552_v2 = vpop.eup %7551  ;;  %7577 = vpow2.f32 %v6243_v13  ;;  %v3261_v25 = vadd.f32 1.0, %v7550_v40 }
 0x1f0   :  { %v7554_v26 = vpop.eup %7553  ;;  %v4023_v33 = vmul.f32 %v7552_v2, %v9260_v19  ;;  %7579 = vrcp.f32 %v3260_v20  ;;  %v4024_v19 = vmul.f32 %v7548_v8, %v9238_v47 }
 0x1f1   :  { %v7556_v39 = vpop.eup %7555  ;;  %v3259_v48 = vadd.f32 1.0, %v7554_v26  ;;  %7581 = vpow2.f32 %v6177_v51  ;;  %v9376_v51 = vpop.f32.mrf.mxu1  ;;  %v6246_v26 = vmul.f32 -1.442695, %v9203_v55 }
 0x1f2   :  { %v9367_v28 = vpop.eup %7557  ;;  %v4398_v13 = vsel %vm940_vm0, %v4023_v33, 0.0  ;;  %7583 = vpow2.f32 %v6175_v42  ;;  %v3332_v50 = vadd.f32 1.0, %v7556_v39  ;;  %10837 = vst [vmem:[#allocation35_spill] sm:$0xff] %v9376_v51  ;;  %v9379_v42 = vpop.f32.mrf.mxu0 }
 0x1f3   :  { %10835 = vst [vmem:[#allocation33_spill] sm:$0xff] %v9367_v28  ;;  %v9373_v60 = vpop.eup %7559  ;;  %7585 = vrcp.f32 %v3259_v48  ;;  %v4399_v2 = vadd.f32 %v4398_v13, %v4397_v45  ;;  %v6178_v48 = vmul.f32 -1.442695, %v9361_v37  ;;  %v6180_v45 = vmul.f32 -1.442695, %v9352_v5  ;;  %v9385_v39 = vpop.f32.mrf.mxu1 }
 0x1f4   :  { %10836 = vst [vmem:[#allocation34_spill] sm:$0xff] %v9373_v60  ;;  %v7562_v20 = vpop.eup %7561  ;;  %7587 = vrcp.f32 %v3329_v14  ;;  %v4400_v60 = vsel %vm940_vm0, %v4024_v19, 0.0  ;;  %10838 = vst [vmem:[#allocation36_spill] sm:$0xff] %v9385_v39  ;;  %v6249_v19 = vmul.f32 -1.442695, %v9210_v46 }
 0x1f5   :  { %v7564_v34 = vpop.eup %7563  ;;  %7589 = vrcp.f32 %v3327_v1  ;;  %v4025_v47 = vmul.f32 %v7562_v20, %v9251_v36  ;;  %v4401_v40 = vadd.f32 %v4400_v60, %v4399_v2  ;;  %v9390_v36 = vpop.f32.mrf.mxu0 }
 0x1f6   :  { %v7566_v33 = vpop.eup %7565  ;;  %7591 = vpow2.f32 %v6248_v63  ;;  %v3330_v63 = vadd.f32 1.0, %v7564_v34  ;;  %v9396_v34 = vpop.f32.mrf.mxu1 }
 0x1f7   :  { %v7568_v12 = vpop.eup %7567  ;;  %7593 = vrcp.f32 %v3261_v25  ;;  %v3333_v20 = vadd.f32 1.0, %v7566_v33  ;;  %v4402_v60 = vsel %vm940_vm0, %v4025_v47, 0.0  ;;  %10841 = vst [vmem:[#allocation39_spill] sm:$0xff] %v9396_v34 }
 0x1f8   :  { %v7570_v8 = vpop.eup %7569  ;;  %7595 = vrcp.f32 %v3332_v50  ;;  %v3262_v14 = vadd.f32 1.0, %v7568_v12  ;;  %v4403_v2 = vadd.f32 %v4402_v60, %v4401_v40  ;;  %v6247_v60 = vmul.f32 -1.442695, %v9218_v18 }
 0x1f9   :  { %v7572_v1 = vpop.eup %7571  ;;  %7597 = vpow2.f32 %v6246_v26  ;;  %v4026_v12 = vmul.f32 %v7570_v8, %v9274_v53  ;;  %v6179_v53 = vmul.f32 -1.442695, %v9379_v42 }
 0x1fa   :  { %v9387_v13 = vpop.eup %7573  ;;  %7599 = vrcp.f32 %v3262_v14  ;;  %v3264_v55 = vadd.f32 1.0, %v7572_v1  ;;  %v6181_v14 = vmul.f32 -1.442695, %v9371_v41  ;;  %v9403_v1 = vpop.f32.mrf.mxu1 }
 0x1fb   :  { %10839 = vst [vmem:[#allocation37_spill] sm:$0xff] %v9387_v13  ;;  %v9392_v25 = vpop.eup %7575  ;;  %7601 = vpow2.f32 %v6178_v48  ;;  %v9399_v13 = vpop.f32.mrf.mxu0  ;;  %v4404_v47 = vsel %vm940_vm0, %v4026_v12, 0.0  ;;  %10842 = vst [vmem:[#allocation40_spill] sm:$0xff] %v9403_v1 }
 0x1fc   :  { %10840 = vst [vmem:[#allocation38_spill] sm:$0xff] %v9392_v25  ;;  %v7578_v50 = vpop.eup %7577  ;;  %7603 = vpow2.f32 %v6180_v45  ;;  %v4405_v40 = vadd.f32 %v4404_v47, %v4403_v2 }
 0x1fd   :  { %v7580_v26 = vpop.eup %7579  ;;  %7605 = vrcp.f32 %v3330_v63  ;;  %v3331_v8 = vadd.f32 1.0, %v7578_v50  ;;  %v9412_v12 = vpop.f32.mrf.mxu0 }
 0x1fe   :  { %v7582_v46 = vpop.eup %7581  ;;  %7607 = vpow2.f32 %v6249_v19 }
 0x1ff   :  { %v7584_v33 = vpop.eup %7583  ;;  %7609 = vrcp.f32 %v3333_v20  ;;  %v6252_v20 = vmul.f32 -1.442695, %v9225_v49 }
 0x200   :  { %v7586_v48 = vpop.eup %7585  ;;  %7611 = vrcp.f32 %v3264_v55  ;;  %v3263_v45 = vadd.f32 1.0, %v7584_v33  ;;  %v4028_v55 = vmul.f32 %v7580_v26, %v9267_v27  ;;  %v3265_v33 = vadd.f32 1.0, %v7582_v46  ;;  %v9427_v26 = vpop.f32.mrf.mxu0 }
 0x201   :  { %v9405_v63 = vpop.eup %7587  ;;  %v4027_v19 = vmul.f32 %v7586_v48, %v9293_v11  ;;  %7613 = vpow2.f32 %v6181_v14  ;;  %v6256_v11 = vmul.f32 -1.442695, %v9255_v31  ;;  %v9419_v48 = vpop.f32.mrf.mxu1  ;;  %v6182_v27 = vmul.f32 -1.442695, %v9399_v13 }
 0x202   :  { %10843 = vst [vmem:[#allocation41_spill] sm:$0xff] %v9405_v63  ;;  %v9409_v25 = vpop.eup %7589  ;;  %7615 = vrcp.f32 %v3263_v45  ;;  %10846 = vst [vmem:[#allocation44_spill] sm:$0xff] %v9419_v48  ;;  %v6254_v45 = vmul.f32 -1.442695, %v9264_v30 }
 0x203   :  { %10844 = vst [vmem:[#allocation42_spill] sm:$0xff] %v9409_v25  ;;  %v9414_v50 = vpop.eup %7591  ;;  %v4406_v2 = vsel %vm940_vm0, %v4027_v19, 0.0  ;;  %7617 = vpow2.f32 %v6179_v53  ;;  %v4408_v53 = vsel %vm940_vm0, %v4028_v55, 0.0  ;;  %v6250_v19 = vmul.f32 -1.442695, %v9233_v21  ;;  %v9438_v55 = vpop.f32.mrf.mxu0 }
 0x204   :  { %10845 = vst [vmem:[#allocation43_spill] sm:$0xff] %v9414_v50  ;;  %v7594_v47 = vpop.eup %7593  ;;  %7619 = vrcp.f32 %v3331_v8  ;;  %v4407_v14 = vadd.f32 %v4406_v2, %v4405_v40  ;;  %v9432_v2 = vpop.f32.mrf.mxu1  ;;  %v6184_v50 = vmul.f32 -1.442695, %v9390_v36  ;;  %v6257_v25 = vmul.f32 -1.442695, %v9270_v17 }
 0x205   :  { %v9421_v18 = vpop.eup %7595  ;;  %7621 = vpow2.f32 %v6247_v60  ;;  %v4029_v8 = vmul.f32 %v7594_v47, %v9282_v15  ;;  %10849 = vst [vmem:[#allocation47_spill] sm:$0xff] %v9432_v2  ;;  %v9451_v63 = vpop.f32.mrf.mxu0 }
 0x206   :  { %10847 = vst [vmem:[#allocation45_spill] sm:$0xff] %v9421_v18  ;;  %v9424_v49 = vpop.eup %7597  ;;  %7623 = vpow2.f32 %v6252_v20  ;;  %v4409_v60 = vadd.f32 %v4408_v53, %v4407_v14 }
 0x207   :  { %10848 = vst [vmem:[#allocation46_spill] sm:$0xff] %v9424_v49  ;;  %v7600_v46 = vpop.eup %7599  ;;  %7625 = vrcp.f32 %v3265_v33  ;;  %v6255_v33 = vmul.f32 -1.442695, %v9278_v16  ;;  %v4410_v47 = vsel %vm940_vm0, %v4029_v8, 0.0 }
 0x208   :  { %v7602_v40 = vpop.eup %7601  ;;  %7627 = vpow2.f32 %v6256_v11  ;;  %v4030_v11 = vmul.f32 %v7600_v46, %v9316_v7 }
 0x209   :  { %v7604_v18 = vpop.eup %7603  ;;  %7629 = vpow2.f32 %v6254_v45  ;;  %v3266_v20 = vadd.f32 1.0, %v7602_v40  ;;  %v4411_v45 = vadd.f32 %v4410_v47, %v4409_v60  ;;  %v9447_v40 = vpop.f32.mrf.mxu1 }
 0x20a   :  { %v9435_v49 = vpop.eup %7605  ;;  %7631 = vpow2.f32 %v6182_v27  ;;  %v3268_v53 = vadd.f32 1.0, %v7604_v18  ;;  %10853 = vst [vmem:[#allocation51_spill] sm:$0xff] %v9447_v40  ;;  %v6185_v27 = vmul.f32 -1.442695, %v9412_v12  ;;  %v4412_v7 = vsel %vm940_vm0, %v4030_v11, 0.0 }
 0x20b   :  { %10850 = vst [vmem:[#allocation48_spill] sm:$0xff] %v9435_v49  ;;  %v9440_v15 = vpop.eup %7607  ;;  %7633 = vrcp.f32 %v3266_v20  ;;  %v4413_v18 = vadd.f32 %v4412_v7, %v4411_v45  ;;  %v6258_v7 = vmul.f32 -1.442695, %v9299_v23 }
 0x20c   :  { %10851 = vst [vmem:[#allocation49_spill] sm:$0xff] %v9440_v15  ;;  %v9445_v14 = vpop.eup %7609  ;;  %7635 = vpow2.f32 %v6250_v19  ;;  %v6183_v15 = vmul.f32 -1.442695, %v9427_v26  ;;  %v6253_v19 = vmul.f32 -1.442695, %v9241_v29  ;;  %v9465_v29 = vpop.f32.mrf.mxu0 }
 0x20d   :  { %10852 = vst [vmem:[#allocation50_spill] sm:$0xff] %v9445_v14  ;;  %v7612_v21 = vpop.eup %7611  ;;  %7637 = vpow2.f32 %v6184_v50  ;;  %v9456_v50 = vpop.f32.mrf.mxu1 }
 0x20e   :  { %v7614_v49 = vpop.eup %7613  ;;  %7639 = vpow2.f32 %v6257_v25  ;;  %10854 = vst [vmem:[#allocation52_spill] sm:$0xff] %v9456_v50  ;;  %v6251_v25 = vmul.f32 -1.442695, %v9247_v54 }
 0x20f   :  { %v7616_v8 = vpop.eup %7615  ;;  %7641 = vpow2.f32 %v6255_v33  ;;  %v6260_v33 = vmul.f32 -1.442695, %v9288_v4 }
 0x210   :  { %v7618_v46 = vpop.eup %7617  ;;  %v4031_v60 = vmul.f32 %v7616_v8, %v9343_v3  ;;  %7643 = vrcp.f32 %v3268_v53  ;;  %v4032_v3 = vmul.f32 %v7612_v21, %v9308_v24  ;;  %v3269_v53 = vadd.f32 1.0, %v7614_v49 }
 0x211   :  { %v9458_v20 = vpop.eup %7619  ;;  %v3267_v47 = vadd.f32 1.0, %v7618_v46  ;;  %7645 = vpow2.f32 %v6185_v27  ;;  %v9471_v46 = vpop.f32.mrf.mxu1  ;;  %v6186_v24 = vmul.f32 -1.442695, %v9451_v63 }
 0x212   :  { %10855 = vst [vmem:[#allocation53_spill] sm:$0xff] %v9458_v20  ;;  %v9461_v14 = vpop.eup %7621  ;;  %v4414_v11 = vsel %vm940_vm0, %v4031_v60, 0.0  ;;  %7647 = vpow2.f32 %v6183_v15  ;;  %10858 = vst [vmem:[#allocation56_spill] sm:$0xff] %v9471_v46  ;;  %v6261_v60 = vmul.f32 -1.442695, %v9313_v9  ;;  %v9474_v20 = vpop.f32.mrf.mxu0  ;;  %v4416_v21 = vsel %vm940_vm0, %v4032_v3, 0.0 }
 0x213   :  { %10856 = vst [vmem:[#allocation54_spill] sm:$0xff] %v9461_v14  ;;  %v9467_v45 = vpop.eup %7623  ;;  %7649 = vrcp.f32 %v3267_v47  ;;  %v4415_v27 = vadd.f32 %v4414_v11, %v4413_v18 }
 0x214   :  { %10857 = vst [vmem:[#allocation55_spill] sm:$0xff] %v9467_v45  ;;  %v7626_v8 = vpop.eup %7625  ;;  %7651 = vpow2.f32 %v6253_v19  ;;  %v9484_v3 = vpop.f32.mrf.mxu0 }
 0x215   :  { %v7628_v54 = vpop.eup %7627  ;;  %7653 = vpow2.f32 %v6251_v25  ;;  %v4033_v49 = vmul.f32 %v7626_v8, %v9327_v10  ;;  %v4417_v47 = vadd.f32 %v4416_v21, %v4415_v27  ;;  %v9479_v25 = vpop.f32.mrf.mxu1  ;;  %10861 = vst [vmem:[#allocation59_spill] sm:$0xff] %v9484_v3 }
 0x216   :  { %v7630_v15 = vpop.eup %7629  ;;  %7655 = vpow2.f32 %v6260_v33  ;;  %v3344_v18 = vadd.f32 1.0, %v7628_v54  ;;  %10859 = vst [vmem:[#allocation57_spill] sm:$0xff] %v9479_v25  ;;  %v6188_v33 = vmul.f32 -1.442695, %v9438_v55 }
 0x217   :  { %v7632_v45 = vpop.eup %7631  ;;  %7657 = vrcp.f32 %v3269_v53  ;;  %v3342_v4 = vadd.f32 1.0, %v7630_v15  ;;  %v4418_v53 = vsel %vm940_vm0, %v4033_v49, 0.0 }
 0x218   :  { %v7634_v19 = vpop.eup %7633  ;;  %7659 = vpow2.f32 %v6258_v7  ;;  %v3270_v11 = vadd.f32 1.0, %v7632_v45  ;;  %v6189_v45 = vmul.f32 -1.442695, %v9465_v29  ;;  %v6259_v7 = vmul.f32 -1.442695, %v9321_v57 }
 0x219   :  { %v9481_v14 = vpop.eup %7635  ;;  %7661 = vpow2.f32 %v6261_v60  ;;  %v4034_v54 = vmul.f32 %v7634_v19, %v9361_v37  ;;  %v4419_v27 = vadd.f32 %v4418_v53, %v4417_v47  ;;  %v9490_v60 = vpop.f32.mrf.mxu1 }
 0x21a   :  { %10860 = vst [vmem:[#allocation58_spill] sm:$0xff] %v9481_v14  ;;  %v7638_v9 = vpop.eup %7637  ;;  %7663 = vrcp.f32 %v3270_v11  ;;  %10862 = vst [vmem:[#allocation60_spill] sm:$0xff] %v9490_v60  ;;  %v9492_v14 = vpop.f32.mrf.mxu0 }
 0x21b   :  { %v7640_v10 = vpop.eup %7639  ;;  %7665 = vpow2.f32 %v6186_v24  ;;  %v3272_v15 = vadd.f32 1.0, %v7638_v9  ;;  %10863 = vst [vmem:[#allocation61_spill] sm:$0xff] %v9492_v14  ;;  %v4420_v37 = vsel %vm940_vm0, %v4034_v54, 0.0  ;;  %v6187_v24 = vmul.f32 -1.442695, %v9474_v20  ;;  %v9497_v57 = vpop.f32.mrf.mxu1 }
 0x21c   :  { %v7642_v8 = vpop.eup %7641  ;;  %7667 = vrcp.f32 %v3344_v18  ;;  %v6264_v18 = vmul.f32 -1.442695, %v9339_v35  ;;  %v4421_v47 = vadd.f32 %v4420_v37, %v4419_v27  ;;  %10864 = vst [vmem:[#allocation62_spill] sm:$0xff] %v9497_v57 }
 0x21d   :  { %v7644_v21 = vpop.eup %7643  ;;  %7669 = vpow2.f32 %v6188_v33  ;;  %v3345_v33 = vadd.f32 1.0, %v7640_v10  ;;  %v3343_v54 = vadd.f32 1.0, %v7642_v8  ;;  %v6262_v10 = vmul.f32 -1.442695, %v9348_v59 }
 0x21e   :  { %v7646_v11 = vpop.eup %7645  ;;  %7671 = vrcp.f32 %v3342_v4  ;;  %v6265_v8 = vmul.f32 -1.442695, %v9357_v58 }
 0x21f   :  { %v7648_v49 = vpop.eup %7647  ;;  %7673 = vpow2.f32 %v6189_v45  ;;  %v9504_v45 = vpop.f32.mrf.mxu0 }
 0x220   :  { %v7650_v19 = vpop.eup %7649  ;;  %7675 = vpow2.f32 %v6259_v7  ;;  %v3271_v53 = vadd.f32 1.0, %v7648_v49  ;;  %10867 = vst [vmem:[#allocation65_spill] sm:$0xff] %v9504_v45  ;;  %v4036_v7 = vmul.f32 %v7644_v21, %v9352_v5  ;;  %v3273_v49 = vadd.f32 1.0, %v7646_v11 }
 0x221   :  { %v9499_v9 = vpop.eup %7651  ;;  %v4035_v4 = vmul.f32 %v7650_v19, %v9379_v42  ;;  %7677 = vrcp.f32 %v3272_v15  ;;  %v9509_v42 = vpop.f32.mrf.mxu1 }
 0x222   :  { %10865 = vst [vmem:[#allocation63_spill] sm:$0xff] %v9499_v9  ;;  %v9502_v23 = vpop.eup %7653  ;;  %7679 = vrcp.f32 %v3271_v53  ;;  %10868 = vst [vmem:[#allocation66_spill] sm:$0xff] %v9509_v42  ;;  %v4424_v21 = vsel %vm940_vm0, %v4036_v7, 0.0 }
 0x223   :  { %10866 = vst [vmem:[#allocation64_spill] sm:$0xff] %v9502_v23  ;;  %v7656_v28 = vpop.eup %7655  ;;  %v4422_v27 = vsel %vm940_vm0, %v4035_v4, 0.0  ;;  %7681 = vpow2.f32 %v6187_v24  ;;  %v9512_v23 = vpop.f32.mrf.mxu0 }
 0x224   :  { %v7658_v37 = vpop.eup %7657  ;;  %7683 = vpow2.f32 %v6264_v18  ;;  %v4423_v9 = vadd.f32 %v4422_v27, %v4421_v47  ;;  %v3348_v53 = vadd.f32 1.0, %v7656_v28  ;;  %10869 = vst [vmem:[#allocation67_spill] sm:$0xff] %v9512_v23  ;;  %v6263_v18 = vmul.f32 -1.442695, %v9365_v43  ;;  %v9517_v4 = vpop.f32.mrf.mxu1 }
 0x225   :  { %v7660_v15 = vpop.eup %7659  ;;  %7685 = vrcp.f32 %v3345_v33  ;;  %v4037_v11 = vmul.f32 %v7658_v37, %v9371_v41  ;;  %10870 = vst [vmem:[#allocation68_spill] sm:$0xff] %v9517_v4  ;;  %v9521_v35 = vpop.f32.mrf.mxu0  ;;  %v6268_v41 = vmul.f32 -1.442695, %v9376_v51 }
 0x226   :  { %v7662_v19 = vpop.eup %7661  ;;  %7687 = vrcp.f32 %v3343_v54  ;;  %v4425_v47 = vadd.f32 %v4424_v21, %v4423_v9  ;;  %v3346_v27 = vadd.f32 1.0, %v7660_v15  ;;  %10871 = vst [vmem:[#allocation69_spill] sm:$0xff] %v9521_v35 }
 0x227   :  { %v7664_v5 = vpop.eup %7663  ;;  %7689 = vrcp.f32 %v3273_v49  ;;  %v3349_v58 = vadd.f32 1.0, %v7662_v19  ;;  %v4426_v49 = vsel %vm940_vm0, %v4037_v11, 0.0  ;;  %v9531_v43 = vpop.f32.mrf.mxu0  ;;  %v6269_v11 = vmul.f32 -1.442695, %v9396_v34 }
 0x228   :  { %v7666_v24 = vpop.eup %7665  ;;  %7691 = vpow2.f32 %v6262_v10  ;;  %v4038_v9 = vmul.f32 %v7664_v5, %v9399_v13  ;;  %v6266_v10 = vmul.f32 -1.442695, %v9385_v39  ;;  %v4427_v15 = vadd.f32 %v4426_v49, %v4425_v47 }
 0x229   :  { %v9519_v33 = vpop.eup %7667  ;;  %7693 = vpow2.f32 %v6265_v8  ;;  %v3274_v28 = vadd.f32 1.0, %v7666_v24  ;;  %v9529_v8 = vpop.f32.mrf.mxu1 }
 0x22a   :  { %v7670_v54 = vpop.eup %7669  ;;  %7695 = vrcp.f32 %v3348_v53  ;;  %10872 = vst [vmem:[#allocation70_spill] sm:$0xff] %v9529_v8  ;;  %v4428_v13 = vsel %vm940_vm0, %v4038_v9, 0.0 }
 0x22b   :  { %v9523_v7 = vpop.eup %7671  ;;  %7697 = vrcp.f32 %v3274_v28  ;;  %v3276_v19 = vadd.f32 1.0, %v7670_v54  ;;  %v9536_v28 = vpop.f32.mrf.mxu1  ;;  %v6267_v54 = vmul.f32 -1.442695, %v9403_v1 }
 0x22c   :  { %v7674_v37 = vpop.eup %7673  ;;  %7699 = vpow2.f32 %v6263_v18  ;;  %v4429_v18 = vadd.f32 %v4428_v13, %v4427_v15  ;;  %10873 = vst [vmem:[#allocation71_spill] sm:$0xff] %v9536_v28 }
 0x22d   :  { %v7676_v53 = vpop.eup %7675  ;;  %7701 = vrcp.f32 %v3346_v27  ;;  %v3277_v24 = vadd.f32 1.0, %v7674_v37  ;;  %v9543_v37 = vpop.f32.mrf.mxu0 }
 0x22e   :  { %v7678_v21 = vpop.eup %7677  ;;  %7703 = vrcp.f32 %v3349_v58  ;;  %10874 = vst [vmem:[#allocation72_spill] sm:$0xff] %v9543_v37  ;;  %v3347_v15 = vadd.f32 1.0, %v7676_v53 }
 0x22f   :  { %v7680_v51 = vpop.eup %7679  ;;  %7705 = vpow2.f32 %v6268_v41  ;;  %v6272_v41 = vmul.f32 -1.442695, %v9419_v48  ;;  %v6270_v48 = vmul.f32 -1.442695, %v9432_v2  ;;  %v9552_v1 = vpop.f32.mrf.mxu0 }
 0x230   :  { %v7682_v5 = vpop.eup %7681  ;;  %7707 = vpow2.f32 %v6266_v10  ;;  %v4039_v47 = vmul.f32 %v7680_v51, %v9427_v26  ;;  %v4040_v51 = vmul.f32 %v7678_v21, %v9390_v36 }
 0x231   :  { %v7684_v27 = vpop.eup %7683  ;;  %7709 = vrcp.f32 %v3276_v19  ;;  %v3275_v58 = vadd.f32 1.0, %v7682_v5  ;;  %v9548_v5 = vpop.f32.mrf.mxu1 }
 0x232   :  { %v9539_v49 = vpop.eup %7685  ;;  %v4430_v9 = vsel %vm940_vm0, %v4039_v47, 0.0  ;;  %7711 = vrcp.f32 %v3277_v24  ;;  %v3352_v13 = vadd.f32 1.0, %v7684_v27  ;;  %10875 = vst [vmem:[#allocation73_spill] sm:$0xff] %v9548_v5  ;;  %v6273_v24 = vmul.f32 -1.442695, %v9447_v40  ;;  %v9564_v2 = vpop.f32.mrf.mxu0 }
 0x233   :  { %v9545_v10 = vpop.eup %7687  ;;  %7713 = vrcp.f32 %v3275_v58  ;;  %v4431_v19 = vadd.f32 %v4430_v9, %v4429_v18  ;;  %v4432_v36 = vsel %vm940_vm0, %v4040_v51, 0.0  ;;  %v9559_v58 = vpop.f32.mrf.mxu1  ;;  %10877 = vst [vmem:[#allocation75_spill] sm:$0xff] %v9564_v2 }
 0x234   :  { %v7690_v26 = vpop.eup %7689  ;;  %7715 = vpow2.f32 %v6269_v11  ;;  %v6271_v11 = vmul.f32 -1.442695, %v9456_v50  ;;  %10876 = vst [vmem:[#allocation74_spill] sm:$0xff] %v9559_v58  ;;  %v6192_v50 = vmul.f32 -1.442695, %v9484_v3 }
 0x235   :  { %v7692_v34 = vpop.eup %7691  ;;  %7717 = vpow2.f32 %v6267_v54  ;;  %v4041_v21 = vmul.f32 %v7690_v26, %v9412_v12  ;;  %v4433_v54 = vadd.f32 %v4432_v36, %v4431_v19  ;;  %v6274_v26 = vmul.f32 -1.442695, %v9479_v25 }
 0x236   :  { %v7694_v47 = vpop.eup %7693  ;;  %7719 = vpow2.f32 %v6272_v41  ;;  %v3350_v27 = vadd.f32 1.0, %v7692_v34  ;;  %v6277_v36 = vmul.f32 -1.442695, %v9490_v60  ;;  %v6190_v25 = vmul.f32 -1.442695, %v9492_v14 }
 0x237   :  { %v9554_v53 = vpop.eup %7695  ;;  %7721 = vrcp.f32 %v3347_v15  ;;  %v3353_v9 = vadd.f32 1.0, %v7694_v47  ;;  %v6276_v15 = vmul.f32 -1.442695, %v9471_v46  ;;  %v4434_v12 = vsel %vm940_vm0, %v4041_v21, 0.0  ;;  %v9571_v47 = vpop.f32.mrf.mxu1 }
 0x238   :  { %v7698_v18 = vpop.eup %7697  ;;  %7723 = vrcp.f32 %v3352_v13  ;;  %10878 = vst [vmem:[#allocation76_spill] sm:$0xff] %v9571_v47  ;;  %v9575_v21 = vpop.f32.mrf.mxu0 }
 0x239   :  { %v7700_v41 = vpop.eup %7699  ;;  %7725 = vpow2.f32 %v6270_v48  ;;  %v4042_v34 = vmul.f32 %v7698_v18, %v9451_v63  ;;  %v4435_v48 = vadd.f32 %v4434_v12, %v4433_v54  ;;  %10879 = vst [vmem:[#allocation77_spill] sm:$0xff] %v9575_v21  ;;  %v6275_v18 = vmul.f32 -1.442695, %v9497_v57  ;;  %v9579_v12 = vpop.f32.mrf.mxu1 }
 0x23a   :  { %v9561_v40 = vpop.eup %7701  ;;  %7727 = vpow2.f32 %v6273_v24  ;;  %v3351_v19 = vadd.f32 1.0, %v7700_v41  ;;  %10880 = vst [vmem:[#allocation78_spill] sm:$0xff] %v9579_v12 }
 0x23b   :  { %v9566_v51 = vpop.eup %7703  ;;  %7729 = vpow2.f32 %v6271_v11  ;;  %v4436_v63 = vsel %vm940_vm0, %v4042_v34, 0.0  ;;  %v9584_v34 = vpop.f32.mrf.mxu0 }
 0x23c   :  { %v7706_v13 = vpop.eup %7705  ;;  %7731 = vrcp.f32 %v3350_v27  ;;  %v4437_v41 = vadd.f32 %v4436_v63, %v4435_v48  ;;  %10881 = vst [vmem:[#allocation79_spill] sm:$0xff] %v9584_v34  ;;  %v6280_v48 = vmul.f32 -1.442695, %v9509_v42 }
 0x23d   :  { %v7708_v24 = vpop.eup %7707  ;;  %7733 = vrcp.f32 %v3353_v9  ;;  %v3356_v54 = vadd.f32 1.0, %v7706_v13 }
 0x23e   :  { %v7710_v46 = vpop.eup %7709  ;;  %7735 = vpow2.f32 %v6276_v15  ;;  %v3354_v3 = vadd.f32 1.0, %v7708_v24 }
 0x23f   :  { %v7712_v11 = vpop.eup %7711  ;;  %7737 = vpow2.f32 %v6274_v26  ;;  %v4044_v60 = vmul.f32 %v7710_v46, %v9438_v55  ;;  %v9591_v46 = vpop.f32.mrf.mxu1 }
 0x240   :  { %v7714_v27 = vpop.eup %7713  ;;  %7739 = vrcp.f32 %v3351_v19  ;;  %v4045_v19 = vmul.f32 %v7712_v11, %v9465_v29 }
 0x241   :  { %v7716_v9 = vpop.eup %7715  ;;  %v4043_v15 = vmul.f32 %v7714_v27, %v9474_v20  ;;  %7741 = vpow2.f32 %v6277_v36  ;;  %v4440_v24 = vsel %vm940_vm0, %v4044_v60, 0.0 }
 0x242   :  { %v7718_v39 = vpop.eup %7717  ;;  %7743 = vpow2.f32 %v6192_v50  ;;  %v3357_v55 = vadd.f32 1.0, %v7716_v9  ;;  %v4442_v42 = vsel %vm940_vm0, %v4045_v19, 0.0 }
 0x243   :  { %v7720_v26 = vpop.eup %7719  ;;  %v4438_v13 = vsel %vm940_vm0, %v4043_v15, 0.0  ;;  %7745 = vpow2.f32 %v6275_v18  ;;  %v3355_v50 = vadd.f32 1.0, %v7718_v39  ;;  %v9596_v18 = vpop.f32.mrf.mxu0  ;;  %v6278_v39 = vmul.f32 -1.442695, %v9517_v4 }
 0x244   :  { %v9589_v63 = vpop.eup %7721  ;;  %7747 = vrcp.f32 %v3356_v54  ;;  %v4439_v20 = vadd.f32 %v4438_v13, %v4437_v41  ;;  %v3360_v29 = vadd.f32 1.0, %v7720_v26  ;;  %v6193_v54 = vmul.f32 -1.442695, %v9504_v45  ;;  %v9601_v13 = vpop.f32.mrf.mxu1 }
 0x245   :  { %v9593_v36 = vpop.eup %7723  ;;  %7749 = vpow2.f32 %v6190_v25  ;;  %v9607_v19 = vpop.f32.mrf.mxu0 }
 0x246   :  { %v7726_v27 = vpop.eup %7725  ;;  %7751 = vrcp.f32 %v3354_v3  ;;  %v4441_v11 = vadd.f32 %v4440_v24, %v4439_v20  ;;  %10883 = vst [vmem:[#allocation81_spill] sm:$0xff] %v9607_v19  ;;  %v9610_v4 = vpop.f32.mrf.mxu1 }
 0x247   :  { %v7728_v15 = vpop.eup %7727  ;;  %7753 = vpow2.f32 %v6280_v48  ;;  %v3358_v3 = vadd.f32 1.0, %v7726_v27  ;;  %v9615_v45 = vpop.f32.mrf.mxu0 }
 0x248   :  { %v7730_v41 = vpop.eup %7729  ;;  %7755 = vrcp.f32 %v3357_v55  ;;  %v4443_v9 = vadd.f32 %v4442_v42, %v4441_v11  ;;  %v3361_v26 = vadd.f32 1.0, %v7728_v15  ;;  %v6191_v11 = vmul.f32 -1.442695, %v9512_v23  ;;  %10885 = vst [vmem:[#allocation83_spill] sm:$0xff] %v9615_v45 }
 0x249   :  { %v9603_v25 = vpop.eup %7731  ;;  %7757 = vrcp.f32 %v3355_v50  ;;  %v3359_v24 = vadd.f32 1.0, %v7730_v41  ;;  %v6281_v50 = vmul.f32 -1.442695, %v9529_v8  ;;  %v9622_v14 = vpop.f32.mrf.mxu0 }
 0x24a   :  { %v9605_v60 = vpop.eup %7733  ;;  %7759 = vrcp.f32 %v3360_v29  ;;  %v4444_v20 = vrot.slane %v4443_v9, 4  ;;  %10887 = vst [vmem:[#allocation85_spill] sm:$0xff] %v9622_v14 }
 0x24b   :  { %10882 = vst [vmem:[#allocation80_spill] sm:$0xff] %v9605_v60  ;;  %v7736_v48 = vpop.eup %7735  ;;  %7761 = vpow2.f32 %v6193_v54  ;;  %v9618_v60 = vpop.f32.mrf.mxu1 }
 0x24c   :  { %v7738_v55 = vpop.eup %7737  ;;  %v4445_v42 = vadd.f32 %v4444_v20, %v4443_v9  ;;  %7763 = vpow2.f32 %v6278_v39  ;;  %v3364_v29 = vadd.f32 1.0, %v7736_v48  ;;  %v6196_v20 = vmul.f32 -1.442695, %v9521_v35 }
 0x24d   :  { %v9612_v57 = vpop.eup %7739  ;;  %7765 = vrcp.f32 %v3358_v3  ;;  %v3362_v54 = vadd.f32 1.0, %v7738_v55 }
 0x24e   :  { %10884 = vst [vmem:[#allocation82_spill] sm:$0xff] %v9612_v57  ;;  %v7742_v27 = vpop.eup %7741  ;;  %7767 = vrcp.f32 %v3361_v26  ;;  %v4446_v15 = vrot.slane %v4445_v42, 2 }
 0x24f   :  { %v7744_v41 = vpop.eup %7743  ;;  %7769 = vrcp.f32 %v3359_v24  ;;  %v3365_v3 = vadd.f32 1.0, %v7742_v27 }
 0x250   :  { %v7746_v9 = vpop.eup %7745  ;;  %v4447_v39 = vadd.f32 %v4446_v15, %v4445_v42  ;;  %7771 = vpow2.f32 %v6191_v11  ;;  %v3280_v48 = vadd.f32 1.0, %v7744_v41  ;;  %v6279_v11 = vmul.f32 -1.442695, %v9536_v28  ;;  %v9627_v15 = vpop.f32.mrf.mxu1 }
 0x251   :  { %v9620_v57 = vpop.eup %7747  ;;  %7773 = vpow2.f32 %v6281_v50  ;;  %v3363_v24 = vadd.f32 1.0, %v7746_v9  ;;  %v6194_v41 = vmul.f32 -1.442695, %v9531_v43 }
 0x252   :  { %10886 = vst [vmem:[#allocation84_spill] sm:$0xff] %v9620_v57  ;;  %v7750_v8 = vpop.eup %7749  ;;  %7775 = vrcp.f32 %v3364_v29  ;;  %v4448_v26 = vrot.slane %v4447_v39, 1  ;;  %v9634_v57 = vpop.f32.mrf.mxu0 }
 0x253   :  { %v9624_v23 = vpop.eup %7751  ;;  %7777 = vrcp.f32 %v3362_v54  ;;  %v3278_v50 = vadd.f32 1.0, %v7750_v8  ;;  %10890 = vst [vmem:[#allocation88_spill] sm:$0xff] %v9634_v57 }
 0x254   :  { %v7754_v55 = vpop.eup %7753  ;;  %v4449_v42 = vadd.f32 %v4448_v26, %v4447_v39  ;;  %7779 = vpow2.f32 %v6196_v20  ;;  %v6197_v26 = vmul.f32 -1.442695, %v9543_v37 }
 0x255   :  { %v9629_v35 = vpop.eup %7755  ;;  %7781 = vrcp.f32 %v3365_v3  ;;  %v3368_v9 = vadd.f32 1.0, %v7754_v55  ;;  %v9639_v3 = vpop.f32.mrf.mxu1 }
 0x256   :  { %10888 = vst [vmem:[#allocation86_spill] sm:$0xff] %v9629_v35  ;;  %v9631_v27 = vpop.eup %7757  ;;  %v4729_v29 = vpack.c.bf16 %v4449_v42, %v4449_v42  ;;  %7783 = vrcp.f32 %v3280_v48  ;;  %v6284_v48 = vmul.f32 -1.442695, %v9548_v5  ;;  %v9648_v55 = vpop.f32.mrf.mxu0 }
 0x257   :  { %10889 = vst [vmem:[#allocation87_spill] sm:$0xff] %v9631_v27  ;;  %v9636_v54 = vpop.eup %7759  ;;  %7785 = vrcp.f32 %v3363_v24  ;;  %v6195_v24 = vmul.f32 -1.442695, %v9552_v1  ;;  %10894 = vst [vmem:[#allocation92_spill] sm:$0xff] %v9648_v55  ;;  %v4086_v27 = vmul.f32 %v9290_v52, %v9067_v22 }
 0x258   :  { %10891 = vst [vmem:[#allocation89_spill] sm:$0xff] %v9636_v54  ;;  %v7762_v39 = vpop.eup %7761  ;;  %v4761_v20 = vunpack.c.l.b16 %v4729_v29  ;;  %7787 = vpow2.f32 %v6279_v11 }
 0x259   :  { %v7764_v8 = vpop.eup %7763  ;;  %7789 = vrcp.f32 %v3278_v50  ;;  %v3281_v11 = vadd.f32 1.0, %v7762_v39  ;;  %v9654_v50 = vpop.f32.mrf.mxu1 }
 0x25a   :  { %v9642_v42 = vpop.eup %7765  ;;  %v9645_v28 = vsel %vm4770_vm3, %v4761_v20, %v9306_v61  ;;  %7791 = vpow2.f32 %v6194_v41  ;;  %v3366_v35 = vadd.f32 1.0, %v7764_v8  ;;  %v6200_v61 = vmul.f32 -1.442695, %v9564_v2 }
 0x25b   :  { %10892 = vst [vmem:[#allocation90_spill] sm:$0xff] %v9642_v42  ;;  %10893 = vst [vmem:[#allocation91_spill] sm:$0xff] %v9645_v28  ;;  %v9650_v29 = vpop.eup %7767  ;;  %7793 = vrcp.f32 %v3368_v9  ;;  %v6198_v41 = vmul.f32 -1.442695, %v9575_v21  ;;  %v9658_v28 = vpop.f32.mrf.mxu0  ;;  %v6282_v9 = vmul.f32 -1.442695, %v9559_v58 }
 0x25c   :  { %10895 = vst [vmem:[#allocation93_spill] sm:$0xff] %v9650_v29  ;;  %v9652_v54 = vpop.eup %7769  ;;  %7795 = vpow2.f32 %v6197_v26  ;;  %10897 = vst [vmem:[#allocation95_spill] sm:$0xff] %v9658_v28  ;;  %v9665_v8 = vpop.f32.mrf.mxu1 }
 0x25d   :  { %10896 = vst [vmem:[#allocation94_spill] sm:$0xff] %v9652_v54  ;;  %v7772_v5 = vpop.eup %7771  ;;  %7797 = vpow2.f32 %v6284_v48  ;;  %v9670_v2 = vpop.f32.mrf.mxu0 }
 0x25e   :  { %v7774_v20 = vpop.eup %7773  ;;  %7799 = vpow2.f32 %v6195_v24  ;;  %v3279_v26 = vadd.f32 1.0, %v7772_v5  ;;  %v6285_v24 = vmul.f32 -1.442695, %v9571_v47  ;;  %10901 = vst [vmem:[#allocation99_spill] sm:$0xff] %v9670_v2  ;;  %v9677_v5 = vpop.f32.mrf.mxu1 }
 0x25f   :  { %v9660_v42 = vpop.eup %7775  ;;  %7801 = vrcp.f32 %v3281_v11  ;;  %v3369_v54 = vadd.f32 1.0, %v7774_v20  ;;  %v6286_v11 = vmul.f32 -1.442695, %v9601_v13  ;;  %10903 = vst [vmem:[#allocation101_spill] sm:$0xff] %v9677_v5  ;;  %v9683_v47 = vpop.f32.mrf.mxu0 }
 0x260   :  { %10898 = vst [vmem:[#allocation96_spill] sm:$0xff] %v9660_v42  ;;  %v9663_v39 = vpop.eup %7777  ;;  %7803 = vrcp.f32 %v3366_v35  ;;  %10904 = vst [vmem:[#allocation102_spill] sm:$0xff] %v9683_v47  ;;  %v9694_v21 = vpop.f32.mrf.mxu1 }
 0x261   :  { %10899 = vst [vmem:[#allocation97_spill] sm:$0xff] %v9663_v39  ;;  %v7780_v48 = vpop.eup %7779  ;;  %7805 = vpow2.f32 %v6200_v61  ;;  %v6287_v61 = vmul.f32 -1.442695, %v9618_v60  ;;  %v4110_v39 = vmul.f32 %v9523_v7, %v9264_v30  ;;  %v6201_v30 = vmul.f32 -1.442695, %v9584_v34 }
 0x262   :  { %v9667_v29 = vpop.eup %7781  ;;  %7807 = vpow2.f32 %v6198_v41  ;;  %v3284_v35 = vadd.f32 1.0, %v7780_v48  ;;  %v6288_v41 = vmul.f32 -1.442695, %v9591_v46  ;;  %v6283_v48 = vmul.f32 -1.442695, %v9579_v12 }
 0x263   :  { %10900 = vst [vmem:[#allocation98_spill] sm:$0xff] %v9667_v29  ;;  %v9672_v42 = vpop.eup %7783  ;;  %7809 = vpow2.f32 %v6282_v9  ;;  %v9718_v12 = vsel %vm940_vm0, %v4086_v27, 0.0  ;;  %v4113_v27 = vmul.f32 %v9539_v49, %v9270_v17  ;;  %v10918_v49 = vld [vmem:[#allocation6_spill] sm:$0xff] }
 0x264   :  { %v9675_v58 = vpop.eup %7785  ;;  %7811 = vrcp.f32 %v3279_v26  ;;  %v4111_v26 = vmul.f32 %v9545_v10, %v9278_v16  ;;  %v6199_v10 = vmul.f32 -1.442695, %v9596_v18  ;;  %10911 = vst [vmem:[#allocation109_spill] sm:$0xff] %v9718_v12 }
 0x265   :  { %10902 = vst [vmem:[#allocation100_spill] sm:$0xff] %v9675_v58  ;;  %v7788_v20 = vpop.eup %7787  ;;  %7813 = vrcp.f32 %v3369_v54  ;;  %v4088_v58 = vmul.f32 %v9284_v6, %v9056_v0  ;;  %v4112_v6 = vmul.f32 %v9519_v33, %v9255_v31  ;;  %v4089_v31 = vmul.f32 %v9301_v38, %v9079_v44 }
 0x266   :  { %v9680_v29 = vpop.eup %7789  ;;  %7815 = vpow2.f32 %v6285_v24  ;;  %v3367_v24 = vadd.f32 1.0, %v7788_v20  ;;  %v4589_v20 = vsel %vm940_vm0, %v4111_v26, 0.0  ;;  %v6289_v33 = vmul.f32 -1.442695, %v9610_v4 }
 0x267   :  { %v7792_v9 = vpop.eup %7791  ;;  %7817 = vpow2.f32 %v6286_v11  ;;  %v9702_v11 = vpop.f32.mrf.mxu0  ;;  %v9711_v52 = vsel %vm940_vm0, %v4088_v58, 0.0  ;;  %v4087_v58 = vmul.f32 %v9323_v62, %v9089_v32  ;;  %v6204_v44 = vmul.f32 -1.442695, %v9607_v19  ;;  %v10915_v32 = vld [vmem:[#allocation5_spill] sm:$0xff]  ;;  %v10916_v62 = vld [vmem:[#allocation30_spill] sm:$0xff] }
 0x268   :  { %v9690_v54 = vpop.eup %7793  ;;  %7819 = vrcp.f32 %v3284_v35  ;;  %v3282_v7 = vadd.f32 1.0, %v7792_v9  ;;  %10907 = vst [vmem:[#allocation105_spill] sm:$0xff] %v9702_v11  ;;  %v4588_v35 = vsel %vm940_vm0, %v4110_v39, 0.0  ;;  %10908 = vst [vmem:[#allocation106_spill] sm:$0xff] %v9711_v52  ;;  %v4591_v52 = vsel %vm940_vm0, %v4112_v6, 0.0 }
 0x269   :  { %10905 = vst [vmem:[#allocation103_spill] sm:$0xff] %v9690_v54  ;;  %v7796_v37 = vpop.eup %7795  ;;  %7821 = vpow2.f32 %v6287_v61  ;;  %v4590_v26 = vadd.f32 %v4589_v20, %v4588_v35  ;;  %v9743_v17 = vsel %vm940_vm0, %v4089_v31, 0.0  ;;  %v4593_v31 = vsel %vm940_vm0, %v4113_v27, 0.0  ;;  %v10930_v27 = vld [vmem:[#allocation34_spill] sm:$0xff] }
 0x26a   :  { %v9699_v16 = vpop.eup %7797  ;;  %7823 = vpow2.f32 %v6288_v41  ;;  %v3285_v61 = vadd.f32 1.0, %v7796_v37  ;;  %v9713_v41 = vpop.f32.mrf.mxu1 }
 0x26b   :  { %10906 = vst [vmem:[#allocation104_spill] sm:$0xff] %v9699_v16  ;;  %v7800_v0 = vpop.eup %7799  ;;  %7825 = vpow2.f32 %v6283_v48  ;;  %10909 = vst [vmem:[#allocation107_spill] sm:$0xff] %v9713_v41  ;;  %v9725_v48 = vpop.f32.mrf.mxu0 }
 0x26c   :  { %v9708_v22 = vpop.eup %7801  ;;  %7827 = vrcp.f32 %v3367_v24  ;;  %v3283_v37 = vadd.f32 1.0, %v7800_v0  ;;  %10912 = vst [vmem:[#allocation110_spill] sm:$0xff] %v9725_v48  ;;  %v6290_v0 = vmul.f32 -1.442695, %v9639_v3  ;;  %v9738_v35 = vpop.f32.mrf.mxu1 }
 0x26d   :  { %v9715_v9 = vpop.eup %7803  ;;  %7829 = vpow2.f32 %v6201_v30  ;;  %v10914_v30 = vld [vmem:[#allocation28_spill] sm:$0xff] }
 0x26e   :  { %10910 = vst [vmem:[#allocation108_spill] sm:$0xff] %v9715_v9  ;;  %v7806_v39 = vpop.eup %7805  ;;  %7831 = vrcp.f32 %v3282_v7  ;;  %v4092_v54 = vmul.f32 %v10914_v30, %v9095_v56  ;;  %v4090_v7 = vmul.f32 %v10916_v62, %v10915_v32  ;;  %10917 = vst [vmem:[#allocation28_spill] sm:$0xff] %v9743_v17  ;;  %v9750_v56 = vsel %vm940_vm0, %v4087_v58, 0.0  ;;  %v9752_v32 = vpop.f32.mrf.mxu0  ;;  %v10924_v17 = vld [vmem:[#allocation25_spill] sm:$0xff]  ;;  %v10937_v9 = vld [vmem:[#allocation38_spill] sm:$0xff] }
 0x26f   :  { %v7808_v24 = vpop.eup %7807  ;;  %7833 = vpow2.f32 %v6199_v10  ;;  %v10919_v10 = vld [vmem:[#allocation33_spill] sm:$0xff]  ;;  %v3288_v12 = vadd.f32 1.0, %v7806_v39  ;;  %10921 = vst [vmem:[#allocation30_spill] sm:$0xff] %v9750_v56  ;;  %10922 = vst [vmem:[#allocation6_spill] sm:$0xff] %v9752_v32  ;;  %v6292_v58 = vmul.f32 -1.442695, %v9627_v15 }
 0x270   :  { %v9731_v38 = vpop.eup %7809  ;;  %7835 = vrcp.f32 %v3285_v61  ;;  %v4093_v20 = vmul.f32 %v10919_v10, %v10918_v49  ;;  %v4592_v61 = vadd.f32 %v4591_v52, %v4590_v26  ;;  %v3286_v30 = vadd.f32 1.0, %v7808_v24  ;;  %v9767_v26 = vpop.f32.mrf.mxu1  ;;  %v10931_v10 = vld [vmem:[#allocation8_spill] sm:$0xff] }
 0x271   :  { %10913 = vst [vmem:[#allocation111_spill] sm:$0xff] %v9731_v38  ;;  %v9740_v6 = vpop.eup %7811  ;;  %7837 = vpow2.f32 %v6289_v33  ;;  %v4114_v38 = vmul.f32 %v9561_v40, %v10924_v17  ;;  %v6202_v33 = vmul.f32 -1.442695, %v9615_v45  ;;  %v9761_v49 = vsel %vm940_vm0, %v4092_v54, 0.0  ;;  %10927 = vst [vmem:[#allocation113_spill] sm:$0xff] %v9767_v26  ;;  %v10929_v40 = vld [vmem:[#allocation7_spill] sm:$0xff] }
 0x272   :  { %v9747_v16 = vpop.eup %7813  ;;  %7839 = vrcp.f32 %v3283_v37  ;;  %10925 = vst [vmem:[#allocation25_spill] sm:$0xff] %v9761_v49  ;;  %v9764_v52 = vsel %vm940_vm0, %v4090_v7, 0.0  ;;  %v9772_v24 = vsel %vm940_vm0, %v4093_v20, 0.0  ;;  %v6291_v54 = vmul.f32 -1.442695, %v9665_v8  ;;  %v10932_v7 = vld [vmem:[#allocation37_spill] sm:$0xff] }
 0x273   :  { %10920 = vst [vmem:[#allocation5_spill] sm:$0xff] %v9747_v16  ;;  %v9754_v62 = vpop.eup %7815  ;;  %7841 = vpow2.f32 %v6204_v44  ;;  %10926 = vst [vmem:[#allocation112_spill] sm:$0xff] %v9764_v52  ;;  %v4091_v44 = vmul.f32 %v10930_v27, %v10929_v40  ;;  %v4096_v49 = vmul.f32 %v10932_v7, %v10931_v10  ;;  %v4594_v52 = vadd.f32 %v4593_v31, %v4592_v61  ;;  %v9780_v16 = vpop.f32.mrf.mxu0  ;;  %v10936_v27 = vld [vmem:[#allocation9_spill] sm:$0xff]  ;;  %v10938_v10 = vld [vmem:[#allocation10_spill] sm:$0xff] }
 0x274   :  { %10923 = vst [vmem:[#allocation33_spill] sm:$0xff] %v9754_v62  ;;  %v7818_v39 = vpop.eup %7817  ;;  %7843 = vpow2.f32 %v6290_v0  ;;  %10928 = vst [vmem:[#allocation114_spill] sm:$0xff] %v9772_v24  ;;  %v6205_v0 = vmul.f32 -1.442695, %v9622_v14  ;;  %v4595_v20 = vsel %vm940_vm0, %v4114_v38, 0.0  ;;  %v10934_v24 = vld [vmem:[#allocation27_spill] sm:$0xff]  ;;  %v4094_v19 = vmul.f32 %v10937_v9, %v10936_v27  ;;  %v9792_v7 = vpop.f32.mrf.mxu1 }
 0x275   :  { %v9769_v37 = vpop.eup %7819  ;;  %7845 = vrcp.f32 %v3288_v12  ;;  %10933 = vst [vmem:[#allocation7_spill] sm:$0xff] %v9780_v16  ;;  %v4115_v56 = vmul.f32 %v9589_v63, %v10934_v24  ;;  %v3374_v40 = vadd.f32 1.0, %v7818_v39  ;;  %v10939_v61 = vld [vmem:[#allocation41_spill] sm:$0xff]  ;;  %v6203_v31 = vmul.f32 -1.442695, %v9634_v57  ;;  %10940 = vst [vmem:[#allocation8_spill] sm:$0xff] %v9792_v7 }
 0x276   :  { %v7822_v17 = vpop.eup %7821  ;;  %7847 = vrcp.f32 %v3286_v30  ;;  %v4097_v30 = vmul.f32 %v10939_v61, %v10938_v10  ;;  %v9797_v38 = vsel %vm940_vm0, %v4091_v44, 0.0  ;;  %v10943_v63 = vld [vmem:[#allocation11_spill] sm:$0xff]  ;;  %v9802_v9 = vsel %vm940_vm0, %v4096_v49, 0.0  ;;  %v9804_v10 = vpop.f32.mrf.mxu0  ;;  %v10963_v45 = vld [vmem:[#allocation82_spill] sm:$0xff] }
 0x277   :  { %v7824_v62 = vpop.eup %7823  ;;  %7849 = vpow2.f32 %v6202_v33  ;;  %10942 = vst [vmem:[#allocation27_spill] sm:$0xff] %v9797_v38  ;;  %v10944_v33 = vld [vmem:[#allocation42_spill] sm:$0xff]  ;;  %v3375_v24 = vadd.f32 1.0, %v7822_v17  ;;  %10945 = vst [vmem:[#allocation9_spill] sm:$0xff] %v9802_v9  ;;  %v4596_v27 = vadd.f32 %v4595_v20, %v4594_v52  ;;  %v4597_v38 = vsel %vm940_vm0, %v4115_v56, 0.0  ;;  %v9819_v52 = vpop.f32.mrf.mxu1 }
 0x278   :  { %v9785_v12 = vpop.eup %7825  ;;  %7851 = vpow2.f32 %v6292_v58  ;;  %v4095_v39 = vmul.f32 %v10944_v33, %v10943_v63  ;;  %v3376_v58 = vadd.f32 1.0, %v7824_v62  ;;  %10946 = vst [vmem:[#allocation38_spill] sm:$0xff] %v9804_v10  ;;  %v6293_v17 = vmul.f32 -1.442695, %v9654_v50  ;;  %10950 = vst [vmem:[#allocation11_spill] sm:$0xff] %v9819_v52 }
 0x279   :  { %10935 = vst [vmem:[#allocation34_spill] sm:$0xff] %v9785_v12  ;;  %v9794_v14 = vpop.eup %7827  ;;  %7853 = vpow2.f32 %v6291_v54  ;;  %v9813_v63 = vsel %vm940_vm0, %v4094_v19, 0.0  ;;  %v9816_v49 = vsel %vm940_vm0, %v4097_v30, 0.0  ;;  %v6208_v62 = vmul.f32 -1.442695, %v9648_v55 }
 0x27a   :  { %10941 = vst [vmem:[#allocation37_spill] sm:$0xff] %v9794_v14  ;;  %v7830_v12 = vpop.eup %7829  ;;  %7855 = vpow2.f32 %v6205_v0  ;;  %v10947_v14 = vld [vmem:[#allocation24_spill] sm:$0xff]  ;;  %10948 = vst [vmem:[#allocation10_spill] sm:$0xff] %v9813_v63  ;;  %v6206_v56 = vmul.f32 -1.442695, %v9658_v28  ;;  %v4598_v19 = vadd.f32 %v4597_v38, %v4596_v27 }
 0x27b   :  { %v9806_v61 = vpop.eup %7831  ;;  %v4116_v44 = vmul.f32 %v9554_v53, %v10947_v14  ;;  %7857 = vrcp.f32 %v3374_v40  ;;  %10949 = vst [vmem:[#allocation41_spill] sm:$0xff] %v9816_v49  ;;  %v9824_v14 = vsel %vm940_vm0, %v4095_v39, 0.0  ;;  %v3289_v53 = vadd.f32 1.0, %v7830_v12  ;;  %v10953_v39 = vld [vmem:[#allocation26_spill] sm:$0xff] }
 0x27c   :  { %v7834_v54 = vpop.eup %7833  ;;  %7859 = vpow2.f32 %v6203_v31  ;;  %10951 = vst [vmem:[#allocation42_spill] sm:$0xff] %v9824_v14  ;;  %v9828_v40 = vmul.f32 -1.442695, %v9670_v2  ;;  %v6294_v30 = vmul.f32 -1.442695, %v9694_v21  ;;  %v9831_v31 = vpop.f32.mrf.mxu0  ;;  %v4117_v12 = vmul.f32 %v9566_v51, %v10953_v39 }
 0x27d   :  { %v9821_v0 = vpop.eup %7835  ;;  %7861 = vrcp.f32 %v3375_v24  ;;  %10952 = vst [vmem:[#allocation24_spill] sm:$0xff] %v9831_v31  ;;  %v4599_v49 = vsel %vm940_vm0, %v4116_v44, 0.0  ;;  %v3287_v24 = vadd.f32 1.0, %v7834_v54  ;;  %v6296_v38 = vmul.f32 -1.442695, %v9677_v5  ;;  %v9843_v14 = vpop.f32.mrf.mxu1  ;;  %v10965_v5 = vld [vmem:[#allocation80_spill] sm:$0xff] }
 0x27e   :  { %v7838_v20 = vpop.eup %7837  ;;  %7863 = vrcp.f32 %v3376_v58  ;;  %v6207_v27 = vmul.f32 -1.442695, %v9683_v47  ;;  %v9841_v58 = vmul.f32 -1.442695, %v9702_v11  ;;  %10954 = vst [vmem:[#allocation26_spill] sm:$0xff] %v9843_v14  ;;  %v9855_v11 = vpop.f32.mrf.mxu0 }
 0x27f   :  { %v9833_v33 = vpop.eup %7839  ;;  %7865 = vpow2.f32 %v6293_v17  ;;  %v3377_v2 = vadd.f32 1.0, %v7838_v20  ;;  %v6297_v44 = vmul.f32 -1.442695, %v9713_v41  ;;  %v6295_v51 = vmul.f32 -1.442695, %v9738_v35  ;;  %10955 = vst [vmem:[#allocation115_spill] sm:$0xff] %v9855_v11 }
 0x280   :  { %v7842_v9 = vpop.eup %7841  ;;  %7867 = vpow2.f32 %v6208_v62  ;;  %v4600_v17 = vadd.f32 %v4599_v49, %v4598_v19  ;;  %v9850_v62 = vmul.f32 -1.442695, %v9725_v48  ;;  %v9853_v39 = vmul.f32 -1.442695, %v9752_v32  ;;  %v10956_v49 = vld [vmem:[#allocation29_spill] sm:$0xff]  ;;  %v9867_v48 = vpop.f32.mrf.mxu1 }
 0x281   :  { %v7844_v63 = vpop.eup %7843  ;;  %7869 = vrcp.f32 %v3289_v53  ;;  %v4601_v53 = vsel %vm940_vm0, %v4117_v12, 0.0  ;;  %v4118_v20 = vmul.f32 %v9603_v25, %v9348_v59  ;;  %v3292_v47 = vadd.f32 1.0, %v7842_v9 }
 0x282   :  { %v9847_v54 = vpop.eup %7845  ;;  %7871 = vpow2.f32 %v6206_v56  ;;  %v4120_v56 = vmul.f32 %v9593_v36, %v10956_v49  ;;  %v3378_v19 = vadd.f32 1.0, %v7844_v63  ;;  %v9865_v32 = vmul.f32 -1.442695, %v9792_v7  ;;  %v9900_v7 = vpop.f32.mrf.mxu1 }
 0x283   :  { %v9857_v55 = vpop.eup %7847  ;;  %7873 = vrcp.f32 %v3287_v24  ;;  %v9870_v12 = vmul.f32 -1.442695, %v9767_v26  ;;  %v9873_v59 = vmul.f32 -1.442695, %v9780_v16  ;;  %v9876_v25 = vmul.f32 -1.442695, %v9804_v10  ;;  %v9884_v24 = vpop.f32.mrf.mxu0 }
 0x284   :  { %v7850_v28 = vpop.eup %7849  ;;  %7875 = vpow2.f32 %v6294_v30  ;;  %v4602_v36 = vadd.f32 %v4601_v53, %v4600_v17  ;;  %v9879_v63 = vmul.f32 -1.442695, %v9819_v52  ;;  %v9882_v30 = vmul.f32 -1.442695, %v9843_v14  ;;  %10957 = vst [vmem:[#allocation29_spill] sm:$0xff] %v9884_v24  ;;  %v10958_v26 = vld [vmem:[#allocation67_spill] sm:$0xff] }
 0x285   :  { %v7852_v57 = vpop.eup %7851  ;;  %7877 = vrcp.f32 %v3377_v2  ;;  %v4603_v49 = vsel %vm940_vm0, %v4118_v20, 0.0  ;;  %v4047_v16 = vmul.f32 %v9740_v6, %v10958_v26  ;;  %v9890_v10 = vmul.f32 -1.442695, %v9831_v31  ;;  %v10959_v53 = vld [vmem:[#allocation61_spill] sm:$0xff]  ;;  %v10962_v31 = vld [vmem:[#allocation32_spill] sm:$0xff] }
 0x286   :  { %v7854_v9 = vpop.eup %7853  ;;  %7879 = vpow2.f32 %v6296_v38  ;;  %v9893_v38 = vsel %vm940_vm0, %v4120_v56, 0.0  ;;  %v4046_v52 = vmul.f32 %v9680_v29, %v10959_v53  ;;  %v9898_v14 = vmul.f32 -1.442695, %v9855_v11  ;;  %10961 = vst [vmem:[#allocation61_spill] sm:$0xff] %v9900_v7  ;;  %v10964_v11 = vld [vmem:[#allocation31_spill] sm:$0xff] }
 0x287   :  { %v7856_v2 = vpop.eup %7855  ;;  %7881 = vrcp.f32 %v3292_v47  ;;  %v3379_v41 = vadd.f32 1.0, %v7854_v9  ;;  %v9903_v47 = vmul.f32 -1.442695, %v9900_v7  ;;  %v9906_v6 = vmul.f32 -1.442695, %v9884_v24 }
 0x288   :  { %v7858_v17 = vpop.eup %7857  ;;  %7883 = vrcp.f32 %v3378_v19  ;;  %10960 = vst [vmem:[#allocation67_spill] sm:$0xff] %v9898_v14  ;;  %v4604_v56 = vadd.f32 %v4603_v49, %v4602_v36  ;;  %v4119_v29 = vmul.f32 %v10963_v45, %v10962_v31  ;;  %v3290_v19 = vadd.f32 1.0, %v7850_v28  ;;  %v10966_v14 = vld [vmem:[#allocation59_spill] sm:$0xff] }
 0x289   :  { %v7860_v20 = vpop.eup %7859  ;;  %7885 = vpow2.f32 %v6295_v51  ;;  %v4121_v34 = vmul.f32 %v10965_v5, %v10964_v11  ;;  %v4451_v51 = vsel %vm940_vm0, %v4047_v16, 0.0  ;;  %v3380_v9 = vadd.f32 1.0, %v7852_v57  ;;  %v4738_v11 = vld [vmem:[%s10710_s2 + $0x20] sm:$0xff] }
 0x28a   :  { %v7862_v26 = vpop.eup %7861  ;;  %7887 = vpow2.f32 %v9828_v40  ;;  %v4048_v24 = vmul.f32 %v9672_v42, %v10966_v14  ;;  %v4450_v36 = vsel %vm940_vm0, %v4046_v52, 0.0  ;;  %v3293_v49 = vadd.f32 1.0, %v7856_v2  ;;  %v4734_v42 = vld [vmem:[%s10710_s2] sm:$0xff] }
 0x28b   :  { %v7864_v53 = vpop.eup %7863  ;;  %7889 = vpow2.f32 %v6207_v27  ;;  %v4142_v28 = vmul.f32 %v7858_v17, %v9601_v13  ;;  %v4143_v40 = vmul.f32 %v7862_v26, %v9618_v60  ;;  %v3291_v31 = vadd.f32 1.0, %v7860_v20  ;;  %v9928_v60 = vpop.f32.mrf.mxu0  ;;  %v10968_v17 = vld [vmem:[#allocation65_spill] sm:$0xff] }
 0x28c   :  { %v7866_v7 = vpop.eup %7865  ;;  %7891 = vpow2.f32 %v6297_v44  ;;  %v4605_v57 = vsel %vm940_vm0, %v4119_v29, 0.0  ;;  %v4452_v16 = vadd.f32 %v4451_v51, %v4450_v36  ;;  %10967 = vst [vmem:[#allocation32_spill] sm:$0xff] %v9928_v60  ;;  %v6319_v14 = vcombine.high %v4734_v42, %v4738_v11  ;;  %v9936_v29 = vpop.f32.mrf.mxu1 }
 0x28d   :  { %v7868_v45 = vpop.eup %7867  ;;  %7893 = vrcp.f32 %v3379_v41  ;;  %v3381_v13 = vadd.f32 1.0, %v7866_v7  ;;  %v6318_v41 = vcombine.low %v4734_v42, %v4738_v11  ;;  %v10794_v27 = vmov 0  }
 0x28e   :  { %v9919_v5 = vpop.eup %7869  ;;  %7895 = vrcp.f32 %v3290_v19  ;;  %4896 = vmatprep.mubr.bf16.mxu1 %v10794_v27  ;;  %v4453_v2 = vsel %vm940_vm0, %v4048_v24, 0.0  ;;  %v4049_v20 = vmul.f32 %v9708_v22, %v10968_v17  ;;  %v3296_v26 = vadd.f32 1.0, %v7868_v45  ;;  %4878 = vmatprep.subr.bf16.mxu1 %v6319_v14 }
 0x28f   :  { %v7872_v52 = vpop.eup %7871  ;;  %7897 = vrcp.f32 %v3380_v9  ;;  %v4144_v7 = vmul.f32 %v7864_v53, %v9591_v46  ;;  %v4657_v51 = vsel %vm940_vm0, %v4142_v28, 0.0  ;;  %v4658_v9 = vsel %vm940_vm0, %v4143_v40, 0.0  ;;  %4879 = vmatpush1.bf16.msra.mxu1 %v6318_v41  ;;  %v9949_v53 = vpop.f32.mrf.mxu0 }
 0x290   :  { %v9931_v44 = vpop.eup %7873  ;;  %7899 = vrcp.f32 %v3293_v49  ;;  %v4454_v42 = vadd.f32 %v4453_v2, %v4452_v16  ;;  %v3294_v11 = vadd.f32 1.0, %v7872_v52  ;;  %v9943_v22 = vmul.f32 -1.442695, %v9867_v48  ;;  %10969 = vst [vmem:[#allocation82_spill] sm:$0xff] %v9949_v53  ;;  %v9955_v16 = vpop.f32.mrf.mxu1 }
 0x291   :  { %v7876_v19 = vpop.eup %7875  ;;  %7901 = vrcp.f32 %v3291_v31  ;;  %v4609_v49 = vsel %vm940_vm0, %v4121_v34, 0.0  ;;  %v4606_v45 = vadd.f32 %v4605_v57, %v4604_v56  ;;  %v9947_v46 = vmul.f32 -1.442695, %v9928_v60 }
 0x292   :  { %v7878_v36 = vpop.eup %7877  ;;  %7903 = vpow2.f32 %v9841_v58  ;;  %v4050_v40 = vmul.f32 %v9806_v61, %v9531_v43  ;;  %v4659_v58 = vadd.f32 %v4658_v9, %v4657_v51  ;;  %v3382_v31 = vadd.f32 1.0, %v7876_v19 }
 0x293   :  { %v7880_v24 = vpop.eup %7879  ;;  %7905 = vrcp.f32 %v3381_v13  ;;  %v4455_v34 = vsel %vm940_vm0, %v4049_v20, 0.0  ;;  %v4660_v56 = vsel %vm940_vm0, %v4144_v7, 0.0  ;;  %v4145_v57 = vmul.f32 %v7878_v36, %v9610_v4  ;;  %v9971_v4 = vpop.f32.mrf.mxu0  ;;  %v10972_v36 = vld [vmem:[#allocation35_spill] sm:$0xff] }
 0x294   :  { %v9951_v28 = vpop.eup %7881  ;;  %7907 = vrcp.f32 %v3296_v26  ;;  %v4456_v41 = vadd.f32 %v4455_v34, %v4454_v42  ;;  %v3384_v14 = vadd.f32 1.0, %v7880_v24  ;;  %v9962_v43 = vmul.f32 -1.442695, %v9936_v29  ;;  %10970 = vst [vmem:[#allocation31_spill] sm:$0xff] %v9971_v4  ;;  %v10971_v26 = vld [vmem:[#allocation36_spill] sm:$0xff] }
 0x295   :  { %v7884_v52 = vpop.eup %7883  ;;  %7909 = vpow2.f32 %v9865_v32  ;;  %v4608_v2 = vadd.f32 %v9893_v38, %v4606_v45  ;;  %v4051_v17 = vmul.f32 %v9833_v33, %v9552_v1  ;;  %v9969_v20 = vmul.f32 -1.442695, %v9955_v16  ;;  %v10973_v42 = vld [vmem:[#allocation84_spill] sm:$0xff] }
 0x296   :  { %v7886_v13 = vpop.eup %7885  ;;  %7911 = vrcp.f32 %v3294_v11  ;;  %v4122_v19 = vmul.f32 %v9624_v23, %v10971_v26  ;;  %v4457_v7 = vsel %vm940_vm0, %v4050_v40, 0.0  ;;  %v4661_v51 = vadd.f32 %v4660_v56, %v4659_v58  ;;  %v9981_v23 = vpop.f32.mrf.mxu1  ;;  %v10975_v56 = vld [vmem:[#allocation69_spill] sm:$0xff]  ;;  %v10976_v26 = vld [vmem:[#allocation40_spill] sm:$0xff] }
 0x297   :  { %v7888_v61 = vpop.eup %7887  ;;  %7913 = vpow2.f32 %v9850_v62  ;;  %v4662_v38 = vsel %vm940_vm0, %v4145_v57, 0.0  ;;  %v4146_v1 = vmul.f32 %v7884_v52, %v9639_v3  ;;  %v3383_v33 = vadd.f32 1.0, %v7886_v13  ;;  %v9987_v3 = vpop.f32.mrf.mxu0 }
 0x298   :  { %v7890_v32 = vpop.eup %7889  ;;  %7915 = vrcp.f32 %v3382_v31  ;;  %v4124_v11 = vmul.f32 %v10973_v42, %v10972_v36  ;;  %v4458_v24 = vadd.f32 %v4457_v7, %v4456_v41  ;;  %v3297_v45 = vadd.f32 1.0, %v7888_v61  ;;  %10974 = vst [vmem:[#allocation80_spill] sm:$0xff] %v9987_v3 }
 0x299   :  { %v7892_v9 = vpop.eup %7891  ;;  %7917 = vpow2.f32 %v9882_v30  ;;  %v4610_v58 = vadd.f32 %v4609_v49, %v4608_v2  ;;  %v4459_v31 = vsel %vm940_vm0, %v4051_v17, 0.0  ;;  %v3295_v34 = vadd.f32 1.0, %v7890_v32  ;;  %v10005_v32 = vpop.f32.mrf.mxu1 }
 0x29a   :  { %v7894_v62 = vpop.eup %7893  ;;  %7919 = vrcp.f32 %v3384_v14  ;;  %v4611_v52 = vsel %vm940_vm0, %v4122_v19, 0.0  ;;  %v4052_v57 = vmul.f32 %v9769_v37, %v10975_v56  ;;  %v4663_v13 = vadd.f32 %v4662_v38, %v4661_v51  ;;  %v10977_v19 = vld [vmem:[#allocation87_spill] sm:$0xff]  ;;  %v10980_v56 = vld [vmem:[#allocation86_spill] sm:$0xff] }
 0x29b   :  { %v9983_v40 = vpop.eup %7895  ;;  %7921 = vpow2.f32 %v9870_v12  ;;  %v4664_v49 = vsel %vm940_vm0, %v4146_v1, 0.0  ;;  %v4147_v14 = vmul.f32 %v7894_v62, %v9665_v8  ;;  %v3385_v61 = vadd.f32 1.0, %v7892_v9  ;;  %v10015_v9 = vpop.f32.mrf.mxu0 }
 0x29c   :  { %v7898_v30 = vpop.eup %7897  ;;  %7923 = vpow2.f32 %v9853_v39  ;;  %v10000_v2 = vsel %vm940_vm0, %v4124_v11, 0.0  ;;  %v4460_v17 = vadd.f32 %v4459_v31, %v4458_v24  ;;  %v10003_v37 = vmul.f32 -1.442695, %v9949_v53 }
 0x29d   :  { %v9993_v41 = vpop.eup %7899  ;;  %7925 = vrcp.f32 %v3383_v33  ;;  %v4123_v7 = vmul.f32 %v10977_v19, %v10976_v26  ;;  %v10010_v8 = vmul.f32 -1.442695, %v9971_v4  ;;  %v10013_v51 = vmul.f32 -1.442695, %v10005_v32  ;;  %v10978_v33 = vld [vmem:[#allocation72_spill] sm:$0xff] }
 0x29e   :  { %v9997_v12 = vpop.eup %7901  ;;  %7927 = vrcp.f32 %v3297_v45  ;;  %v4612_v1 = vadd.f32 %v4611_v52, %v4610_v58  ;;  %v4053_v62 = vmul.f32 %v9821_v0, %v10978_v33  ;;  %v4665_v36 = vadd.f32 %v4664_v49, %v4663_v13  ;;  %v10040_v13 = vpop.f32.mrf.mxu0 }
 0x29f   :  { %v7904_v39 = vpop.eup %7903  ;;  %7929 = vrcp.f32 %v3295_v34  ;;  %v4461_v11 = vsel %vm940_vm0, %v4052_v57, 0.0  ;;  %v4148_v24 = vmul.f32 %v7898_v30, %v9627_v15  ;;  %v4666_v45 = vsel %vm940_vm0, %v4147_v14, 0.0  ;;  %v10979_v34 = vld [vmem:[#allocation39_spill] sm:$0xff]  ;;  %v10038_v30 = vpop.f32.mrf.mxu1 }
 0x2a0   :  { %v7906_v38 = vpop.eup %7905  ;;  %7931 = vpow2.f32 %v9879_v63  ;;  %v4125_v26 = vmul.f32 %v10980_v56, %v10979_v34  ;;  %v4462_v58 = vadd.f32 %v4461_v11, %v4460_v17  ;;  %v3300_v52 = vadd.f32 1.0, %v7904_v39 }
 0x2a1   :  { %v10020_v42 = vpop.eup %7907  ;;  %7933 = vrcp.f32 %v3385_v61  ;;  %v4613_v63 = vsel %vm940_vm0, %v4123_v7, 0.0  ;;  %v10033_v57 = vmul.f32 -1.442695, %v9981_v23  ;;  %v10036_v15 = vmul.f32 -1.442695, %v9987_v3 }
 0x2a2   :  { %v7910_v31 = vpop.eup %7909  ;;  %7935 = vpow2.f32 %v9873_v59  ;;  %v4463_v14 = vsel %vm940_vm0, %v4053_v62, 0.0  ;;  %v10981_v59 = vld [vmem:[#allocation77_spill] sm:$0xff]  ;;  %v4667_v17 = vadd.f32 %v4666_v45, %v4665_v36  ;;  %v4668_v39 = vsel %vm940_vm0, %v4148_v24, 0.0 }
 0x2a3   :  { %v10028_v0 = vpop.eup %7911  ;;  %7937 = vpow2.f32 %v9943_v22  ;;  %v4054_v61 = vmul.f32 %v9857_v55, %v10981_v59  ;;  %v4149_v19 = vmul.f32 %v7906_v38, %v9654_v50  ;;  %v3386_v7 = vadd.f32 1.0, %v7910_v31  ;;  %v10056_v50 = vpop.f32.mrf.mxu1 }
 0x2a4   :  { %v7914_v49 = vpop.eup %7913  ;;  %7939 = vpow2.f32 %v9876_v25  ;;  %v10050_v11 = vsel %vm940_vm0, %v4125_v26, 0.0  ;;  %v4464_v34 = vadd.f32 %v4463_v14, %v4462_v58  ;;  %v6224_v62 = vmul.f32 -1.442695, %v10015_v9  ;;  %v10058_v38 = vpop.f32.mrf.mxu0  ;;  %v10983_v14 = vld [vmem:[#allocation89_spill] sm:$0xff] }
 0x2a5   :  { %v7916_v22 = vpop.eup %7915  ;;  %7941 = vpow2.f32 %v9903_v47  ;;  %v4614_v36 = vadd.f32 %v4613_v63, %v4612_v1  ;;  %v4055_v25 = vmul.f32 %v9931_v44, %v9596_v18  ;;  %v3298_v45 = vadd.f32 1.0, %v7914_v49  ;;  %v10982_v49 = vld [vmem:[#allocation44_spill] sm:$0xff] }
 0x2a6   :  { %v7918_v33 = vpop.eup %7917  ;;  %7943 = vrcp.f32 %v3300_v52  ;;  %v4465_v24 = vsel %vm940_vm0, %v4054_v61, 0.0  ;;  %v4669_v31 = vadd.f32 %v4668_v39, %v4667_v17  ;;  %v6222_v56 = vmul.f32 -1.442695, %v10040_v13  ;;  %v10077_v17 = vpop.f32.mrf.mxu0  ;;  %v10984_v39 = vld [vmem:[#allocation75_spill] sm:$0xff] }
 0x2a7   :  { %v7920_v55 = vpop.eup %7919  ;;  %7945 = vpow2.f32 %v9890_v10  ;;  %v4670_v1 = vsel %vm940_vm0, %v4149_v19, 0.0  ;;  %v4150_v18 = vmul.f32 %v7916_v22, %v9694_v21  ;;  %v3387_v44 = vadd.f32 1.0, %v7918_v33 }
 0x2a8   :  { %v7922_v47 = vpop.eup %7921  ;;  %7947 = vpow2.f32 %v9969_v20  ;;  %v4466_v58 = vadd.f32 %v4465_v24, %v4464_v34  ;;  %v10067_v52 = vmul.f32 -1.442695, %v10038_v30  ;;  %v10070_v63 = vmul.f32 -1.442695, %v10056_v50 }
 0x2a9   :  { %v7924_v26 = vpop.eup %7923  ;;  %7949 = vrcp.f32 %v3386_v7  ;;  %v4128_v59 = vmul.f32 %v10983_v14, %v10982_v49  ;;  %v4467_v61 = vsel %vm940_vm0, %v4055_v25, 0.0  ;;  %v3388_v21 = vadd.f32 1.0, %v7922_v47  ;;  %v10985_v47 = vld [vmem:[#allocation67_spill] sm:$0xff]  ;;  %v10087_v14 = vpop.f32.mrf.mxu1 }
 0x2aa   :  { %v7926_v10 = vpop.eup %7925  ;;  %7951 = vpow2.f32 %v9962_v43  ;;  %v4616_v43 = vadd.f32 %v10000_v2, %v4614_v36  ;;  %v4056_v19 = vmul.f32 %v9847_v54, %v10984_v39  ;;  %v4671_v7 = vadd.f32 %v4670_v1, %v4669_v31  ;;  %10986 = vst [vmem:[#allocation59_spill] sm:$0xff] %v10087_v14  ;;  %v10094_v54 = vld [vmem:[%s10710_s2 + $0x48] sm:$0xff] }
 0x2ab   :  { %v10072_v20 = vpop.eup %7927  ;;  %7953 = vrcp.f32 %v3298_v45  ;;  %v4672_v34 = vsel %vm940_vm0, %v4150_v18, 0.0  ;;  %v4151_v24 = vmul.f32 %v7926_v10, %v9738_v35  ;;  %v3301_v49 = vadd.f32 1.0, %v7924_v26  ;;  %10987 = vst [vmem:[#allocation65_spill] sm:$0xff] %v10094_v54  ;;  %v10099_v35 = vld [vmem:[%s10710_s2 + $0x68] sm:$0xff]  ;;  %v10990_v26 = vld [vmem:[#allocation90_spill] sm:$0xff]  ;;  %v10991_v18 = vld [vmem:[#allocation79_spill] sm:$0xff] }
 0x2ac   :  { %v10079_v22 = vpop.eup %7929  ;;  %7955 = vpow2.f32 %v6222_v56  ;;  %v4468_v45 = vadd.f32 %v4467_v61, %v4466_v58  ;;  %v6225_v2 = vmul.f32 -1.442695, %v10058_v38  ;;  %v6223_v36 = vmul.f32 -1.442695, %v10077_v17  ;;  %10988 = vst [vmem:[#allocation36_spill] sm:$0xff] %v10099_v35  ;;  %v10989_v56 = vld [vmem:[#allocation47_spill] sm:$0xff] }
 0x2ad   :  { %v7932_v33 = vpop.eup %7931  ;;  %7957 = vrcp.f32 %v3387_v44  ;;  %v4126_v1 = vmul.f32 %v10990_v26, %v10989_v56  ;;  %v4057_v44 = vmul.f32 %v9919_v5, %v10991_v18  ;;  %v6329_v10 = vcombine.high %v10094_v54, %v10099_v35  ;;  %v10992_v26 = vld [vmem:[#allocation101_spill] sm:$0xff]  ;;  %v10999_v54 = vld [vmem:[#allocation94_spill] sm:$0xff] }
 0x2ae   :  { %v7934_v25 = vpop.eup %7933  ;;  %7959 = vpow2.f32 %v10985_v47  ;;  %v4673_v61 = vadd.f32 %v4672_v34, %v4671_v7  ;;  %v3389_v39 = vadd.f32 1.0, %v7932_v33  ;;  %v10109_v47 = vpop.f32.mrf.mxu0  ;;  %v4469_v56 = vsel %vm940_vm0, %v4056_v19, 0.0 }
 0x2af   :  { %v10101_v31 = vpop.eup %7935  ;;  %7961 = vrcp.f32 %v3388_v21  ;;  %v4152_v60 = vmul.f32 %v7920_v55, %v10992_v26  ;;  %v4674_v5 = vsel %vm940_vm0, %v4151_v24, 0.0  ;;  %4917 = vmatprep.subr.bf16.mxu1 %v6329_v10  ;;  %v10119_v7 = vsel %vm940_vm0, %v4128_v59, 0.0  ;;  %v10122_v34 = vpop.f32.mrf.mxu1  ;;  %v10995_v10 = vld [vmem:[#allocation107_spill] sm:$0xff] }
 0x2b0   :  { %v7938_v58 = vpop.eup %7937  ;;  %7963 = vpow2.f32 %v6224_v62  ;;  %v4618_v62 = vadd.f32 %v10050_v11, %v4616_v43  ;;  %v4470_v33 = vadd.f32 %v4469_v56, %v4468_v45  ;;  %10993 = vst [vmem:[#allocation35_spill] sm:$0xff] %v10122_v34  ;;  %v4619_v19 = vsel %vm940_vm0, %v4126_v1, 0.0  ;;  %v10136_v45 = vpop.f32.mrf.mxu0 }
 0x2b1   :  { %v10113_v4 = vpop.eup %7939  ;;  %7965 = vrcp.f32 %v3301_v49  ;;  %v3392_v27 = vadd.f32 1.0, %v7938_v58  ;;  %v10129_v55 = vmul.f32 -1.442695, %v10122_v34  ;;  %v4471_v59 = vsel %vm940_vm0, %v4057_v44, 0.0  ;;  %v10994_v49 = vld [vmem:[#allocation83_spill] sm:$0xff] }
 0x2b2   :  { %v7942_v21 = vpop.eup %7941  ;;  %7967 = vpow2.f32 %v6223_v36  ;;  %v4058_v11 = vmul.f32 %v9983_v40, %v10994_v49  ;;  %v4675_v43 = vadd.f32 %v4674_v5, %v4673_v61  ;;  %v4676_v1 = vsel %vm940_vm0, %v4152_v60, 0.0  ;;  %v10996_v61 = vld [vmem:[#allocation51_spill] sm:$0xff]  ;;  %v10998_v49 = vld [vmem:[#allocation52_spill] sm:$0xff] }
 0x2b3   :  { %v10124_v18 = vpop.eup %7943  ;;  %7969 = vpow2.f32 %v10013_v51  ;;  %v4153_v58 = vmul.f32 %v7934_v25, %v10995_v10  ;;  %v3390_v51 = vadd.f32 1.0, %v7942_v21  ;;  %v4620_v26 = vadd.f32 %v4619_v19, %v4618_v62  ;;  %v11000_v60 = vld [vmem:[#allocation88_spill] sm:$0xff]  ;;  %v10156_v19 = vpop.f32.mrf.mxu0 }
 0x2b4   :  { %v10131_v24 = vpop.eup %7945  ;;  %7971 = vrcp.f32 %v3389_v39  ;;  %v4472_v35 = vadd.f32 %v4471_v59, %v4470_v33  ;;  %v10142_v44 = vmul.f32 -1.442695, %v10087_v14  ;;  %v10997_v39 = vld [vmem:[#allocation93_spill] sm:$0xff]  ;;  %v4127_v3 = vmul.f32 %v10999_v54, %v10998_v49  ;;  %11002 = vst [vmem:[#allocation69_spill] sm:$0xff] %v10156_v19 }
 0x2b5   :  { %v7948_v36 = vpop.eup %7947  ;;  %7973 = vpow2.f32 %v6225_v2  ;;  %v4129_v5 = vmul.f32 %v10997_v39, %v10996_v61  ;;  %v4059_v25 = vmul.f32 %v9997_v12, %v11000_v60  ;;  %v10150_v2 = vpop.f32.mrf.mxu1  ;;  %v4677_v62 = vadd.f32 %v4676_v1, %v4675_v43  ;;  %v11003_v61 = vld [vmem:[#allocation8_spill] sm:$0xff] }
 0x2b6   :  { %v7950_v56 = vpop.eup %7949  ;;  %7975 = vpow2.f32 %v9906_v6  ;;  %11001 = vst [vmem:[#allocation84_spill] sm:$0xff] %v10150_v2  ;;  %v3391_v6 = vadd.f32 1.0, %v7948_v36  ;;  %v6226_v33 = vmul.f32 -1.442695, %v10136_v45  ;;  %v4473_v10 = vsel %vm940_vm0, %v4058_v11, 0.0 }
 0x2b7   :  { %v7952_v40 = vpop.eup %7951  ;;  %7977 = vrcp.f32 %v3392_v27  ;;  %v4678_v54 = vsel %vm940_vm0, %v4153_v58, 0.0  ;;  %v4154_v12 = vmul.f32 %v7950_v56, %v11003_v61  ;;  %v4474_v39 = vadd.f32 %v4473_v10, %v4472_v35  ;;  %v10169_v58 = vpop.f32.mrf.mxu1  ;;  %v11005_v10 = vld [vmem:[#allocation81_spill] sm:$0xff]  ;;  %v11006_v61 = vld [vmem:[#allocation26_spill] sm:$0xff] }
 0x2b8   :  { %v10152_v21 = vpop.eup %7953  ;;  %7979 = vpow2.f32 %v10070_v63  ;;  %v3393_v49 = vadd.f32 1.0, %v7952_v40  ;;  %v6228_v43 = vmul.f32 -1.442695, %v10109_v47  ;;  %v4625_v36 = vsel %vm940_vm0, %v4129_v5, 0.0  ;;  %11004 = vst [vmem:[#allocation40_spill] sm:$0xff] %v10169_v58  ;;  %v10172_v40 = vpop.f32.mrf.mxu0 }
 0x2b9   :  { %v7956_v59 = vpop.eup %7955  ;;  %7981 = vrcp.f32 %v3390_v51  ;;  %v4621_v1 = vsel %vm940_vm0, %v4127_v3, 0.0  ;;  %v4475_v11 = vsel %vm940_vm0, %v4059_v25, 0.0  ;;  %v4679_v56 = vadd.f32 %v4678_v54, %v4677_v62  ;;  %v11008_v54 = vld [vmem:[#allocation96_spill] sm:$0xff] }
 0x2ba   :  { %v7958_v27 = vpop.eup %7957  ;;  %7983 = vpow2.f32 %v10033_v57  ;;  %v3310_v35 = vadd.f32 1.0, %v7956_v59  ;;  %v6229_v57 = vmul.f32 -1.442695, %v10156_v19  ;;  %v4060_v5 = vmul.f32 %v9951_v28, %v11005_v10  ;;  %v11007_v59 = vld [vmem:[#allocation56_spill] sm:$0xff]  ;;  %v11009_v19 = vld [vmem:[#allocation85_spill] sm:$0xff] }
 0x2bb   :  { %v10163_v63 = vpop.eup %7959  ;;  %7985 = vpow2.f32 %v10067_v52  ;;  %v4680_v3 = vsel %vm940_vm0, %v4154_v12, 0.0  ;;  %v4155_v25 = vmul.f32 %v7958_v27, %v11006_v61  ;;  %v4622_v53 = vadd.f32 %v4621_v1, %v4620_v26  ;;  %v10187_v12 = vpop.f32.mrf.mxu1 }
 0x2bc   :  { %v7962_v51 = vpop.eup %7961  ;;  %7987 = vrcp.f32 %v3391_v6  ;;  %v4476_v14 = vadd.f32 %v4475_v11, %v4474_v39  ;;  %v10181_v62 = vmul.f32 -1.442695, %v10150_v2  ;;  %v4132_v34 = vmul.f32 %v11008_v54, %v11007_v59  ;;  %v11010_v11 = vld [vmem:[#allocation113_spill] sm:$0xff] }
 0x2bd   :  { %v7964_v60 = vpop.eup %7963  ;;  %7989 = vpow2.f32 %v6226_v33  ;;  %v4061_v28 = vmul.f32 %v9993_v41, %v11009_v19  ;;  %v6227_v33 = vmul.f32 -1.442695, %v10172_v40  ;;  %v4681_v10 = vadd.f32 %v4680_v3, %v4679_v56  ;;  %v11011_v56 = vld [vmem:[#allocation57_spill] sm:$0xff] }
 0x2be   :  { %v10178_v52 = vpop.eup %7965  ;;  %7991 = vrcp.f32 %v3393_v49  ;;  %v3312_v26 = vadd.f32 1.0, %v7964_v60  ;;  %v4477_v1 = vsel %vm940_vm0, %v4060_v5, 0.0  ;;  %v4156_v61 = vmul.f32 %v7962_v51, %v11010_v11  ;;  %v10201_v5 = vpop.f32.mrf.mxu1 }
 0x2bf   :  { %v7968_v6 = vpop.eup %7967  ;;  %7993 = vpow2.f32 %v6228_v43  ;;  %v4682_v59 = vsel %vm940_vm0, %v4155_v25, 0.0  ;;  %v4624_v41 = vadd.f32 %v10119_v7, %v4622_v53  ;;  %v4478_v19 = vadd.f32 %v4477_v1, %v4476_v14  ;;  %v11013_v14 = vld [vmem:[#allocation95_spill] sm:$0xff] }
 0x2c0   :  { %v7970_v27 = vpop.eup %7969  ;;  %7995 = vrcp.f32 %v3310_v35  ;;  %v3311_v39 = vadd.f32 1.0, %v7968_v6  ;;  %v3299_v43 = vadd.f32 1.0, %v10101_v31  ;;  %v11012_v35 = vld [vmem:[#allocation97_spill] sm:$0xff]  ;;  %v6311_v51 = vmul.f32 -1.442695, %v10169_v58 }
 0x2c1   :  { %v7972_v49 = vpop.eup %7971  ;;  %7997 = vpow2.f32 %v6229_v57  ;;  %v4130_v60 = vmul.f32 %v11012_v35, %v11011_v56  ;;  %v3394_v3 = vadd.f32 1.0, %v7970_v27  ;;  %v4479_v53 = vsel %vm940_vm0, %v4061_v28, 0.0 }
 0x2c2   :  { %v7974_v54 = vpop.eup %7973  ;;  %7999 = vrcp.f32 %v3311_v39  ;;  %v4062_v31 = vmul.f32 %v10028_v0, %v11013_v14  ;;  %v4683_v7 = vadd.f32 %v4682_v59, %v4681_v10  ;;  %v4684_v6 = vsel %vm940_vm0, %v4156_v61, 0.0  ;;  %v11014_v39 = vld [vmem:[#allocation11_spill] sm:$0xff]  ;;  %v11015_v0 = vld [vmem:[#allocation102_spill] sm:$0xff]  ;;  %v10217_v61 = vpop.f32.mrf.mxu1  ;;  %v11017_v59 = vld [vmem:[#allocation100_spill] sm:$0xff] }
 0x2c3   :  { %v10195_v2 = vpop.eup %7975  ;;  %8001 = vpow2.f32 %v10129_v55  ;;  %v4157_v27 = vmul.f32 %v7972_v49, %v11014_v39  ;;  %v3313_v1 = vadd.f32 1.0, %v7974_v54  ;;  %v10211_v11 = vsel %vm940_vm0, %v4132_v34, 0.0 }
 0x2c4   :  { %v10203_v57 = vpop.eup %7977  ;;  %8003 = vrcp.f32 %v3312_v26  ;;  %v4626_v56 = vadd.f32 %v4625_v36, %v4624_v41  ;;  %v4480_v35 = vadd.f32 %v4479_v53, %v4478_v19  ;;  %v4627_v58 = vsel %vm940_vm0, %v4130_v60, 0.0  ;;  %v11019_v53 = vld [vmem:[#allocation92_spill] sm:$0xff] }
 0x2c5   :  { %v7980_v25 = vpop.eup %7979  ;;  %8005 = vpow2.f32 %v6227_v33  ;;  %v4063_v10 = vmul.f32 %v10079_v22, %v11015_v0  ;;  %v6314_v26 = vmul.f32 -1.442695, %v10201_v5  ;;  %v11016_v33 = vld [vmem:[#allocation62_spill] sm:$0xff]  ;;  %v4685_v34 = vadd.f32 %v4684_v6, %v4683_v7 }
 0x2c6   :  { %v7982_v55 = vpop.eup %7981  ;;  %8007 = vrcp.f32 %v3299_v43  ;;  %v4131_v54 = vmul.f32 %v11017_v59, %v11016_v33  ;;  %v3395_v14 = vadd.f32 1.0, %v7980_v25  ;;  %v4481_v41 = vsel %vm940_vm0, %v4062_v31, 0.0  ;;  %v11018_v43 = vld [vmem:[#allocation61_spill] sm:$0xff]  ;;  %v10229_v25 = vpop.f32.mrf.mxu1 }
 0x2c7   :  { %v7984_v28 = vpop.eup %7983  ;;  %8009 = vrcp.f32 %v3394_v3  ;;  %v4686_v19 = vsel %vm940_vm0, %v4157_v27, 0.0  ;;  %v4158_v60 = vmul.f32 %v7982_v55, %v11018_v43  ;;  %v4628_v3 = vadd.f32 %v4627_v58, %v4626_v56  ;;  %v11020_v27 = vld [vmem:[#allocation60_spill] sm:$0xff] }
 0x2c8   :  { %v7986_v49 = vpop.eup %7985  ;;  %8011 = vpow2.f32 %v6311_v51  ;;  %v4064_v39 = vmul.f32 %v10020_v42, %v11019_v53  ;;  %v4482_v0 = vadd.f32 %v4481_v41, %v4480_v35  ;;  %v4483_v7 = vsel %vm940_vm0, %v4063_v10, 0.0 }
 0x2c9   :  { %v7988_v36 = vpop.eup %7987  ;;  %8013 = vrcp.f32 %v3313_v1  ;;  %v3396_v51 = vadd.f32 1.0, %v7984_v28  ;;  %v11021_v1 = vld [vmem:[#allocation98_spill] sm:$0xff]  ;;  %v4629_v58 = vsel %vm940_vm0, %v4131_v54, 0.0  ;;  %v4687_v42 = vadd.f32 %v4686_v19, %v4685_v34 }
 0x2ca   :  { %v7990_v22 = vpop.eup %7989  ;;  %8015 = vpow2.f32 %v10003_v37  ;;  %v10233_v55 = vmul.f32 %v11021_v1, %v11020_v27  ;;  %v4688_v37 = vsel %vm940_vm0, %v4158_v60, 0.0  ;;  %v4159_v35 = vmul.f32 %v7988_v36, %v9955_v16 }
 0x2cb   :  { %v7992_v33 = vpop.eup %7991  ;;  %8017 = vpow2.f32 %v10142_v44  ;;  %v3314_v31 = vadd.f32 1.0, %v7990_v22  ;;  %v3397_v28 = vadd.f32 1.0, %v7986_v49  ;;  %v4484_v10 = vadd.f32 %v4483_v7, %v4482_v0 }
 0x2cc   :  { %v7994_v6 = vpop.eup %7993  ;;  %8019 = vrcp.f32 %v3395_v14  ;;  %v10240_v59 = vmul.f32 -1.442695, %v10187_v12  ;;  %v6315_v41 = vmul.f32 -1.442695, %v10229_v25  ;;  %v10243_v54 = vadd.f32 %v4629_v58, %v4628_v3 }
 0x2cd   :  { %v7996_v56 = vpop.eup %7995  ;;  %8021 = vrcp.f32 %v3314_v31  ;;  %v4485_v34 = vsel %vm940_vm0, %v4064_v39, 0.0  ;;  %v3316_v14 = vadd.f32 1.0, %v7994_v6  ;;  %v4689_v16 = vadd.f32 %v4688_v37, %v4687_v42  ;;  %v11022_v39 = vld [vmem:[#allocation99_spill] sm:$0xff]  ;;  %v11023_v42 = vld [vmem:[#allocation110_spill] sm:$0xff] }
 0x2ce   :  { %v7998_v44 = vpop.eup %7997  ;;  %8023 = vpow2.f32 %v10036_v15  ;;  %v4160_v60 = vmul.f32 %v10203_v57, %v9867_v48  ;;  %v4690_v22 = vsel %vm940_vm0, %v4159_v35, 0.0  ;;  %v4078_v3 = vmul.f32 %v7996_v56, %v10040_v13  ;;  %v11024_v35 = vld [vmem:[#allocation7_spill] sm:$0xff] }
 0x2cf   :  { %v8000_v43 = vpop.eup %7999  ;;  %8025 = vrcp.f32 %v3396_v51  ;;  %v3317_v36 = vadd.f32 1.0, %v7998_v44  ;;  %v4065_v0 = vmul.f32 %v10072_v20, %v11022_v39  ;;  %v4486_v7 = vadd.f32 %v4485_v34, %v4484_v10 }
 0x2d0   :  { %v8002_v19 = vpop.eup %8001  ;;  %v4079_v49 = vmul.f32 %v8000_v43, %v10077_v17  ;;  %8027 = vpow2.f32 %v10181_v62  ;;  %v3302_v51 = vadd.f32 1.0, %v10131_v24  ;;  %v3303_v62 = vadd.f32 1.0, %v10195_v2 }
 0x2d1   :  { %v8004_v15 = vpop.eup %8003  ;;  %8029 = vrcp.f32 %v3397_v28  ;;  %v4161_v6 = vmul.f32 %v7992_v33, %v9936_v29  ;;  %v4691_v27 = vadd.f32 %v4690_v22, %v4689_v16  ;;  %v3398_v13 = vadd.f32 1.0, %v8002_v19  ;;  %v11025_v22 = vld [vmem:[#allocation105_spill] sm:$0xff] }
 0x2d2   :  { %v8006_v53 = vpop.eup %8005  ;;  %8031 = vpow2.f32 %v6314_v26  ;;  %v4520_v31 = vsel %vm940_vm0, %v4079_v49, 0.0  ;;  %v4692_v20 = vsel %vm940_vm0, %v4160_v60, 0.0  ;;  %v4080_v58 = vmul.f32 %v8004_v15, %v10015_v9 }
 0x2d3   :  { %v8008_v17 = vpop.eup %8007  ;;  %8033 = vrcp.f32 %v3316_v14  ;;  %v3315_v48 = vadd.f32 1.0, %v8006_v53  ;;  %v4519_v24 = vsel %vm940_vm0, %v4078_v3, 0.0  ;;  %v4487_v2 = vsel %vm940_vm0, %v4065_v0, 0.0 }
 0x2d4   :  { %v8010_v57 = vpop.eup %8009  ;;  %8035 = vrcp.f32 %v3317_v36  ;;  %v4066_v56 = vmul.f32 %v10152_v21, %v11023_v42  ;;  %v4521_v37 = vadd.f32 %v4520_v31, %v4519_v24  ;;  %v4488_v33 = vadd.f32 %v4487_v2, %v4486_v7 }
 0x2d5   :  { %v8012_v1 = vpop.eup %8011  ;;  %8037 = vrcp.f32 %v3315_v48  ;;  %v4067_v28 = vmul.f32 %v8008_v17, %v11024_v35  ;;  %v3304_v44 = vadd.f32 1.0, %v10113_v4  ;;  %v4694_v9 = vsel %vm940_vm0, %v4161_v6, 0.0  ;;  %v11027_v6 = vld [vmem:[#allocation108_spill] sm:$0xff] }
 0x2d6   :  { %v8014_v26 = vpop.eup %8013  ;;  %8039 = vrcp.f32 %v3302_v51  ;;  %v4693_v43 = vadd.f32 %v4692_v20, %v4691_v27  ;;  %v4162_v34 = vmul.f32 %v8010_v57, %v10005_v32  ;;  %v4522_v19 = vsel %vm940_vm0, %v4080_v58, 0.0 }
 0x2d7   :  { %v8016_v29 = vpop.eup %8015  ;;  %8041 = vrcp.f32 %v3303_v62  ;;  %v4081_v21 = vmul.f32 %v8014_v26, %v10058_v38  ;;  %v3399_v16 = vadd.f32 1.0, %v8012_v1  ;;  %v4489_v36 = vsel %vm940_vm0, %v4066_v56, 0.0 }
 0x2d8   :  { %v8018_v10 = vpop.eup %8017  ;;  %8043 = vrcp.f32 %v3398_v13  ;;  %v4523_v4 = vadd.f32 %v4522_v19, %v4521_v37  ;;  %v6317_v15 = vmul.f32 -1.442695, %v10217_v61  ;;  %v4068_v32 = vmul.f32 %v10124_v18, %v11025_v22  ;;  %v11028_v13 = vld [vmem:[#allocation111_spill] sm:$0xff] }
 0x2d9   :  { %v8020_v14 = vpop.eup %8019  ;;  %8045 = vpow2.f32 %v6315_v41  ;;  %v4490_v3 = vadd.f32 %v4489_v36, %v4488_v33  ;;  %v4491_v53 = vsel %vm940_vm0, %v4067_v28, 0.0  ;;  %v4695_v38 = vadd.f32 %v4694_v9, %v4693_v43 }
 0x2da   :  { %v8022_v49 = vpop.eup %8021  ;;  %8047 = vpow2.f32 %v9947_v46  ;;  %v4696_v41 = vsel %vm940_vm0, %v4162_v34, 0.0  ;;  %v3400_v0 = vadd.f32 1.0, %v8018_v10  ;;  %v4163_v46 = vmul.f32 %v8020_v14, %v10056_v50  ;;  %v11026_v50 = vld [vmem:[#allocation68_spill] sm:$0xff] }
 0x2db   :  { %v8024_v60 = vpop.eup %8023  ;;  %8049 = vrcp.f32 %v3304_v44  ;;  %v4524_v51 = vsel %vm940_vm0, %v4081_v21, 0.0  ;;  %v4082_v17 = vmul.f32 %v8022_v49, %v10136_v45  ;;  %v10283_v62 = vsel %vm940_vm0, %v10233_v55, 0.0 }
 0x2dc   :  { %v8026_v39 = vpop.eup %8025  ;;  %8051 = vpow2.f32 %v10240_v59  ;;  %v3305_v31 = vadd.f32 1.0, %v10163_v63  ;;  %v4525_v48 = vadd.f32 %v4524_v51, %v4523_v4  ;;  %v4632_v59 = vadd.f32 %v10211_v11, %v10243_v54  ;;  %v11029_v54 = vld [vmem:[#allocation6_spill] sm:$0xff] }
 0x2dd   :  { %v8028_v7 = vpop.eup %8027  ;;  %8053 = vrcp.f32 %v3399_v16  ;;  %v4134_v27 = vmul.f32 %v11027_v6, %v11026_v50  ;;  %v3370_v1 = vadd.f32 1.0, %v11028_v13  ;;  %v4492_v45 = vadd.f32 %v4491_v53, %v4490_v3 }
 0x2de   :  { %v8030_v18 = vpop.eup %8029  ;;  %8055 = vpow2.f32 %v10010_v8  ;;  %v4493_v58 = vsel %vm940_vm0, %v4068_v32, 0.0  ;;  %v4164_v55 = vmul.f32 %v8026_v39, %v9981_v23  ;;  %v4697_v24 = vadd.f32 %v4696_v41, %v4695_v38 }
 0x2df   :  { %v8032_v57 = vpop.eup %8031  ;;  %8057 = vrcp.f32 %v3400_v0  ;;  %v4698_v8 = vsel %vm940_vm0, %v4163_v46, 0.0  ;;  %v3401_v26 = vadd.f32 1.0, %v8028_v7  ;;  %v4526_v2 = vsel %vm940_vm0, %v4082_v17, 0.0  ;;  %v11034_v7 = vld [vmem:[#allocation35_spill] sm:$0xff] }
 0x2e0   :  { %v8034_v20 = vpop.eup %8033  ;;  %8059 = vpow2.f32 %v6317_v15  ;;  %v4069_v42 = vmul.f32 %v10178_v52, %v11029_v54  ;;  %v3306_v56 = vadd.f32 1.0, %v8016_v29  ;;  %v4527_v37 = vadd.f32 %v4526_v2, %v4525_v48  ;;  %v11030_v52 = vld [vmem:[#allocation69_spill] sm:$0xff]  ;;  %v11032_v15 = vld [vmem:[#allocation34_spill] sm:$0xff] }
 0x2e1   :  { %v8036_v63 = vpop.eup %8035  ;;  %8061 = vrcp.f32 %v3305_v31  ;;  %v4494_v35 = vadd.f32 %v4493_v58, %v4492_v45  ;;  %v4084_v23 = vmul.f32 %v8034_v20, %v10109_v47  ;;  %v4700_v10 = vsel %vm940_vm0, %v4164_v55, 0.0  ;;  %v11031_v47 = vld [vmem:[#allocation24_spill] sm:$0xff]  ;;  %v11036_v20 = vld [vmem:[#allocation71_spill] sm:$0xff]  ;;  %v11037_v58 = vld [vmem:[#allocation37_spill] sm:$0xff] }
 0x2e2   :  { %v8038_v11 = vpop.eup %8037  ;;  %8063 = vrcp.f32 %v3370_v1  ;;  %v3307_v9 = vadd.f32 1.0, %v8024_v60  ;;  %v4165_v43 = vmul.f32 %v8030_v18, %v10038_v30  ;;  %v4699_v34 = vadd.f32 %v4698_v8, %v4697_v24  ;;  %v11033_v30 = vld [vmem:[#allocation29_spill] sm:$0xff]  ;;  %v11035_v31 = vld [vmem:[#allocation104_spill] sm:$0xff] }
 0x2e3   :  { %v8040_v33 = vpop.eup %8039  ;;  %v4083_v28 = vmul.f32 %v8038_v11, %v10172_v40  ;;  %8065 = vrcp.f32 %v3401_v26  ;;  %v4085_v19 = vmul.f32 %v8036_v63, %v11030_v52  ;;  %v3402_v29 = vadd.f32 1.0, %v8032_v57  ;;  %v11038_v26 = vld [vmem:[#allocation109_spill] sm:$0xff] }
 0x2e4   :  { %v8042_v44 = vpop.eup %8041  ;;  %v4495_v49 = vsel %vm940_vm0, %v4069_v42, 0.0  ;;  %v4070_v36 = vmul.f32 %v8040_v33, %v11031_v47  ;;  %8067 = vrcp.f32 %v3306_v56  ;;  %v3371_v60 = vadd.f32 1.0, %v11032_v15  ;;  %v11039_v42 = vld [vmem:[#allocation40_spill] sm:$0xff]  ;;  %v11046_v47 = vld [vmem:[#allocation59_spill] sm:$0xff] }
 0x2e5   :  { %v8044_v14 = vpop.eup %8043  ;;  %v4528_v21 = vsel %vm940_vm0, %v4083_v28, 0.0  ;;  %v4496_v22 = vadd.f32 %v4495_v49, %v4494_v35  ;;  %v4071_v32 = vmul.f32 %v8042_v44, %v11033_v30  ;;  %v4530_v3 = vsel %vm940_vm0, %v4084_v23, 0.0  ;;  %v11041_v35 = vld [vmem:[#allocation30_spill] sm:$0xff] }
 0x2e6   :  { %v8046_v16 = vpop.eup %8045  ;;  %v4529_v40 = vadd.f32 %v4528_v21, %v4527_v37  ;;  %8069 = vrcp.f32 %v3307_v9  ;;  %v4702_v39 = vsel %vm940_vm0, %v4165_v43, 0.0  ;;  %v4701_v38 = vadd.f32 %v4700_v10, %v4699_v34  ;;  %v11042_v44 = vld [vmem:[#allocation66_spill] sm:$0xff]  ;;  %v11043_v10 = vld [vmem:[#allocation103_spill] sm:$0xff] }
 0x2e7   :  { %v8048_v4 = vpop.eup %8047  ;;  %v4166_v46 = vmul.f32 %v8044_v14, %v11034_v7  ;;  %v4532_v51 = vsel %vm940_vm0, %v4085_v19, 0.0  ;;  %8071 = vrcp.f32 %v3402_v29  ;;  %v3403_v17 = vadd.f32 1.0, %v8046_v16  ;;  %v11044_v19 = vld [vmem:[#allocation33_spill] sm:$0xff]  ;;  %v11045_v16 = vld [vmem:[#allocation106_spill] sm:$0xff] }
 0x2e8   :  { %v8050_v53 = vpop.eup %8049  ;;  %v4531_v41 = vadd.f32 %v4530_v3, %v4529_v40  ;;  %v3372_v48 = vadd.f32 1.0, %v11035_v31  ;;  %v4497_v57 = vsel %vm940_vm0, %v4070_v36, 0.0  ;;  %v3308_v50 = vadd.f32 1.0, %v8048_v4  ;;  %v11052_v31 = vld [vmem:[#allocation112_spill] sm:$0xff] }
 0x2e9   :  { %v8052_v0 = vpop.eup %8051  ;;  %v4634_v1 = vadd.f32 %v10283_v62, %v4632_v59  ;;  %v4635_v45 = vsel %vm940_vm0, %v4134_v27, 0.0  ;;  %v4135_v55 = vmul.f32 %v11037_v58, %v11036_v20  ;;  %v4498_v24 = vadd.f32 %v4497_v57, %v4496_v22  ;;  %v11040_v59 = vld [vmem:[#allocation38_spill] sm:$0xff]  ;;  %v11047_v22 = vld [vmem:[#allocation115_spill] sm:$0xff] }
 0x2ea   :  { %v8054_v18 = vpop.eup %8053  ;;  %v4533_v6 = vadd.f32 %v4532_v51, %v4531_v41  ;;  %8073 = vrcp.f32 %v3371_v60  ;;  %v4499_v63 = vsel %vm940_vm0, %v4071_v32, 0.0  ;;  %v4703_v8 = vadd.f32 %v4702_v39, %v4701_v38  ;;  %v11048_v32 = vld [vmem:[#allocation28_spill] sm:$0xff]  ;;  %v11049_v39 = vld [vmem:[#allocation46_spill] sm:$0xff]  ;;  %v11051_v51 = vld [vmem:[#allocation5_spill] sm:$0xff] }
 0x2eb   :  { %v8056_v13 = vpop.eup %8055  ;;  %v4704_v54 = vsel %vm940_vm0, %v4166_v46, 0.0  ;;  %v4167_v56 = vmul.f32 %v8054_v18, %v11039_v42  ;;  %v3404_v37 = vadd.f32 1.0, %v8052_v0  ;;  %8075 = vrcp.f32 %v3403_v17  ;;  %v11050_v46 = vld [vmem:[#allocation70_spill] sm:$0xff]  ;;  %v11055_v58 = vld [vmem:[#allocation43_spill] sm:$0xff] }
 0x2ec   :  { %v4535_v2 = vadd.f32 %v11038_v26, %v4533_v6  ;;  %v8058_v11 = vpop.eup %8057  ;;  %v4072_v27 = vmul.f32 %v8050_v53, %v11040_v59  ;;  %8077 = vrcp.f32 %v3308_v50  ;;  %v3309_v33 = vadd.f32 1.0, %v8056_v13  ;;  %v11053_v50 = vld [vmem:[#allocation54_spill] sm:$0xff]  ;;  %v11057_v26 = vld [vmem:[#allocation27_spill] sm:$0xff] }
 0x2ed   :  { %v8060_v62 = vpop.eup %8059  ;;  %v4136_v9 = vmul.f32 %v11043_v10, %v11042_v44  ;;  %v4636_v43 = vadd.f32 %v4635_v45, %v4634_v1  ;;  %8079 = vrcp.f32 %v3372_v48  ;;  %v4500_v34 = vadd.f32 %v4499_v63, %v4498_v24  ;;  %v11054_v1 = vld [vmem:[#allocation84_spill] sm:$0xff]  ;;  %v11056_v63 = vld [vmem:[#allocation82_spill] sm:$0xff] }
 0x2ee   :  { %v4537_v23 = vadd.f32 %v11041_v35, %v4535_v2  ;;  %v8062_v28 = vpop.eup %8061  ;;  %v4637_v52 = vsel %vm940_vm0, %v4135_v55, 0.0  ;;  %v3373_v29 = vadd.f32 1.0, %v11044_v19  ;;  %v4705_v21 = vadd.f32 %v4704_v54, %v4703_v8  ;;  %v11058_v54 = vld [vmem:[#allocation74_spill] sm:$0xff] }
 0x2ef   :  { %v8064_v14 = vpop.eup %8063  ;;  %v4168_v36 = vmul.f32 %v8058_v11, %v11046_v47  ;;  %v4706_v40 = vsel %vm940_vm0, %v4167_v56, 0.0  ;;  %8081 = vrcp.f32 %v3404_v37  ;;  %v3405_v4 = vadd.f32 1.0, %v8060_v62  ;;  %v11059_v62 = vld [vmem:[#allocation80_spill] sm:$0xff] }
 0x2f0   :  { %v4539_v49 = vadd.f32 %v11045_v16, %v4537_v23  ;;  %v8066_v15 = vpop.eup %8065  ;;  %v4501_v60 = vsel %vm940_vm0, %v4072_v27, 0.0  ;;  %v4073_v30 = vmul.f32 %v8062_v28, %v11047_v22  ;;  %8083 = vrcp.f32 %v3309_v33  ;;  %v11060_v33 = vld [vmem:[#allocation25_spill] sm:$0xff] }
 0x2f1   :  { %v8068_v53 = vpop.eup %8067  ;;  %v3334_v38 = vadd.f32 1.0, %v11049_v39  ;;  %v4639_v41 = vsel %vm940_vm0, %v4136_v9, 0.0  ;;  %v4638_v0 = vadd.f32 %v4637_v52, %v4636_v43  ;;  %v4502_v7 = vadd.f32 %v4501_v60, %v4500_v34  ;;  %v11061_v28 = vld [vmem:[#allocation49_spill] sm:$0xff]  ;;  %v11062_v34 = vld [vmem:[#allocation12_spill] sm:$0xff]  ;;  %v11066_v60 = vld [vmem:[#allocation78_spill] sm:$0xff] }
 0x2f2   :  { %v4541_v3 = vadd.f32 %v11048_v32, %v4539_v49  ;;  %v4137_v17 = vmul.f32 %v11051_v51, %v11050_v46  ;;  %8085 = vrcp.f32 %v3373_v29  ;;  %v4707_v18 = vadd.f32 %v4706_v40, %v4705_v21  ;;  %v11063_v52 = vld [vmem:[#allocation45_spill] sm:$0xff]  ;;  %v11064_v29 = vld [vmem:[#allocation114_spill] sm:$0xff]  ;;  %v11070_v46 = vld [vmem:[#allocation48_spill] sm:$0xff] }
 0x2f3   :  { %v8070_v57 = vpop.eup %8069  ;;  %v3335_v6 = vadd.f32 1.0, %v11053_v50  ;;  %v4708_v13 = vsel %vm940_vm0, %v4168_v36, 0.0  ;;  %v4169_v45 = vmul.f32 %v8066_v15, %v11054_v1  ;;  %8087 = vrcp.f32 %v3405_v4  ;;  %v11065_v49 = vld [vmem:[#allocation58_spill] sm:$0xff]  ;;  %v11075_v1 = vld [vmem:[#allocation55_spill] sm:$0xff] }
 0x2f4   :  { %v4543_v48 = vadd.f32 %v11052_v31, %v4541_v3  ;;  %v8072_v20 = vpop.eup %8071  ;;  %v3336_v55 = vadd.f32 1.0, %v11055_v58  ;;  %v4503_v24 = vsel %vm940_vm0, %v4073_v30, 0.0  ;;  %v4074_v8 = vmul.f32 %v8068_v53, %v11056_v63  ;;  %v11067_v32 = vld [vmem:[#allocation10_spill] sm:$0xff]  ;;  %v11068_v53 = vld [vmem:[#allocation64_spill] sm:$0xff] }
 0x2f5   :  { %8089 = vrcp.f32 %v3334_v38  ;;  %v4640_v11 = vadd.f32 %v4639_v41, %v4638_v0  ;;  %v4138_v42 = vmul.f32 %v8064_v14, %v11058_v54  ;;  %v4504_v56 = vadd.f32 %v4503_v24, %v4502_v7  ;;  %v11069_v7 = vld [vmem:[#allocation13_spill] sm:$0xff]  ;;  %v11074_v50 = vld [vmem:[#allocation42_spill] sm:$0xff] }
 0x2f6   :  { %v4545_v2 = vadd.f32 %v11057_v26, %v4543_v48  ;;  %v4641_v37 = vsel %vm940_vm0, %v4137_v17, 0.0  ;;  %v4075_v59 = vmul.f32 %v8070_v57, %v11059_v62  ;;  %v4709_v27 = vadd.f32 %v4708_v13, %v4707_v18  ;;  %v11071_v17 = vld [vmem:[#allocation15_spill] sm:$0xff]  ;;  %v11072_v18 = vld [vmem:[#allocation53_spill] sm:$0xff]  ;;  %v11073_v48 = vld [vmem:[#allocation32_spill] sm:$0xff] }
 0x2f7   :  { %v8074_v23 = vpop.eup %8073  ;;  %v3337_v44 = vadd.f32 1.0, %v11061_v28  ;;  %8091 = vrcp.f32 %v3335_v6  ;;  %v4710_v10 = vsel %vm940_vm0, %v4169_v45, 0.0  ;;  %v4170_v9 = vmul.f32 %v8072_v20, %v10201_v5  ;;  %v11081_v28 = vld [vmem:[#allocation14_spill] sm:$0xff] }
 0x2f8   :  { %v4547_v35 = vadd.f32 %v11060_v33, %v4545_v2  ;;  %v8076_v43 = vpop.eup %8075  ;;  %v4100_v14 = vmul.f32 %v11063_v52, %v11062_v34  ;;  %8093 = vrcp.f32 %v3336_v55  ;;  %v4505_v19 = vsel %vm940_vm0, %v4074_v8, 0.0  ;;  %v11076_v55 = vld [vmem:[#allocation73_spill] sm:$0xff]  ;;  %v11083_v52 = vld [vmem:[#allocation76_spill] sm:$0xff] }
 0x2f9   :  { %v8078_v16 = vpop.eup %8077  ;;  %v3338_v47 = vadd.f32 1.0, %v11065_v49  ;;  %v4642_v36 = vadd.f32 %v4641_v37, %v4640_v11  ;;  %v4643_v40 = vsel %vm940_vm0, %v4138_v42, 0.0  ;;  %v4506_v4 = vadd.f32 %v4505_v19, %v4504_v56  ;;  %v11077_v8 = vld [vmem:[#allocation9_spill] sm:$0xff]  ;;  %v11078_v11 = vld [vmem:[#allocation63_spill] sm:$0xff] }
 0x2fa   :  { %v4549_v21 = vadd.f32 %v11064_v29, %v4547_v35  ;;  %v8080_v15 = vpop.eup %8079  ;;  %v4139_v22 = vmul.f32 %v8074_v23, %v11066_v60  ;;  %v4507_v5 = vsel %vm940_vm0, %v4075_v59, 0.0  ;;  %v4711_v30 = vadd.f32 %v4710_v10, %v4709_v27  ;;  %v11079_v27 = vld [vmem:[#allocation31_spill] sm:$0xff]  ;;  %v11080_v35 = vld [vmem:[#allocation41_spill] sm:$0xff] }
 0x2fb   :  { %8095 = vrcp.f32 %v3337_v44  ;;  %v3339_v39 = vadd.f32 1.0, %v11068_v53  ;;  %v4712_v38 = vsel %vm940_vm0, %v4170_v9, 0.0  ;;  %v4171_v41 = vmul.f32 %v8076_v43, %v10229_v25  ;;  %v11082_v44 = vld [vmem:[#allocation50_spill] sm:$0xff] }
 0x2fc   :  { %v4551_v3 = vadd.f32 %v11067_v32, %v4549_v21  ;;  %v8082_v0 = vpop.eup %8081  ;;  %v4098_v51 = vmul.f32 %v11070_v46, %v11069_v7  ;;  %v4099_v31 = vmul.f32 %v11072_v18, %v11071_v17  ;;  %v4076_v57 = vmul.f32 %v8078_v16, %v11073_v48 }
 0x2fd   :  { %v8084_v13 = vpop.eup %8083  ;;  %v3340_v45 = vadd.f32 1.0, %v11075_v1  ;;  %8097 = vrcp.f32 %v3338_v47  ;;  %v4644_v20 = vadd.f32 %v4643_v40, %v4642_v36  ;;  %v4508_v58 = vadd.f32 %v4507_v5, %v4506_v4 }
 0x2fe   :  { %v4553_v6 = vadd.f32 %v11074_v50, %v4551_v3  ;;  %v4140_v24 = vmul.f32 %v8080_v15, %v11076_v55  ;;  %v4645_v25 = vsel %vm940_vm0, %v4139_v22, 0.0  ;;  %v4713_v63 = vadd.f32 %v4712_v38, %v4711_v30  ;;  %v11084_v22 = vld [vmem:[#allocation17_spill] sm:$0xff] }
 0x2ff   :  { %v8086_v2 = vpop.eup %8085  ;;  %v3341_v54 = vadd.f32 1.0, %v11078_v11  ;;  %8099 = vrcp.f32 %v3339_v39  ;;  %v4172_v42 = vmul.f32 %v8082_v0, %v10187_v12  ;;  %v4714_v56 = vsel %vm940_vm0, %v4171_v41, 0.0  ;;  %v11085_v41 = vld [vmem:[#allocation19_spill] sm:$0xff]  ;;  %v11088_v55 = vld [vmem:[#allocation21_spill] sm:$0xff] }
 0x300   :  { %v4555_v26 = vadd.f32 %v11077_v8, %v4553_v6  ;;  %v8088_v37 = vpop.eup %8087  ;;  %v4558_v62 = vsel %vm940_vm0, %v4098_v51, 0.0  ;;  %v4509_v59 = vsel %vm940_vm0, %v4076_v57, 0.0  ;;  %v4077_v33 = vmul.f32 %v8084_v13, %v11079_v27  ;;  %v11086_v51 = vld [vmem:[#allocation16_spill] sm:$0xff]  ;;  %v11087_v6 = vld [vmem:[#allocation18_spill] sm:$0xff] }
 0x301   :  { %v4101_v10 = vmul.f32 %v11082_v44, %v11081_v28  ;;  %8101 = vrcp.f32 %v3340_v45  ;;  %v4646_v9 = vadd.f32 %v4645_v25, %v4644_v20  ;;  %v4510_v43 = vadd.f32 %v4509_v59, %v4508_v58  ;;  %v11091_v44 = vld [vmem:[#allocation22_spill] sm:$0xff] }
 0x302   :  { %v4557_v23 = vadd.f32 %v11080_v35, %v4555_v26  ;;  %v8090_v34 = vpop.eup %8089  ;;  %v4647_v12 = vsel %vm940_vm0, %v4140_v24, 0.0  ;;  %v4141_v19 = vmul.f32 %v8086_v2, %v11083_v52  ;;  %v4715_v21 = vadd.f32 %v4714_v56, %v4713_v63 }
 0x303   :  { %v4560_v16 = vsel %vm940_vm0, %v4099_v31, 0.0  ;;  %8103 = vrcp.f32 %v3341_v54  ;;  %v4716_v49 = vsel %vm940_vm0, %v4172_v42, 0.0  ;;  %v4173_v47 = vmul.f32 %v8088_v37, %v10217_v61  ;;  %v11089_v54 = vld [vmem:[#allocation23_spill] sm:$0xff] }
 0x304   :  { %v4559_v29 = vadd.f32 %v4558_v62, %v4557_v23  ;;  %v8092_v36 = vpop.eup %8091  ;;  %v4511_v40 = vsel %vm940_vm0, %v4077_v33, 0.0  ;;  %v4562_v60 = vsel %vm940_vm0, %v4100_v14, 0.0  ;;  %v4102_v5 = vmul.f32 %v8090_v34, %v11084_v22  ;;  %v11090_v62 = vld [vmem:[#allocation20_spill] sm:$0xff] }
 0x305   :  { %v8094_v15 = vpop.eup %8093  ;;  %v4648_v30 = vadd.f32 %v4647_v12, %v4646_v9  ;;  %v4512_v32 = vadd.f32 %v4511_v40, %v4510_v43  ;;  %v4649_v3 = vsel %vm940_vm0, %v4141_v19, 0.0  ;;  %v4717_v39 = vadd.f32 %v4716_v49, %v4715_v21 }
 0x306   :  { %v4561_v4 = vadd.f32 %v4560_v16, %v4559_v29  ;;  %v4564_v38 = vsel %vm940_vm0, %v4101_v10, 0.0  ;;  %v4103_v0 = vmul.f32 %v8092_v36, %v11085_v41  ;;  %v4718_v61 = vsel %vm940_vm0, %v4173_v47, 0.0 }
 0x307   :  { %v4104_v17 = vmul.f32 %v8094_v15, %v11086_v51  ;;  %v4566_v14 = vsel %vm940_vm0, %v4102_v5, 0.0  ;;  %v4650_v18 = vadd.f32 %v4649_v3, %v4648_v30  ;;  %v4513_v31 = vrot.slane %v4512_v32, 4 }
 0x308   :  { %v4563_v53 = vadd.f32 %v4562_v60, %v4561_v4  ;;  %v8096_v7 = vpop.eup %8095  ;;  %v4719_v50 = vadd.f32 %v4718_v61, %v4717_v39  ;;  %v4568_v1 = vsel %vm940_vm0, %v4103_v0, 0.0 }
 0x309   :  { %v4105_v13 = vmul.f32 %v8096_v7, %v11087_v6  ;;  %v4570_v58 = vsel %vm940_vm0, %v4104_v17, 0.0  ;;  %v4651_v25 = vrot.slane %v4650_v18, 4  ;;  %v4514_v63 = vadd.f32 %v4513_v31, %v4512_v32  ;;  %v11092_v17 = vld [vmem:[#allocation91_spill] sm:$0xff] }
 0x30a   :  { %v4565_v46 = vadd.f32 %v4564_v38, %v4563_v53  ;;  %v8098_v48 = vpop.eup %8097  ;;  %v4720_v26 = vrot.slane %v4719_v50, 4 }
 0x30b   :  { %v4106_v24 = vmul.f32 %v8098_v48, %v11088_v55  ;;  %v4572_v11 = vsel %vm940_vm0, %v4105_v13, 0.0  ;;  %v4652_v33 = vadd.f32 %v4651_v25, %v4650_v18  ;;  %v4515_v35 = vrot.slane %v4514_v63, 2  ;;  %v4735_v48 = vld [vmem:[%s10710_s2 + $0x8] sm:$0xff]  ;;  %v11094_v55 = vld [vmem:[#allocation36_spill] sm:$0xff] }
 0x30c   :  { %v4567_v57 = vadd.f32 %v4566_v14, %v4565_v46  ;;  %v8100_v45 = vpop.eup %8099  ;;  %v4721_v23 = vadd.f32 %v4720_v26, %v4719_v50  ;;  %v4736_v26 = vld [vmem:[%s10710_s2 + $0x10] sm:$0xff] }
 0x30d   :  { %v4107_v42 = vmul.f32 %v8100_v45, %v11089_v54  ;;  %v4574_v27 = vsel %vm940_vm0, %v4106_v24, 0.0  ;;  %v4653_v12 = vrot.slane %v4652_v33, 2  ;;  %v4516_v52 = vadd.f32 %v4515_v35, %v4514_v63  ;;  %v4744_v45 = vld [vmem:[%s10710_s2 + $0x50] sm:$0xff] }
 0x30e   :  { %v4569_v20 = vadd.f32 %v4568_v1, %v4567_v57  ;;  %v8102_v8 = vpop.eup %8101  ;;  %v4722_v19 = vrot.slane %v4721_v23, 2  ;;  %v4739_v57 = vld [vmem:[%s10710_s2 + $0x28] sm:$0xff]  ;;  %v11096_v63 = vmov 0  }
 0x30f   :  { %v4108_v59 = vmul.f32 %v8102_v8, %v11090_v62  ;;  %v4576_v9 = vsel %vm940_vm0, %v4107_v42, 0.0  ;;  %v4654_v49 = vadd.f32 %v4653_v12, %v4652_v33  ;;  %v4517_v47 = vrot.slane %v4516_v52, 1  ;;  %v4745_v42 = vld [vmem:[%s10710_s2 + $0x58] sm:$0xff]  ;;  %v7023_v12 = vld [vmem:[%s10713_s5 + $0x60] sm:$0xff]  }
 0x310   :  { %v4571_v2 = vadd.f32 %v4570_v58, %v4569_v20  ;;  %v8104_v56 = vpop.eup %8103  ;;  %v4723_v36 = vadd.f32 %v4722_v19, %v4721_v23  ;;  %v6321_v1 = vcombine.high %v4735_v48, %v4739_v57  ;;  %v4748_v20 = vld [vmem:[%s10710_s2 + $0x70] sm:$0xff]  ;;  %v11093_v58 = vld [vmem:[#allocation65_spill] sm:$0xff]  ;;  %v6320_v25 = vcombine.low %v4735_v48, %v4739_v57  ;;  %v7025_v19 = vld [vmem:[%s10713_s5 + $0x58] sm:$0xff]  }
 0x311   :  { %v4109_v10 = vmul.f32 %v8104_v56, %v11091_v44  ;;  %v4578_v34 = vsel %vm940_vm0, %v4108_v59, 0.0  ;;  %v4655_v15 = vrot.slane %v4654_v49, 1  ;;  %v4518_v60 = vadd.f32 %v4517_v47, %v4516_v52  ;;  %v4749_v56 = vld [vmem:[%s10710_s2 + $0x78] sm:$0xff]  ;;  %v7024_v52 = vld [vmem:[%s10713_s5 + $0x20] sm:$0xff]   ;;  %v7030_v47 = vld [vmem:[%s10713_s5 + $0x8] sm:$0xff]  }
 0x312   :  { %v4573_v37 = vadd.f32 %v4572_v11, %v4571_v2  ;;  %v4724_v22 = vrot.slane %v4723_v36, 1  ;;  %v11095_v24 = vcombine.low %v11093_v58, %v11094_v55  ;;  %v6331_v8 = vcombine.high %v4744_v45, %v4748_v20  ;;  %v4740_v2 = vld [vmem:[%s10710_s2 + $0x30] sm:$0xff]  ;;  %v4737_v59 = vld [vmem:[%s10710_s2 + $0x18] sm:$0xff]  ;;  %v5087_v48 = vld [vmem:[%s10712_s4 + $0x8] sm:$0xff] }
 0x313   :  { %v4580_v21 = vsel %vm940_vm0, %v4109_v10, 0.0  ;;  %v4656_v32 = vadd.f32 %v4655_v15, %v4654_v49  ;;  %v4730_v3 = vpack.c.bf16 %v4518_v60, %v4518_v60  ;;  %v6330_v11 = vcombine.low %v4744_v45, %v4748_v20  ;;  %v7018_v44 = vld [vmem:[%s10713_s5 + $0x38] sm:$0xff]   ;;  %v7019_v10 = vld [vmem:[%s10713_s5 + $0x70] sm:$0xff]   ;;  %v7029_v49 = vld [vmem:[%s10713_s5 + $0x48] sm:$0xff]  }
 0x314   :  { %v4575_v28 = vadd.f32 %v4574_v27, %v4573_v37  ;;  %v4725_v53 = vadd.f32 %v4724_v22, %v4723_v36  ;;  %v6323_v54 = vcombine.high %v4736_v26, %v4740_v2  ;;  %v6322_v37 = vcombine.low %v4736_v26, %v4740_v2  ;;  %v4741_v27 = vld [vmem:[%s10710_s2 + $0x38] sm:$0xff]  ;;  %v7031_v36 = vld [vmem:[%s10713_s5 + $0x40] sm:$0xff]  }
 0x315   :  { %v4732_v41 = vpack.c.bf16 %v4656_v32, %v4656_v32  ;;  %v4762_v0 = vunpack.c.l.b16 %v4730_v3  ;;  %v6333_v62 = vcombine.high %v4745_v42, %v4749_v56  ;;  %v6332_v33 = vcombine.low %v4745_v42, %v4749_v56  ;;  %v7034_v55 = vld [vmem:[%s10713_s5 + $0xb8] sm:$0xff]   ;;  %v7037_v56 = vld [vmem:[%s10713_s5 + $0xe8] sm:$0xff]  }
 0x316   :  { %v4577_v43 = vadd.f32 %v4576_v9, %v4575_v28  ;;  %v4733_v61 = vpack.c.bf16 %v4725_v53, %v4725_v53  ;;  %v6325_v35 = vcombine.high %v4737_v59, %v4741_v27  ;;  %v6324_v23 = vcombine.low %v4737_v59, %v4741_v27  ;;  %v7017_v28 = vld [vmem:[%s10713_s5 + $0x78] sm:$0xff]   ;;  %v7020_v9 = vld [vmem:[%s10713_s5 + $0x30] sm:$0xff]   ;;  %v7038_v27 = vld [vmem:[%s10713_s5 + $0xa8] sm:$0xff]  }
 0x317   :  { %v4764_v51 = vunpack.c.l.b16 %v4732_v41  ;;  %v4773_v14 = vsel %vm4772_vm4, %v4762_v0, %v11092_v17  ;;  %v5038_v15 = vlaneseq  ;;  %v5089_v2 = vld [vmem:[%s10712_s4 + $0x18] sm:$0xff] }
 0x318   :  { %v4579_v29 = vadd.f32 %v4578_v34, %v4577_v43  ;;  %v4765_v18 = vunpack.c.l.b16 %v4733_v61  ;;  %v7021_v43 = vld [vmem:[%s10713_s5 + $0x68] sm:$0xff]  }
 0x319   :  { %v7022_v34 = vld [vmem:[%s10713_s5 + $0x28] sm:$0xff]   ;;  %v10502_v60 = vshrl.u32 %v5038_v15, 7 }
 0x31a   :  { %v4581_v16 = vadd.f32 %v4580_v21, %v4579_v29  ;;  %v7026_v29 = vld [vmem:[%s10713_s5 + $0x18] sm:$0xff]   ;;  %v7027_v21 = vld [vmem:[%s10713_s5 + $0x50] sm:$0xff]  }
 0x31b   :  { %v5056_v22 = vsub.s32 4, %v10502_v60  ;;  %v5064_v32 = vsub.s32 6, %v10502_v60  ;;  %v5068_v53 = vsub.s32 7, %v10502_v60  ;;  %v5044_v41 = vsub.s32 1, %v10502_v60 }
 0x31c   :  { %v4582_v40 = vrot.slane %v4581_v16, 4 }
 0x31e   :  { %v4583_v4 = vadd.f32 %v4582_v40, %v4581_v16  ;;  %v7028_v16 = vld [vmem:[%s10713_s5 + $0x10] sm:$0xff]   ;;  %v7032_v40 = vld [vmem:[%s10713_s5] sm:$0xff]  }
 0x320   :  { %v4584_v5 = vrot.slane %v4583_v4, 2 }
 0x322   :  { %v4585_v30 = vadd.f32 %v4584_v5, %v4583_v4  ;;  %v7033_v4 = vld [vmem:[%s10713_s5 + $0xf8] sm:$0xff]   ;;  %v10508_v5 = vld [vmem:[%s10711_s3] sm:$0xff] }
 0x323   :  { %v5065_v3 = vrot.slane %v10508_v5, %v5064_v32 }
 0x324   :  { %v4586_v39 = vrot.slane %v4585_v30, 1 }
 0x326   :  { %v4587_v38 = vadd.f32 %v4586_v39, %v4585_v30  ;;  %v10511_v30 = vrot.slane %v10508_v5, %v5056_v22  ;;  %v10517_v39 = vrot.slane %v10508_v5, %v5068_v53  ;;  %v7046_v22 = vld [vmem:[%s10713_s5 + $0x88] sm:$0xff]   ;;  %v5088_v53 = vld [vmem:[%s10712_s4 + $0x10] sm:$0xff] }
 0x328   :  { %v4731_v7 = vpack.c.bf16 %v4587_v38, %v4587_v38  ;;  %v5040_v38 = vsub.s32 0, %v10502_v60 }
 0x32a   :  { %v4763_v46 = vunpack.c.l.b16 %v4731_v7  ;;  %v5041_v0 = vrot.slane %v10508_v5, %v5040_v38 }
 0x32c   :  { %v4775_v31 = vsel %vm4774_vm5, %v4763_v46, %v4773_v14  ;;  %v5045_v46 = vrot.slane %v10508_v5, %v5044_v41  ;;  %v5086_v14 = vld [vmem:[%s10712_s4] sm:$0xff] }
 0x32d   :  { %v4777_v50 = vsel %vm4776_vm6, %v4764_v51, %v4775_v31  ;;  %v7048_v41 = vld [vmem:[%s10713_s5 + $0x80] sm:$0xff]  }
 0x32e   :  { %v4779_v6 = vsel %vm4778_vm7, %v4765_v18, %v4777_v50  ;;  %v5052_v50 = vsub.s32 3, %v10502_v60 }
 0x32f   :  { %v4780_v13 = vpack.c.b16 %v4779_v6, %v4779_v6 }
 0x330   :  { %v5053_v20 = vrot.slane %v10508_v5, %v5052_v50  ;;  %v7056_v50 = vld [vmem:[%s10713_s5 + $0x120] sm:$0xff]  }
 0x331   :  { %6334 = vmatmul.mubr.msk.bf16.vlgmr.msra.gmra.mxu1 %vm940_vm0, %v4780_v13 }
 0x332   :  { %4918 = vmatpush1.bf16.msra.mxu1 %v11095_v24  ;;  %4937 = vmatprep.mubr.bf16.mxu1 %v11096_v63 }
 0x333   :  { %4919 = vmatprep.subr.bf16.mxu1 %v6321_v1 }
 0x336   :  { %4920 = vmatpush1.bf16.msra.mxu1 %v6320_v25 }
 0x337   :  { %4958 = vmatprep.subr.bf16.mxu1 %v6331_v8 }
 0x339   :  { %6335 = vmatmul.mubr.msk.bf16.vlgmr.msra.gmra.mxu1 %vm940_vm0, %v4780_v13 }
 0x33a   :  { %4959 = vmatpush1.bf16.msra.mxu1 %v6330_v11  ;;  %4978 = vmatprep.mubr.bf16.mxu1 %v11096_v63 }
 0x33b   :  { %4960 = vmatprep.subr.bf16.mxu1 %v6323_v54  ;;  %v7036_v54 = vld [vmem:[%s10713_s5 + $0xb0] sm:$0xff]  }
 0x33e   :  { %4961 = vmatpush1.bf16.msra.mxu1 %v6322_v37 }
 0x33f   :  { %4999 = vmatprep.subr.bf16.mxu1 %v6333_v62 }
 0x341   :  { %6336 = vmatmul.mubr.msk.bf16.vlgmr.msra.gmra.mxu1 %vm940_vm0, %v4780_v13 }
 0x342   :  { %5000 = vmatpush1.bf16.msra.mxu1 %v6332_v33  ;;  %5019 = vmatprep.mubr.bf16.mxu1 %v11096_v63  ;;  %v7035_v63 = vld [vmem:[%s10713_s5 + $0xf0] sm:$0xff]  }
 0x343   :  { %5001 = vmatprep.subr.bf16.mxu1 %v6325_v35  ;;  %v7039_v35 = vld [vmem:[%s10713_s5 + $0xe0] sm:$0xff]  }
 0x346   :  { %5002 = vmatpush1.bf16.msra.mxu1 %v6324_v23 }
 0x347   :  { %6533 = vmatprep.subr.bf16.mxu1 %v7017_v28  ;;  %v7040_v28 = vld [vmem:[%s10713_s5 + $0xa0] sm:$0xff]  }
 0x349   :  { %6337 = vmatmul.mubr.msk.bf16.vlgmr.msra.gmra.mxu1 %vm940_vm0, %v4780_v13 }
 0x34a   :  { %6534 = vmatpush3.bf16.msra.mxu1 %v7018_v44 }
 0x34b   :  { %6535 = vmatprep.subr.bf16.mxu1 %v7019_v10  ;;  %v7041_v10 = vld [vmem:[%s10713_s5 + $0xd8] sm:$0xff]  }
 0x34e   :  { %6536 = vmatpush3.bf16.msra.mxu1 %v7020_v9 }
 0x34f   :  { %6537 = vmatprep.subr.bf16.mxu1 %v7021_v43 }
 0x352   :  { %6538 = vmatpush3.bf16.msra.mxu1 %v7022_v34  ;;  %v7042_v34 = vld [vmem:[%s10713_s5 + $0x98] sm:$0xff]  }
 0x353   :  { %6539 = vmatprep.subr.bf16.mxu1 %v7023_v12  ;;  %v5048_v12 = vsub.s32 2, %v10502_v60 }
 0x356   :  { %6540 = vmatpush3.bf16.msra.mxu1 %v7024_v52 }
 0x357   :  { %6541 = vmatprep.subr.bf16.mxu1 %v7025_v19  ;;  %v7043_v19 = vld [vmem:[%s10713_s5 + $0xd0] sm:$0xff]  }
 0x35a   :  { %6542 = vmatpush3.bf16.msra.mxu1 %v7026_v29  ;;  %v5060_v29 = vsub.s32 5, %v10502_v60 }
 0x35b   :  { %6543 = vmatprep.subr.bf16.mxu1 %v7027_v21 }
 0x35c   :  { %v5061_v60 = vrot.slane %v10508_v5, %v5060_v29 }
 0x35e   :  { %6544 = vmatpush3.bf16.msra.mxu1 %v7028_v16 }
 0x35f   :  { %6545 = vmatprep.subr.bf16.mxu1 %v7029_v49  ;;  %v7044_v49 = vld [vmem:[%s10713_s5 + $0x90] sm:$0xff]  }
 0x362   :  { %6546 = vmatpush3.bf16.msra.mxu1 %v7030_v47 }
 0x363   :  { %6547 = vmatprep.subr.bf16.mxu1 %v7031_v36  ;;  %v5049_v36 = vrot.slane %v10508_v5, %v5048_v12  ;;  %v5091_v5 = vld [vmem:[%s10712_s4 + $0x28] sm:$0xff]  ;;  %v7079_v12 = vld [vmem:[%s10713_s5 + $0x1c0] sm:$0xff]  }
 0x366   :  { %6548 = vmatpush3.bf16.msra.mxu1 %v7032_v40 }
 0x367   :  { %6555 = vmatprep.subr.bf16.mxu1 %v7033_v4  ;;  %v7045_v4 = vld [vmem:[%s10713_s5 + $0xc8] sm:$0xff]  }
 0x3f1   :  { %v4898_v61 = vpop.f32.mrf.mxu1 }
 0x3f2   :  { %v5028_v7 = vmul.f32 0.00390625, %v4898_v61  ;;  %v7049_v61 = vld [vmem:[%s10713_s5 + $0x178] sm:$0xff]  }
 0x3f3   :  { %v4900_v51 = vpop.f32.mrf.mxu1 }
 0x3f4   :  { %v5078_v17 = vadd.f32 %v5041_v0, %v5028_v7  ;;  %v5029_v18 = vmul.f32 0.00390625, %v4900_v51 }
 0x3f5   :  { %v4902_v31 = vpop.f32.mrf.mxu1 }
 0x3f6   :  { %v5079_v57 = vadd.f32 %v5045_v46, %v5029_v18  ;;  %v5094_v6 = vmul.f32 %v5086_v14, %v5078_v17  ;;  %v7050_v46 = vld [vmem:[%s10713_s5 + $0x138] sm:$0xff]   ;;  %v7051_v17 = vld [vmem:[%s10713_s5 + $0x170] sm:$0xff]   ;;  %v7053_v31 = vld [vmem:[%s10713_s5 + $0x168] sm:$0xff]  }
 0x3f7   :  { %v4903_v13 = vpop.f32.mrf.mxu1  ;;  %v7052_v18 = vld [vmem:[%s10713_s5 + $0x130] sm:$0xff]  }
 0x3f8   :  { %v5095_v1 = vmul.f32 %v5087_v48, %v5079_v57  ;;  %v5102_v24 = vpack.c.bf16 %v5094_v6, %v5094_v6  ;;  %v7054_v48 = vld [vmem:[%s10713_s5 + $0x128] sm:$0xff]   ;;  %v7055_v57 = vld [vmem:[%s10713_s5 + $0x160] sm:$0xff]   ;;  %v7057_v6 = vld [vmem:[%s10713_s5 + $0x158] sm:$0xff]  }
 0x3f9   :  { %v4939_v45 = vpop.f32.mrf.mxu1  ;;  %v7058_v13 = vld [vmem:[%s10713_s5 + $0x118] sm:$0xff]  }
 0x3fa   :  { %v5103_v58 = vpack.c.bf16 %v5095_v1, %v5095_v1  ;;  %v5030_v47 = vmul.f32 0.00390625, %v4939_v45  ;;  %v7059_v1 = vld [vmem:[%s10713_s5 + $0x150] sm:$0xff]  }
 0x3fb   :  { %v4941_v25 = vpop.f32.mrf.mxu1  ;;  %v7060_v45 = vld [vmem:[%s10713_s5 + $0x110] sm:$0xff]  }
 0x3fc   :  { %v5031_v8 = vmul.f32 0.00390625, %v4941_v25  ;;  %5661 = vmatprep.mubr.bf16.mxu1 %v5103_v58  ;;  %v5080_v32 = vadd.f32 %v5049_v36, %v5030_v47  ;;  %v7061_v58 = vld [vmem:[%s10713_s5 + $0x148] sm:$0xff]  }
 0x3fd   :  { %v4943_v26 = vpop.f32.mrf.mxu1  ;;  %5662 = vmatmul.mubr.bf16.vlgmr.msra.gmra.mxu1 %v5102_v24  ;;  %v7062_v24 = vld [vmem:[%s10713_s5 + $0x108] sm:$0xff]  }
 0x3fe   :  { %v5081_v11 = vadd.f32 %v5053_v20, %v5031_v8  ;;  %6556 = vmatpush3.bf16.msra.mxu1 %v7034_v55  ;;  %v5096_v0 = vmul.f32 %v5088_v53, %v5080_v32  ;;  %v5090_v8 = vld [vmem:[%s10712_s4 + $0x20] sm:$0xff] }
 0x3ff   :  { %v4944_v42 = vpop.f32.mrf.mxu1  ;;  %6557 = vmatprep.subr.bf16.mxu1 %v7035_v63  ;;  %v7063_v63 = vld [vmem:[%s10713_s5 + $0x140] sm:$0xff]  }
 0x400   :  { %v5097_v37 = vmul.f32 %v5089_v2, %v5081_v11  ;;  %v5104_v51 = vpack.c.bf16 %v5096_v0, %v5096_v0  ;;  %v5093_v2 = vld [vmem:[%s10712_s4 + $0x38] sm:$0xff] }
 0x401   :  { %v10546_v62 = vpop.f32.mrf.mxu1 }
 0x402   :  { %6558 = vmatpush3.bf16.msra.mxu1 %v7036_v54  ;;  %v5105_v59 = vpack.c.bf16 %v5097_v37, %v5097_v37  ;;  %v5032_v20 = vmul.f32 0.00390625, %v10546_v62  ;;  %v7065_v54 = vld [vmem:[%s10713_s5 + $0x1f8] sm:$0xff]   ;;  %v7067_v37 = vld [vmem:[%s10713_s5 + $0x1f0] sm:$0xff]  }
 0x403   :  { %v4982_v33 = vpop.f32.mrf.mxu1  ;;  %6559 = vmatprep.subr.bf16.mxu1 %v7037_v56 }
 0x404   :  { %5701 = vmatprep.mubr.bf16.mxu1 %v5105_v59  ;;  %v5033_v15 = vmul.f32 0.00390625, %v4982_v33  ;;  %v5082_v25 = vadd.f32 %v10511_v30, %v5032_v20  ;;  %v7064_v30 = vld [vmem:[%s10713_s5 + $0x100] sm:$0xff]   ;;  %v7068_v59 = vld [vmem:[%s10713_s5 + $0x1b0] sm:$0xff]   ;;  %v7070_v33 = vld [vmem:[%s10713_s5 + $0x1a8] sm:$0xff]  }
 0x405   :  { %v4984_v23 = vpop.f32.mrf.mxu1 }
 0x406   :  { %6560 = vmatpush3.bf16.msra.mxu1 %v7038_v27  ;;  %v5083_v38 = vadd.f32 %v5061_v60, %v5033_v15  ;;  %v5098_v11 = vmul.f32 %v5090_v8, %v5082_v25  ;;  %v7069_v27 = vld [vmem:[%s10713_s5 + $0x1e8] sm:$0xff]   ;;  %v7072_v23 = vld [vmem:[%s10713_s5 + $0x1a0] sm:$0xff]  }
 0x407   :  { %v4985_v44 = vpop.f32.mrf.mxu1  ;;  %6561 = vmatprep.subr.bf16.mxu1 %v7039_v35  ;;  %v7071_v35 = vld [vmem:[%s10713_s5 + $0x1e0] sm:$0xff]  }
 0x408   :  { %v5099_v7 = vmul.f32 %v5091_v5, %v5083_v38  ;;  %v5106_v56 = vpack.c.bf16 %v5098_v11, %v5098_v11  ;;  %v7074_v44 = vld [vmem:[%s10713_s5 + $0x198] sm:$0xff]  }
 0x409   :  { %v5021_v9 = vpop.f32.mrf.mxu1 }
 0x40a   :  { %v5034_v43 = vmul.f32 0.00390625, %v5021_v9  ;;  %6562 = vmatpush3.bf16.msra.mxu1 %v7040_v28  ;;  %v5107_v14 = vpack.c.bf16 %v5099_v7, %v5099_v7  ;;  %v7073_v28 = vld [vmem:[%s10713_s5 + $0x1d8] sm:$0xff]   ;;  %v7076_v9 = vld [vmem:[%s10713_s5 + $0x190] sm:$0xff]  }
 0x40b   :  { %v5023_v52 = vpop.f32.mrf.mxu1  ;;  %6563 = vmatprep.subr.bf16.mxu1 %v7041_v10  ;;  %v7075_v10 = vld [vmem:[%s10713_s5 + $0x1d0] sm:$0xff]  }
 0x40c   :  { %v10568_v21 = vadd.f32 %v5065_v3, %v5034_v43  ;;  %v7047_v3 = vld [vmem:[%s10713_s5 + $0xc0] sm:$0xff]   ;;  %v5035_v55 = vmul.f32 0.00390625, %v5023_v52  ;;  %v7077_v43 = vld [vmem:[%s10713_s5 + $0x1c8] sm:$0xff]   ;;  %v5092_v52 = vld [vmem:[%s10712_s4 + $0x30] sm:$0xff] }
 0x40d   :  { %v5025_v16 = vpop.f32.mrf.mxu1 }
 0x40e   :  { %6564 = vmatpush3.bf16.msra.mxu1 %v7042_v34  ;;  %v5085_v26 = vadd.f32 %v10517_v39, %v5035_v55  ;;  %v7066_v39 = vld [vmem:[%s10713_s5 + $0x1b8] sm:$0xff]   ;;  %v7078_v34 = vld [vmem:[%s10713_s5 + $0x188] sm:$0xff]   ;;  %v5100_v29 = vmul.f32 %v5092_v52, %v10568_v21  ;;  %v6338_v21 = vld [vmem:[%s10714_s6] ss:$0 sm:$0xff] }
 0x40f   :  { %v5026_v40 = vpop.f32.mrf.mxu1  ;;  %6565 = vmatprep.subr.bf16.mxu1 %v7043_v19  ;;  %v7080_v19 = vld [vmem:[%s10713_s5 + $0x180] sm:$0xff]  }
 0x410   :  { %v5101_v42 = vmul.f32 %v5093_v2, %v5085_v26  ;;  %v5108_v16 = vpack.c.bf16 %v5100_v29, %v5100_v29 }
 0x412   :  { %6566 = vmatpush3.bf16.msra.mxu1 %v7044_v49  ;;  %v5109_v62 = vpack.c.bf16 %v5101_v42, %v5101_v42 }
 0x413   :  { %6567 = vmatprep.subr.bf16.mxu1 %v7045_v4 }
 0x416   :  { %6568 = vmatpush3.bf16.msra.mxu1 %v7046_v22 }
 0x417   :  { %6569 = vmatprep.subr.bf16.mxu1 %v7047_v3 }
 0x41a   :  { %6570 = vmatpush3.bf16.msra.mxu1 %v7048_v41 }
 0x41b   :  { %6577 = vmatprep.subr.bf16.mxu1 %v7049_v61 }
 0x41d   :  { %5702 = vmatmul.mubr.bf16.vlgmr.msra.gmra.mxu1 %v5104_v51 }
 0x41e   :  { %6578 = vmatpush3.bf16.msra.mxu1 %v7050_v46  ;;  %5741 = vmatprep.mubr.bf16.mxu1 %v5107_v14 }
 0x41f   :  { %6579 = vmatprep.subr.bf16.mxu1 %v7051_v17 }
 0x422   :  { %6580 = vmatpush3.bf16.msra.mxu1 %v7052_v18 }
 0x423   :  { %6581 = vmatprep.subr.bf16.mxu1 %v7053_v31 }
 0x426   :  { %6582 = vmatpush3.bf16.msra.mxu1 %v7054_v48 }
 0x427   :  { %6583 = vmatprep.subr.bf16.mxu1 %v7055_v57 }
 0x42a   :  { %6584 = vmatpush3.bf16.msra.mxu1 %v7056_v50 }
 0x42b   :  { %6585 = vmatprep.subr.bf16.mxu1 %v7057_v6 }
 0x42e   :  { %6586 = vmatpush3.bf16.msra.mxu1 %v7058_v13 }
 0x42f   :  { %6587 = vmatprep.subr.bf16.mxu1 %v7059_v1 }
 0x432   :  { %6588 = vmatpush3.bf16.msra.mxu1 %v7060_v45 }
 0x433   :  { %6589 = vmatprep.subr.bf16.mxu1 %v7061_v58 }
 0x436   :  { %6590 = vmatpush3.bf16.msra.mxu1 %v7062_v24 }
 0x437   :  { %6591 = vmatprep.subr.bf16.mxu1 %v7063_v63 }
 0x43a   :  { %6592 = vmatpush3.bf16.msra.mxu1 %v7064_v30 }
 0x43b   :  { %6599 = vmatprep.subr.bf16.mxu1 %v7065_v54 }
 0x43d   :  { %5742 = vmatmul.mubr.bf16.vlgmr.msra.gmra.mxu1 %v5106_v56 }
 0x43e   :  { %6600 = vmatpush3.bf16.msra.mxu1 %v7066_v39  ;;  %5781 = vmatprep.mubr.bf16.mxu1 %v5109_v62 }
 0x43f   :  { %6601 = vmatprep.subr.bf16.mxu1 %v7067_v37 }
 0x442   :  { %6602 = vmatpush3.bf16.msra.mxu1 %v7068_v59 }
 0x443   :  { %6603 = vmatprep.subr.bf16.mxu1 %v7069_v27 }
 0x446   :  { %6604 = vmatpush3.bf16.msra.mxu1 %v7070_v33 }
 0x447   :  { %6605 = vmatprep.subr.bf16.mxu1 %v7071_v35 }
 0x44a   :  { %6606 = vmatpush3.bf16.msra.mxu1 %v7072_v23 }
 0x44b   :  { %6607 = vmatprep.subr.bf16.mxu1 %v7073_v28 }
 0x44e   :  { %6608 = vmatpush3.bf16.msra.mxu1 %v7074_v44 }
 0x44f   :  { %6609 = vmatprep.subr.bf16.mxu1 %v7075_v10 }
 0x452   :  { %6610 = vmatpush3.bf16.msra.mxu1 %v7076_v9 }
 0x453   :  { %6611 = vmatprep.subr.bf16.mxu1 %v7077_v43 }
 0x456   :  { %6612 = vmatpush3.bf16.msra.mxu1 %v7078_v34 }
 0x457   :  { %6613 = vmatprep.subr.bf16.mxu1 %v7079_v12 }
 0x45a   :  { %6614 = vmatpush3.bf16.msra.mxu1 %v7080_v19 }
 0x45d   :  { %5782 = vmatmul.mubr.bf16.vlgmr.msra.gmra.mxu1 %v5108_v16 }
 0x4bd   :  { %v6549_v49 = vpop.f32.mrf.mxu1 }
 0x4bf   :  { %v6550_v47 = vpop.f32.mrf.mxu1 }
 0x4c0   :  { %v6551_v36 = vadd.f32 %v6550_v47, %v6549_v49 }
 0x4c1   :  { %v6552_v40 = vpop.f32.mrf.mxu1 }
 0x4c2   :  { %v5664_v0 = vadd.f32 %v6551_v36, %v6338_v21 }
 0x4c3   :  { %v6553_v4 = vpop.f32.mrf.mxu1 }
 0x4dd   :  { %v6571_v15 = vpop.f32.mrf.mxu1 }
 0x4df   :  { %v6572_v60 = vpop.f32.mrf.mxu1 }
 0x4e0   :  { %v6573_v41 = vadd.f32 %v6572_v60, %v6571_v15 }
 0x4e1   :  { %v6574_v22 = vpop.f32.mrf.mxu1 }
 0x4e2   :  { %v5704_v46 = vadd.f32 %v6573_v41, %v5664_v0 }
 0x4e3   :  { %v6575_v32 = vpop.f32.mrf.mxu1 }
 0x4fd   :  { %v6593_v3 = vpop.f32.mrf.mxu1 }
 0x4ff   :  { %v6594_v53 = vpop.f32.mrf.mxu1 }
 0x500   :  { %v6595_v61 = vadd.f32 %v6594_v53, %v6593_v3 }
 0x501   :  { %v6596_v38 = vpop.f32.mrf.mxu1 }
 0x502   :  { %v5744_v17 = vadd.f32 %v6595_v61, %v5704_v46 }
 0x503   :  { %v6597_v5 = vpop.f32.mrf.mxu1 }
 0x51d   :  { %v6615_v7 = vpop.f32.mrf.mxu1 }
 0x51f   :  { %v6616_v51 = vpop.f32.mrf.mxu1 }
 0x520   :  { %v6617_v14 = vadd.f32 %v6616_v51, %v6615_v7 }
 0x521   :  { %v6618_v18 = vpop.f32.mrf.mxu1 }
 0x522   :  { %v5784_v31 = vadd.f32 %v6617_v14, %v5744_v17 }
 0x523   :  { %v6619_v48 = vpop.f32.mrf.mxu1 }
 0x524   :  { %5789 = vst [vmem:[#allocation2] sm:$0xff] %v5784_v31 }
 0x525   :  { %8116 = shalt.err (!%p8113_p4)
}
 0x526   :  { %5799 = dma.vmem_to_hbm [thread:$0]  %s5797_s13, 128, %s10715_s7, [#allocation3]  }
 0x527   :  { %8125 = dma.done.wait [#allocation3], 128  }
 0x528   :  { %8126 = vsyncadd [#allocation3], 4294967168 }
 0x529   :  { %5803 = vsyncpa [#allocation3], 1 }

</bundles_post_ra>
